<compile_context>
chip_gen: v7x
topology: tpu7x:2x2x1
jax: 0.10.0
libtpu: 0.0.40
codegen_flags: <defaults>
</compile_context>

<pallas_src>
import math
import functools

import jax
import jax.numpy as jnp
from jax.experimental import pallas as pl
from jax.experimental.pallas import tpu as pltpu


# ----------------------------------------------------------------------------
# Small helpers
# ----------------------------------------------------------------------------
def _rup(x, m):
    return -(-x // m) * m


def _pick_row_tile(M, Ws, Wo, C4, Cout, out_itemsize,
                   budget_bytes=12 * 1024 * 1024):
    """Largest power-of-two divisor of M whose estimated VMEM footprint fits."""
    lane_in = _rup(C4, 128)
    lane_out = _rup(Cout, 128)
    # double-buffered resident weight block (2,2,C4,Cout) bf16
    w_bytes = 2 * (2 * 2 * _rup(C4, 8) * lane_out * 2)
    budget = max(budget_bytes - w_bytes, 2 * 1024 * 1024)

    def est(tm):
        in_b = tm * _rup(Ws, 8) * lane_in * 2            # one bf16 input buffer
        out_b = tm * _rup(Wo, 8) * lane_out * out_itemsize
        acc_b = tm * Wo * lane_out * 4                   # f32 accumulator value
        tmp_b = tm * Wo * lane_in * 2                    # sliced operand value
        return 4 * in_b + 2 * out_b + acc_b + tmp_b      # 2 inputs x 2 buffers, 2 out buffers

    best, t = 1, 1
    while t <= M:
        if M % t == 0 and est(t) <= budget:
            best = t
        t *= 2
    return best


# ----------------------------------------------------------------------------
# Pallas kernel 1: fused space-to-depth conv (2x2 stride-1 taps) + bias + LeakyReLU
#   y0/y1: (tm, Ws, C4) bf16  -- row-shifted s2d views (Ws = Wo + 1)
#   w2   : (2, 2, C4, Cout) bf16
#   b    : (1, Cout) f32
#   out  : (tm, Wo, Cout) bf16
# ----------------------------------------------------------------------------
def _conv_s2d_kernel(y0_ref, y1_ref, w_ref, b_ref, o_ref, *, negative_slope):
    tm, ws, c4 = y0_ref.shape
    _, wo, cout = o_ref.shape

    acc = None
    for qi, y_ref in ((0, y0_ref), (1, y1_ref)):
        for qj in range(2):
            a = y_ref[:, qj:qj + wo, :].reshape(tm * wo, c4)   # bf16 operand
            part = jnp.dot(a, w_ref[qi, qj],
                           preferred_element_type=jnp.float32)
            acc = part if acc is None else acc + part
    acc = acc + b_ref[...]                                     # (1, Cout) broadcast
    if negative_slope is not None:
        acc = jnp.where(acc >= 0, acc, negative_slope * acc)
    o_ref[...] = acc.reshape(tm, wo, cout).astype(o_ref.dtype)


def pallas_conv_s2d(y0, y1, w2, bias, negative_slope, out_dtype=jnp.bfloat16):
    M, Ws, C4 = y0.shape
    _, _, _, Cout = w2.shape
    Wo = Ws - 1
    tm = _pick_row_tile(M, Ws, Wo, C4, Cout, jnp.dtype(out_dtype).itemsize)

    # TODO(synk): for very wide layers (e.g. C4*Cout bf16 block > ~8 MB on
    # v5e/v7x) add a K (C4) grid axis with a VMEM f32 accumulator instead of
    # keeping the whole (2,2,C4,Cout) weight resident.
    kernel = functools.partial(_conv_s2d_kernel, negative_slope=negative_slope)
    return pl.pallas_call(
        kernel,
        out_shape=jax.ShapeDtypeStruct((M, Wo, Cout), out_dtype),
        grid_spec=pltpu.PrefetchScalarGridSpec(
            num_scalar_prefetch=0,
            grid=(M // tm,),
            in_specs=[
                pl.BlockSpec((tm, Ws, C4), lambda i: (i, 0, 0)),
                pl.BlockSpec((tm, Ws, C4), lambda i: (i, 0, 0)),
                pl.BlockSpec((2, 2, C4, Cout), lambda i: (0, 0, 0, 0)),
                pl.BlockSpec((1, Cout), lambda i: (0, 0)),
            ],
            out_specs=pl.BlockSpec((tm, Wo, Cout), lambda i: (i, 0, 0)),
        ),
        compiler_params=pltpu.CompilerParams(
            dimension_semantics=("parallel",)),
    )(y0, y1, w2, bias.reshape(1, Cout).astype(jnp.float32))


# ----------------------------------------------------------------------------
# Pallas kernel 2: single-block matmul + bias (+ optional LeakyReLU)
#   Used for the tiny late layers (im2col matrices of a few KB) and the final
#   4x4 "valid" conv, where tiling would only add overhead.
# ----------------------------------------------------------------------------
def _matmul_bias_act_kernel(a_ref, w_ref, b_ref, o_ref, *, negative_slope):
    acc = jnp.dot(a_ref[...], w_ref[...], preferred_element_type=jnp.float32)
    acc = acc + b_ref[...]
    if negative_slope is not None:
        acc = jnp.where(acc >= 0, acc, negative_slope * acc)
    o_ref[...] = acc.astype(o_ref.dtype)


def pallas_matmul_bias_act(a, w, bias, negative_slope=None,
                           out_dtype=jnp.float32):
    M, K = a.shape
    K2, Nc = w.shape
    assert K == K2
    kernel = functools.partial(_matmul_bias_act_kernel,
                               negative_slope=negative_slope)
    return pl.pallas_call(
        kernel,
        out_shape=jax.ShapeDtypeStruct((M, Nc), out_dtype),
        grid_spec=pltpu.PrefetchScalarGridSpec(
            num_scalar_prefetch=0,
            grid=(1,),
            in_specs=[
                pl.BlockSpec((M, K), lambda i: (0, 0)),
                pl.BlockSpec((K, Nc), lambda i: (0, 0)),
                pl.BlockSpec((1, Nc), lambda i: (0, 0)),
            ],
            out_specs=pl.BlockSpec((M, Nc), lambda i: (0, 0)),
        ),
    )(a, w, bias.reshape(1, Nc).astype(jnp.float32))


# ----------------------------------------------------------------------------
# JAX glue: layouts, weight prep, small im2col fallback (NHWC everywhere)
# ----------------------------------------------------------------------------
def _prep_s2d_weight(w):
    """(Cout, Cin, 4, 4) -> (2, 2, 4*Cin, Cout), channel order (hi, wi, c)."""
    cout, cin = w.shape[:2]
    w6 = w.reshape(cout, cin, 2, 2, 2, 2)             # (cout, c, qi, hi, qj, wi)
    return w6.transpose(2, 4, 3, 5, 1, 0).reshape(2, 2, 4 * cin, cout)


def _prep_mat_weight(w):
    """(Cout, Cin, kh, kw) -> (kh*kw*Cin, Cout), contraction order (di, dj, c)."""
    cout, cin, kh, kw = w.shape
    return w.transpose(2, 3, 1, 0).reshape(kh * kw * cin, cout)


def _im2col_nhwc(x, k, stride, pad):
    """Patch matrix (N*Ho*Wo, k*k*C) with (di, dj, c) ordering (small layers only)."""
    if pad:
        x = jnp.pad(x, ((0, 0), (pad, pad), (pad, pad), (0, 0)))
    n, h, w, c = x.shape
    ho = (h - k) // stride + 1
    wo = (w - k) // stride + 1
    cols = []
    for di in range(k):
        for dj in range(k):
            cols.append(x[:, di:di + stride * ho:stride,
                          dj:dj + stride * wo:stride, :])
    patches = jnp.stack(cols, axis=3)                  # (N, Ho, Wo, k*k, C)
    return patches.reshape(n * ho * wo, k * k * c), (n, ho, wo)


def conv4x4_stride2(x, w2, wmat, bias, negative_slope=0.2):
    """4x4 conv, stride 2, pad 1, NHWC bf16 in / NHWC bf16 out."""
    N, H, W, C = x.shape
    Ho, Wo = H // 2, W // 2
    if (H % 2) or (W % 2) or (Wo % 8 != 0):
        # Tiny / irregular layer: plain im2col + single-block matmul.
        a, (n, ho, wo) = _im2col_nhwc(x, 4, 2, 1)
        out = pallas_matmul_bias_act(a, wmat, bias, negative_slope,
                                     out_dtype=jnp.bfloat16)
        return out.reshape(n, ho, wo, -1)

    xp = jnp.pad(x, ((0, 0), (1, 1), (1, 1), (0, 0)))
    Hs, Ws = Ho + 1, Wo + 1
    y = xp.reshape(N, Hs, 2, Ws, 2, C)
    y = y.transpose(0, 1, 3, 2, 4, 5).reshape(N, Hs, Ws, 4 * C)   # space-to-depth
    y0 = y[:, :Ho].reshape(N * Ho, Ws, 4 * C)                     # row tap qi=0
    y1 = y[:, 1:].reshape(N * Ho, Ws, 4 * C)                      # row tap qi=1
    out = pallas_conv_s2d(y0, y1, w2, bias, negative_slope)
    return out.reshape(N, Ho, Wo, -1)


def conv4x4_valid(x, wmat, bias):
    """4x4 conv, stride 1, pad 0, no activation (final layer).  NHWC in/out."""
    a, (n, ho, wo) = _im2col_nhwc(x, 4, 1, 0)
    out = pallas_matmul_bias_act(a, wmat, bias, None, out_dtype=jnp.float32)
    return out.reshape(n, ho, wo, -1)


def spectral_normalize(w, key, n_iter=1, eps=1e-12):
    """One power iteration, as torch.nn.utils.spectral_norm does per forward."""
    w_mat = w.reshape(w.shape[0], -1)
    u = jax.random.normal(key, (w.shape[0],), jnp.float32)
    u = u / (jnp.linalg.norm(u) + eps)
    v = None
    for _ in range(n_iter):
        v = w_mat.T @ u
        v = v / (jnp.linalg.norm(v) + eps)
        u = w_mat @ v
        u = u / (jnp.linalg.norm(u) + eps)
    sigma = u @ (w_mat @ v)
    return w / sigma


# ----------------------------------------------------------------------------
# The module: deterministic synthetic parameters, same layer topology as torch
# ----------------------------------------------------------------------------
class DiscriminatorSpectralNormV3:
    def __init__(self, key, input_channels=3, image_size=512,
                 first_hidden_dim_=64, last_hidden_dim_=512, another_times=0):
        up_times = math.log(image_size, 2) - 3 - another_times
        self.layers = []

        def conv_params(k, c_in, c_out, bias_flag, spectral):
            kw_, kb_, ku_ = jax.random.split(k, 3)
            w = 0.05 * jax.random.normal(kw_, (c_out, c_in, 4, 4), jnp.float32)
            if spectral:
                w = spectral_normalize(w, ku_)
            b = (0.01 * jax.random.normal(kb_, (c_out,), jnp.float32)
                 if bias_flag else jnp.zeros((c_out,), jnp.float32))
            return w, b

        keys = jax.random.split(key, 32)
        self._ki = 0

        def add_s2_layer(c_in, c_out):
            w, b = conv_params(keys[self._ki], c_in, c_out,
                               bias_flag=False, spectral=True)
            self._ki += 1
            self.layers.append(dict(
                kind="s2",
                w2=_prep_s2d_weight(w).astype(jnp.bfloat16),
                wmat=_prep_mat_weight(w).astype(jnp.bfloat16),
                b=b))

        # layer1
        add_s2_layer(input_channels, first_hidden_dim_)
        hidden_dim = first_hidden_dim_
        while up_times > 0:
            if hidden_dim < last_hidden_dim_:
                add_s2_layer(hidden_dim, hidden_dim * 2)
                hidden_dim = hidden_dim * 2
            else:
                add_s2_layer(hidden_dim, hidden_dim)
            up_times = up_times - 1

        # last layer: plain conv 4x4, stride 1, pad 0, bias=True, no LeakyReLU
        w, b = conv_params(keys[self._ki], hidden_dim, last_hidden_dim_,
                           bias_flag=True, spectral=False)
        self._ki += 1
        self.layers.append(dict(
            kind="valid",
            wmat=_prep_mat_weight(w).astype(jnp.bfloat16),
            b=b))

    def forward(self, x):
        # x: NCHW f32 (torch convention).  Internal path: NHWC bf16.
        outputs = [x]
        h = jnp.transpose(x, (0, 2, 3, 1)).astype(jnp.bfloat16)
        # TODO(synk): hard-coded 8-layer loop mirrors the original torch
        # forward(); it assumes image_size=512 and another_times=0.
        for i in range(int(math.log(512, 2)) - 1):
            spec = self.layers[i]
            if spec["kind"] == "s2":
                h = conv4x4_stride2(h, spec["w2"], spec["wmat"], spec["b"],
                                    negative_slope=0.2)
                outputs.append(
                    jnp.transpose(h, (0, 3, 1, 2)).astype(jnp.float32))
            else:
                y = conv4x4_valid(h, spec["wmat"], spec["b"])
                outputs.append(jnp.transpose(y, (0, 3, 1, 2)))
                h = y.astype(jnp.bfloat16)
        return outputs[::-1]


if __name__ == "__main__":
    # ---- quick correctness check of the fused stride-2 conv kernel ----------
    kc1, kc2 = jax.random.split(jax.random.PRNGKey(1))
    xt = jax.random.normal(kc1, (2, 32, 32, 3), jnp.float32)
    wt = 0.05 * jax.random.normal(kc2, (8, 3, 4, 4), jnp.float32)
    got = conv4x4_stride2(
        xt.astype(jnp.bfloat16),
        _prep_s2d_weight(wt).astype(jnp.bfloat16),
        _prep_mat_weight(wt).astype(jnp.bfloat16),
        jnp.zeros((8,), jnp.float32), negative_slope=0.2)
    ref = jax.lax.conv_general_dilated(
        xt.astype(jnp.bfloat16).astype(jnp.float32),
        wt.astype(jnp.bfloat16).astype(jnp.float32),
        (2, 2), ((1, 1), (1, 1)),
        dimension_numbers=("NHWC", "OIHW", "NHWC"),
        precision=jax.lax.Precision.HIGHEST)
    ref = jnp.where(ref >= 0, ref, 0.2 * ref)
    err = float(jnp.max(jnp.abs(got.astype(jnp.float32) - ref)))
    assert err < 2e-2, f"fused conv mismatch: max abs err = {err}"

    # ---- full module run -----------------------------------------------------
    key = jax.random.PRNGKey(0)
    k_params, k_x = jax.random.split(key)

    # 512x512 spatial is required because forward() unconditionally runs
    # 8 layers (7 stride-2 convs + a final 4x4 valid conv); channel widths are
    # kept small to make the synthetic run light.
    model = DiscriminatorSpectralNormV3(
        k_params, input_channels=3, image_size=512,
        first_hidden_dim_=8, last_hidden_dim_=64, another_times=0)

    x = jax.random.normal(k_x, (1, 3, 512, 512), jnp.float32)

    fwd = jax.jit(model.forward)
    outputs = jax.block_until_ready(fwd(x))

    # outputs = [layer8, layer7, ..., layer1, x]  (reversed, as in the module)
    assert len(outputs) == 9
    assert outputs[0].shape == (1, 64, 1, 1)
    assert outputs[-1].shape == (1, 3, 512, 512)
    print("KERNEL_OK")
</pallas_src>

<mosaic_0001>
module attributes {stable_mosaic.version = 11 : i64} {
  func.func @_conv_s2d_kernel(%arg0: i32, %arg1: memref<32x17x12xbf16, #tpu.memory_space<vmem>>, %arg2: memref<32x17x12xbf16, #tpu.memory_space<vmem>>, %arg3: memref<2x2x12x8xbf16, #tpu.memory_space<vmem>>, %arg4: memref<1x8xf32, #tpu.memory_space<vmem>>, %arg5: memref<32x16x8xbf16, #tpu.memory_space<vmem>>) attributes {dimension_semantics = [#tpu.dimension_semantics<parallel>], iteration_bounds = array<i64: 1>, scalar_prefetch = 0 : i64, scratch_operands = 0 : i64, tpu.core_type = #tpu.core_type<tc>, window_params = [{transform_indices = @transform_0, window_bounds = array<i64: 32, 17, 12>}, {transform_indices = @transform_1, window_bounds = array<i64: 32, 17, 12>}, {pipeline_mode = #tpu.pipeline_mode<synchronous>, transform_indices = @transform_2, window_bounds = array<i64: 2, 2, 12, 8>}, {pipeline_mode = #tpu.pipeline_mode<synchronous>, transform_indices = @transform_3, window_bounds = array<i64: 1, 8>}, {transform_indices = @transform_4, window_bounds = array<i64: 32, 16, 8>}]} {
    %c0 = arith.constant 0 : index
    %c0_0 = arith.constant 0 : index
    %c0_1 = arith.constant 0 : index
    %0 = vector.load %arg1[%c0, %c0_0, %c0_1] : memref<32x17x12xbf16, #tpu.memory_space<vmem>>, vector<32x16x12xbf16>
    %1 = vector.shape_cast %0 : vector<32x16x12xbf16> to vector<512x12xbf16>
    %c0_2 = arith.constant 0 : index
    %c0_3 = arith.constant 0 : index
    %c0_4 = arith.constant 0 : index
    %c0_5 = arith.constant 0 : index
    %2 = vector.load %arg3[%c0_2, %c0_3, %c0_4, %c0_5] : memref<2x2x12x8xbf16, #tpu.memory_space<vmem>>, vector<1x1x12x8xbf16>
    %3 = vector.shape_cast %2 : vector<1x1x12x8xbf16> to vector<12x8xbf16>
    %cst = arith.constant dense<0.000000e+00> : vector<512x8xf32>
    %4 = tpu.matmul %1, %3, %cst {dimension_numbers = #tpu.dot_dimension_numbers<[1], [0], [0], [1], [0, 0, 1, 1], [], []>} : vector<512x12xbf16>, vector<12x8xbf16>, vector<512x8xf32> -> vector<512x8xf32>
    %c0_6 = arith.constant 0 : index
    %c1 = arith.constant 1 : index
    %c0_7 = arith.constant 0 : index
    %5 = vector.load %arg1[%c0_6, %c1, %c0_7] : memref<32x17x12xbf16, #tpu.memory_space<vmem>>, vector<32x16x12xbf16>
    %6 = vector.shape_cast %5 : vector<32x16x12xbf16> to vector<512x12xbf16>
    %c0_8 = arith.constant 0 : index
    %c1_9 = arith.constant 1 : index
    %c0_10 = arith.constant 0 : index
    %c0_11 = arith.constant 0 : index
    %7 = vector.load %arg3[%c0_8, %c1_9, %c0_10, %c0_11] : memref<2x2x12x8xbf16, #tpu.memory_space<vmem>>, vector<1x1x12x8xbf16>
    %8 = vector.shape_cast %7 : vector<1x1x12x8xbf16> to vector<12x8xbf16>
    %cst_12 = arith.constant dense<0.000000e+00> : vector<512x8xf32>
    %9 = tpu.matmul %6, %8, %cst_12 {dimension_numbers = #tpu.dot_dimension_numbers<[1], [0], [0], [1], [0, 0, 1, 1], [], []>} : vector<512x12xbf16>, vector<12x8xbf16>, vector<512x8xf32> -> vector<512x8xf32>
    %10 = arith.addf %4, %9 : vector<512x8xf32>
    %c0_13 = arith.constant 0 : index
    %c0_14 = arith.constant 0 : index
    %c0_15 = arith.constant 0 : index
    %11 = vector.load %arg2[%c0_13, %c0_14, %c0_15] : memref<32x17x12xbf16, #tpu.memory_space<vmem>>, vector<32x16x12xbf16>
    %12 = vector.shape_cast %11 : vector<32x16x12xbf16> to vector<512x12xbf16>
    %c1_16 = arith.constant 1 : index
    %c0_17 = arith.constant 0 : index
    %c0_18 = arith.constant 0 : index
    %c0_19 = arith.constant 0 : index
    %13 = vector.load %arg3[%c1_16, %c0_17, %c0_18, %c0_19] : memref<2x2x12x8xbf16, #tpu.memory_space<vmem>>, vector<1x1x12x8xbf16>
    %14 = vector.shape_cast %13 : vector<1x1x12x8xbf16> to vector<12x8xbf16>
    %cst_20 = arith.constant dense<0.000000e+00> : vector<512x8xf32>
    %15 = tpu.matmul %12, %14, %cst_20 {dimension_numbers = #tpu.dot_dimension_numbers<[1], [0], [0], [1], [0, 0, 1, 1], [], []>} : vector<512x12xbf16>, vector<12x8xbf16>, vector<512x8xf32> -> vector<512x8xf32>
    %16 = arith.addf %10, %15 : vector<512x8xf32>
    %c0_21 = arith.constant 0 : index
    %c1_22 = arith.constant 1 : index
    %c0_23 = arith.constant 0 : index
    %17 = vector.load %arg2[%c0_21, %c1_22, %c0_23] : memref<32x17x12xbf16, #tpu.memory_space<vmem>>, vector<32x16x12xbf16>
    %18 = vector.shape_cast %17 : vector<32x16x12xbf16> to vector<512x12xbf16>
    %c1_24 = arith.constant 1 : index
    %c1_25 = arith.constant 1 : index
    %c0_26 = arith.constant 0 : index
    %c0_27 = arith.constant 0 : index
    %19 = vector.load %arg3[%c1_24, %c1_25, %c0_26, %c0_27] : memref<2x2x12x8xbf16, #tpu.memory_space<vmem>>, vector<1x1x12x8xbf16>
    %20 = vector.shape_cast %19 : vector<1x1x12x8xbf16> to vector<12x8xbf16>
    %cst_28 = arith.constant dense<0.000000e+00> : vector<512x8xf32>
    %21 = tpu.matmul %18, %20, %cst_28 {dimension_numbers = #tpu.dot_dimension_numbers<[1], [0], [0], [1], [0, 0, 1, 1], [], []>} : vector<512x12xbf16>, vector<12x8xbf16>, vector<512x8xf32> -> vector<512x8xf32>
    %22 = arith.addf %16, %21 : vector<512x8xf32>
    %c0_29 = arith.constant 0 : index
    %c0_30 = arith.constant 0 : index
    %23 = vector.load %arg4[%c0_29, %c0_30] : memref<1x8xf32, #tpu.memory_space<vmem>>, vector<1x8xf32>
    %24 = vector.broadcast %23 : vector<1x8xf32> to vector<512x8xf32>
    %25 = arith.addf %22, %24 : vector<512x8xf32>
    %cst_31 = arith.constant 0.000000e+00 : f32
    %26 = vector.broadcast %cst_31 : f32 to vector<512x8xf32>
    %27 = arith.cmpf oge, %25, %26 : vector<512x8xf32>
    %cst_32 = arith.constant 2.000000e-01 : f32
    %28 = vector.broadcast %cst_32 : f32 to vector<512x8xf32>
    %29 = arith.mulf %28, %25 : vector<512x8xf32>
    %30 = arith.select %27, %25, %29 : vector<512x8xi1>, vector<512x8xf32>
    %31 = vector.shape_cast %30 : vector<512x8xf32> to vector<32x16x8xf32>
    %32 = arith.truncf %31 : vector<32x16x8xf32> to vector<32x16x8xbf16>
    %c0_33 = arith.constant 0 : index
    %c0_34 = arith.constant 0 : index
    %c0_35 = arith.constant 0 : index
    %33 = vector.load %arg5[%c0_33, %c0_34, %c0_35] : memref<32x16x8xbf16, #tpu.memory_space<vmem>>, vector<32x16x8xbf16>
    tpu.vector_store %arg5[%c0_33, %c0_34, %c0_35], %32 {strides = array<i32>} : memref<32x16x8xbf16, #tpu.memory_space<vmem>>, vector<32x16x8xbf16>,
    return
  }
  func.func @transform_0(%arg0: i32) -> (i32, i32, i32) {
    %c0_i32 = arith.constant 0 : i32
    %c0_i32_0 = arith.constant 0 : i32
    %c0_i32_1 = arith.constant 0 : i32
    return %arg0, %c0_i32, %c0_i32_0 : i32, i32, i32
  }
  func.func @transform_1(%arg0: i32) -> (i32, i32, i32) {
    %c0_i32 = arith.constant 0 : i32
    %c0_i32_0 = arith.constant 0 : i32
    %c0_i32_1 = arith.constant 0 : i32
    return %arg0, %c0_i32, %c0_i32_0 : i32, i32, i32
  }
  func.func @transform_2(%arg0: i32) -> (i32, i32, i32, i32) {
    %c0_i32 = arith.constant 0 : i32
    %c0_i32_0 = arith.constant 0 : i32
    %c0_i32_1 = arith.constant 0 : i32
    %c0_i32_2 = arith.constant 0 : i32
    %c0_i32_3 = arith.constant 0 : i32
    return %c0_i32, %c0_i32_0, %c0_i32_1, %c0_i32_2 : i32, i32, i32, i32
  }
  func.func @transform_3(%arg0: i32) -> (i32, i32) {
    %c0_i32 = arith.constant 0 : i32
    %c0_i32_0 = arith.constant 0 : i32
    %c0_i32_1 = arith.constant 0 : i32
    return %c0_i32, %c0_i32_0 : i32, i32
  }
  func.func @transform_4(%arg0: i32) -> (i32, i32, i32) {
    %c0_i32 = arith.constant 0 : i32
    %c0_i32_0 = arith.constant 0 : i32
    %c0_i32_1 = arith.constant 0 : i32
    return %arg0, %c0_i32, %c0_i32_0 : i32, i32, i32
  }
}

</mosaic_0001>

<bundles_post_ra>
// kernel: tpu_custom_call.1
= control target key start
LH: loop header
LB: loop body
LE: loop exit
PB: predicated region body
PF: predicated region fallthrough
CT: control target
= control target key end

     0   :  { %vm1088_vm0 = vcmask 1045504   ;;  %vm991_vm1 = vcmask 97280   ;;  %vm116_vm2 = vsmask.f32 3328  ;;  %vm117_vm3 = vsmask.f32 7440  ;;  %s7365_s2 = inlined_call_operand.vmem [shape: bf16[2,2,12,8], index: 2, kind: input, shape index: {}]   ;;  %s7366_s1 = inlined_call_operand.vmem [shape: bf16[32,17,12], index: 1, kind: input, shape index: {}]   ;;  %s7367_s0 = inlined_call_operand.vmem [shape: bf16[32,17,12], index: 0, kind: input, shape index: {}]   ;;  %s7368_s3 = inlined_call_operand.vmem [shape: f32[1,8], index: 3, kind: input, shape index: {}]   ;;  %s7369_s4 = inlined_call_operand.vmem [shape: bf16[32,16,8], index: 4, kind: output, shape index: {}]  }
   0x1   :  { %v5613_v0 = vld [vmem:[%s7365_s2 + $0x10] sm:$0x3f]   ;;  %v5614_v1 = vld [vmem:[%s7366_s1] sm:$0xff]   ;;  %v5616_v4 = vld [vmem:[%s7365_s2 + $0x8] sm:$0x3f]   ;;  %vm4557_vm7 = vcmask 60416  }
   0x2   :  { %5611 = vmatprep.subr.msk.bf16.mxu0 %vm1088_vm0, %v5613_v0  ;;  %v2263_v2 = vsel %vm1088_vm0, %v5613_v0, 0  ;;  %v5615_v3 = vld [vmem:[%s7366_s1 + $0xc] sm:$0xff]   ;;  %5287 = vmatprep.mubr.msk.bf16.mxu0 %vm991_vm1, %v5614_v1  ;;  %v18_v5 = vld [vmem:[%s7367_s0] sm:$0xf]  ;;  %v19_v6 = vld [vmem:[%s7367_s0 + $0x4] sm:$0xf] }
   0x3   :  { %5286 = vmatpush3.bf16.msra.mxu0 %v2263_v2  ;;  %v84_v7 = vld [vmem:[%s7367_s0 + $0x8] sm:$0x1]  ;;  %5609 = vmatprep.subr.msk.bf16.mxu1 %vm1088_vm0, %v5616_v4  ;;  %v1090_v8 = vsel %vm1088_vm0, %v5616_v4, 0  ;;  %v120_v9 = vshrl.u32 %v18_v5, 16  ;;  %v123_v10 = vshll.u32 %v18_v5, 16  ;;  %v129_v11 = vshll.u32 %v19_v6, 16  ;;  %vm5820_vm4 = vmor %vm116_vm2, %vm117_vm3 }
   0x4   :  { %5154 = vmatpush3.bf16.msra.mxu1 %v1090_v8  ;;  %v133_v12 = vshrl.u32 %v19_v6, 16  ;;  %v139_v13 = vshll.u32 %v84_v7, 16  ;;  %v5617_v14 = vld [vmem:[%s7365_s2] sm:$0x3f]   ;;  %v5619_v18 = vld [vmem:[%s7366_s1 + $0x18] sm:$0xff]   ;;  %v5621_v44 = vld [vmem:[%s7366_s1 + $0x30] sm:$0xff]  }
   0x5   :  { %v122_v15 = vrot.slane %v120_v9, 4  ;;  %v125_v16 = vrot.slane %v123_v10, 5  ;;  %v131_v17 = vrot.slane %v129_v11, 5  ;;  %5610 = vmatprep.subr.msk.bf16.mxu1 %vm1088_vm0, %v5617_v14  ;;  %v5618_v21 = vld [vmem:[%s7365_s2 + $0x18] sm:$0x3f]   ;;  %v5620_v31 = vld [vmem:[%s7366_s1 + $0x24] sm:$0xff]  }
   0x6   :  { %5288 = vmatmul.mubr.msk.bf16.vlgmr.msra.gmra.mrb[0].mxu0 %vm991_vm1, %v5615_v3  ;;  %v135_v19 = vrot.slane %v133_v12, 4  ;;  %v141_v20 = vrot.slane %v139_v13, 5  ;;  %v20_v23 = vld [vmem:[%s7367_s0 + $0xc] sm:$0xf]  ;;  %v21_v24 = vld [vmem:[%s7367_s0 + $0x10] sm:$0xf]  ;;  %5612 = vmatprep.subr.msk.bf16.mxu0 %vm1088_vm0, %v5618_v21 }
   0x7   :  { %v126_v22 = vor.u32 %v125_v16, %v122_v15  ;;  %v85_v25 = vld [vmem:[%s7367_s0 + $0x14] sm:$0x1]  ;;  %5291 = vmatprep.mubr.msk.bf16.mxu0 %vm991_vm1, %v5619_v18  ;;  %v144_v28 = vshrl.u32 %v20_v23, 16  ;;  %v147_v29 = vshll.u32 %v20_v23, 16  ;;  %v153_v30 = vshll.u32 %v21_v24, 16  ;;  %v5622_v5 = vld [vmem:[%s7366_s1 + $0x3c] sm:$0xff]  }
   0x8   :  { %v136_v27 = vor.u32 %v135_v19, %v131_v17  ;;  %v157_v33 = vshrl.u32 %v21_v24, 16  ;;  %v163_v34 = vshll.u32 %v85_v25, 16  ;;  %v1643_v35 = vsel %vm1088_vm0, %v5617_v14, 0  ;;  %v22_v47 = vld [vmem:[%s7367_s0 + $0x18] sm:$0xf] }
   0x9   :  { %v127_v32 = vrot.slane %v126_v22, 4  ;;  %v146_v37 = vrot.slane %v144_v28, 4  ;;  %v149_v38 = vrot.slane %v147_v29, 5  ;;  %v155_v39 = vrot.slane %v153_v30, 5  ;;  %v23_v48 = vld [vmem:[%s7367_s0 + $0x1c] sm:$0xf] }
   0xa   :  { %v137_v36 = vrot.slane %v136_v27, 4  ;;  %v159_v41 = vrot.slane %v157_v33, 4  ;;  %v165_v42 = vrot.slane %v163_v34, 5  ;;  %v3683_v43 = vsel %vm1088_vm0, %v5618_v21, 0  ;;  %v86_v49 = vld [vmem:[%s7367_s0 + $0x20] sm:$0x1] }
   0xb   :  { %v132_v40 = vsel %vm5820_vm4, %v127_v32, %v131_v17  ;;  %v150_v46 = vor.u32 %v149_v38, %v146_v37  ;;  %5352 = vmatpush3.bf16.msra.mxu0 %v3683_v43  ;;  %v168_v52 = vshrl.u32 %v22_v47, 16  ;;  %v171_v53 = vshll.u32 %v22_v47, 16  ;;  %v24_v54 = vld [vmem:[%s7367_s0 + $0x24] sm:$0xf]  ;;  %v25_v55 = vld [vmem:[%s7367_s0 + $0x28] sm:$0xf] }
   0xc   :  { %v142_v45 = vsel %vm5820_vm4, %v137_v36, %v141_v20  ;;  %v160_v51 = vor.u32 %v159_v41, %v155_v39  ;;  %v177_v57 = vshll.u32 %v23_v48, 16  ;;  %v181_v58 = vshrl.u32 %v23_v48, 16  ;;  %v87_v60 = vld [vmem:[%s7367_s0 + $0x2c] sm:$0x1]  ;;  %v26_v14 = vld [vmem:[%s7367_s0 + $0x30] sm:$0xf] }
   0xd   :  { %v4628_v50 = vcombine.low %v132_v40, %v142_v45  ;;  %v151_v56 = vrot.slane %v150_v46, 4  ;;  %v187_v59 = vshll.u32 %v86_v49, 16  ;;  %v170_v62 = vrot.slane %v168_v52, 4  ;;  %v27_v18 = vld [vmem:[%s7367_s0 + $0x34] sm:$0xf]  ;;  %v5623_v41 = vld [vmem:[%s7366_s1 + $0x48] sm:$0xff]  }
   0xe   :  { %5292 = vmatmul.mubr.msk.bf16.gmra.mrb[4].mxu0 %vm991_vm1, %v5620_v31  ;;  %v161_v61 = vrot.slane %v160_v51, 4  ;;  %v173_v63 = vrot.slane %v171_v53, 5  ;;  %v192_v0 = vshrl.u32 %v24_v54, 16  ;;  %v179_v2 = vrot.slane %v177_v57, 5  ;;  %v88_v23 = vld [vmem:[%s7367_s0 + $0x38] sm:$0x1] }
   0xf   :  { %5295 = vmatprep.mubr.msk.bf16.mxu0 %vm991_vm1, %v5621_v44  ;;  %5155 = vmatprep.mubr.msk.bf16.mxu1 %vm991_vm1, %v4628_v50  ;;  %v156_v1 = vsel %vm5820_vm4, %v151_v56, %v155_v39  ;;  %v183_v3 = vrot.slane %v181_v58, 4  ;;  %v189_v4 = vrot.slane %v187_v59, 5  ;;  %v195_v9 = vshll.u32 %v24_v54, 16  ;;  %v28_v30 = vld [vmem:[%s7367_s0 + $0x3c] sm:$0xf]  ;;  %v5624_v50 = vld [vmem:[%s7366_s1 + $0x54] sm:$0xff]  }
  0x10   :  { %v166_v6 = vsel %vm5820_vm4, %v161_v61, %v165_v42  ;;  %v174_v7 = vor.u32 %v173_v63, %v170_v62  ;;  %v194_v8 = vrot.slane %v192_v0, 4  ;;  %v201_v12 = vshll.u32 %v25_v55, 16  ;;  %v29_v31 = vld [vmem:[%s7367_s0 + $0x40] sm:$0xf]  ;;  %v89_v40 = vld [vmem:[%s7367_s0 + $0x44] sm:$0x1] }
  0x11   :  { %v4629_v10 = vcombine.low %v156_v1, %v166_v6  ;;  %v184_v11 = vor.u32 %v183_v3, %v179_v2  ;;  %v205_v13 = vshrl.u32 %v25_v55, 16  ;;  %v197_v16 = vrot.slane %v195_v9, 5  ;;  %v30_v51 = vld [vmem:[%s7367_s0 + $0x48] sm:$0xf]  ;;  %v5625_v56 = vld [vmem:[%s7366_s1 + $0x60] sm:$0xff]  }
  0x12   :  { %v175_v15 = vrot.slane %v174_v7, 4  ;;  %v211_v17 = vshll.u32 %v87_v60, 16  ;;  %v216_v19 = vshrl.u32 %v26_v14, 16  ;;  %v203_v21 = vrot.slane %v201_v12, 5  ;;  %v31_v61 = vld [vmem:[%s7367_s0 + $0x4c] sm:$0xf] }
  0x13   :  { %5156 = vmatmul.mubr.msk.bf16.vlgmr.msra.gmra.mrb[0].mxu1 %vm991_vm1, %v4629_v10  ;;  %v185_v20 = vrot.slane %v184_v11, 4  ;;  %v207_v22 = vrot.slane %v205_v13, 4  ;;  %v219_v24 = vshll.u32 %v26_v14, 16  ;;  %v198_v27 = vor.u32 %v197_v16, %v194_v8  ;;  %v90_v62 = vld [vmem:[%s7367_s0 + $0x50] sm:$0x1] }
  0x14   :  { %5220 = vmatpush3.bf16.msra.mxu1 %v1643_v35  ;;  %v180_v25 = vsel %vm5820_vm4, %v175_v15, %v179_v2  ;;  %v213_v28 = vrot.slane %v211_v17, 5  ;;  %v218_v29 = vrot.slane %v216_v19, 4  ;;  %v225_v35 = vshll.u32 %v27_v18, 16  ;;  %v32_v3 = vld [vmem:[%s7367_s0 + $0x54] sm:$0xf] }
  0x15   :  { %v190_v32 = vsel %vm5820_vm4, %v185_v20, %v189_v4  ;;  %v208_v33 = vor.u32 %v207_v22, %v203_v21  ;;  %v221_v34 = vrot.slane %v219_v24, 5  ;;  %v199_v37 = vrot.slane %v198_v27, 4  ;;  %v33_v8 = vld [vmem:[%s7367_s0 + $0x58] sm:$0xf]  ;;  %v91_v24 = vld [vmem:[%s7367_s0 + $0x5c] sm:$0x1] }
  0x16   :  { %5296 = vmatmul.mubr.msk.bf16.gmra.mrb[8].mxu0 %vm991_vm1, %v5622_v5  ;;  %v4630_v36 = vcombine.low %v180_v25, %v190_v32  ;;  %v229_v38 = vshrl.u32 %v27_v18, 16  ;;  %v235_v39 = vshll.u32 %v88_v23, 16  ;;  %v227_v44 = vrot.slane %v225_v35, 5  ;;  %v5626_v27 = vld [vmem:[%s7366_s1 + $0x6c] sm:$0xff]   ;;  %v34_v32 = vld [vmem:[%s7367_s0 + $0x60] sm:$0xf] }
  0x17   :  { %v209_v42 = vrot.slane %v208_v33, 4  ;;  %v222_v43 = vor.u32 %v221_v34, %v218_v29  ;;  %v240_v45 = vshrl.u32 %v28_v30, 16  ;;  %v204_v46 = vsel %vm5820_vm4, %v199_v37, %v203_v21  ;;  %5299 = vmatprep.mubr.msk.bf16.mxu0 %vm991_vm1, %v5623_v41  ;;  %v5627_v33 = vld [vmem:[%s7366_s1 + $0x78] sm:$0xff]  }
  0x18   :  { %5159 = vmatprep.mubr.msk.bf16.mxu1 %vm991_vm1, %v4630_v36  ;;  %v231_v47 = vrot.slane %v229_v38, 4  ;;  %v237_v48 = vrot.slane %v235_v39, 5  ;;  %v243_v49 = vshll.u32 %v28_v30, 16  ;;  %v249_v55 = vshll.u32 %v29_v31, 16  ;;  %v35_v38 = vld [vmem:[%s7367_s0 + $0x64] sm:$0xf] }
  0x19   :  { %v214_v52 = vsel %vm5820_vm4, %v209_v42, %v213_v28  ;;  %v223_v53 = vrot.slane %v222_v43, 4  ;;  %v242_v54 = vrot.slane %v240_v45, 4  ;;  %v253_v60 = vshrl.u32 %v29_v31, 16  ;;  %v92_v43 = vld [vmem:[%s7367_s0 + $0x68] sm:$0x1] }
  0x1a   :  { %v4631_v57 = vcombine.low %v204_v46, %v214_v52  ;;  %v232_v58 = vor.u32 %v231_v47, %v227_v44  ;;  %v245_v59 = vrot.slane %v243_v49, 5  ;;  %v251_v0 = vrot.slane %v249_v55, 5  ;;  %v37_v49 = vld [vmem:[%s7367_s0 + $0x70] sm:$0xf] }
  0x1b   :  { %v228_v63 = vsel %vm5820_vm4, %v223_v53, %v227_v44  ;;  %v259_v1 = vshll.u32 %v89_v40, 16  ;;  %v264_v2 = vshrl.u32 %v30_v51, 16  ;;  %v255_v6 = vrot.slane %v253_v60, 4  ;;  %v36_v44 = vld [vmem:[%s7367_s0 + $0x6c] sm:$0xf] }
  0x1c   :  { %5160 = vmatmul.mubr.msk.bf16.gmra.mrb[4].mxu1 %vm991_vm1, %v4631_v57  ;;  %v233_v4 = vrot.slane %v232_v58, 4  ;;  %v246_v5 = vor.u32 %v245_v59, %v242_v54  ;;  %v267_v7 = vshll.u32 %v30_v51, 16  ;;  %v273_v11 = vshll.u32 %v31_v61, 16 }
  0x1d   :  { %v261_v9 = vrot.slane %v259_v1, 5  ;;  %v266_v10 = vrot.slane %v264_v2, 4  ;;  %v277_v12 = vshrl.u32 %v31_v61, 16  ;;  %v256_v15 = vor.u32 %v255_v6, %v251_v0  ;;  %v5628_v2 = vld [vmem:[%s7366_s1 + $0x84] sm:$0xff]  }
  0x1e   :  { %5300 = vmatmul.mubr.msk.bf16.gmra.mrb[12].mxu0 %vm991_vm1, %v5624_v50  ;;  %v238_v13 = vsel %vm5820_vm4, %v233_v4, %v237_v48  ;;  %v247_v14 = vrot.slane %v246_v5, 4  ;;  %v269_v16 = vrot.slane %v267_v7, 5  ;;  %v275_v18 = vrot.slane %v273_v11, 5  ;;  %v93_v7 = vld [vmem:[%s7367_s0 + $0x74] sm:$0x1] }
  0x1f   :  { %5303 = vmatprep.mubr.msk.bf16.mxu0 %vm991_vm1, %v5625_v56  ;;  %v4632_v17 = vcombine.low %v228_v63, %v238_v13  ;;  %v279_v19 = vrot.slane %v277_v12, 4  ;;  %v283_v20 = vshll.u32 %v90_v62, 16  ;;  %v257_v22 = vrot.slane %v256_v15, 4 }
  0x20   :  { %v252_v21 = vsel %vm5820_vm4, %v247_v14, %v251_v0  ;;  %v270_v23 = vor.u32 %v269_v16, %v266_v10  ;;  %v288_v25 = vshrl.u32 %v32_v3, 16  ;;  %v291_v30 = vshll.u32 %v32_v3, 16  ;;  %v5629_v3 = vld [vmem:[%s7366_s1 + $0x90] sm:$0xff]   ;;  %v39_v14 = vld [vmem:[%s7367_s0 + $0x7c] sm:$0xf] }
  0x21   :  { %5163 = vmatprep.mubr.msk.bf16.mxu1 %vm991_vm1, %v4632_v17  ;;  %v280_v28 = vor.u32 %v279_v19, %v275_v18  ;;  %v285_v29 = vrot.slane %v283_v20, 5  ;;  %v297_v31 = vshll.u32 %v33_v8, 16  ;;  %v262_v34 = vsel %vm5820_vm4, %v257_v22, %v261_v9  ;;  %v38_v9 = vld [vmem:[%s7367_s0 + $0x78] sm:$0xf]  ;;  %v94_v19 = vld [vmem:[%s7367_s0 + $0x80] sm:$0x1] }
  0x22   :  { %v271_v35 = vrot.slane %v270_v23, 4  ;;  %v290_v36 = vrot.slane %v288_v25, 4  ;;  %v301_v37 = vshrl.u32 %v33_v8, 16  ;;  %v4633_v39 = vcombine.low %v252_v21, %v262_v34 }
  0x23   :  { %v281_v40 = vrot.slane %v280_v28, 4  ;;  %v293_v41 = vrot.slane %v291_v30, 5  ;;  %v299_v42 = vrot.slane %v297_v31, 5  ;;  %v307_v47 = vshll.u32 %v91_v24, 16  ;;  %v40_v24 = vld [vmem:[%s7367_s0 + $0x84] sm:$0xf] }
  0x24   :  { %v276_v45 = vsel %vm5820_vm4, %v271_v35, %v275_v18  ;;  %v303_v46 = vrot.slane %v301_v37, 4  ;;  %v312_v48 = vshrl.u32 %v34_v32, 16  ;;  %5164 = vmatmul.mubr.msk.bf16.gmra.mrb[8].mxu1 %vm991_vm1, %v4633_v39  ;;  %v315_v52 = vshll.u32 %v34_v32, 16 }
  0x25   :  { %v286_v50 = vsel %vm5820_vm4, %v281_v40, %v285_v29  ;;  %v294_v51 = vor.u32 %v293_v41, %v290_v36  ;;  %v321_v53 = vshll.u32 %v35_v38, 16  ;;  %v309_v56 = vrot.slane %v307_v47, 5 }
  0x26   :  { %5304 = vmatmul.mubr.msk.bf16.gmra.mrb[16].mxu0 %vm991_vm1, %v5626_v27  ;;  %v4634_v54 = vcombine.low %v276_v45, %v286_v50  ;;  %v304_v55 = vor.u32 %v303_v46, %v299_v42  ;;  %v314_v57 = vrot.slane %v312_v48, 4  ;;  %v317_v59 = vrot.slane %v315_v52, 5  ;;  %v95_v46 = vld [vmem:[%s7367_s0 + $0x8c] sm:$0x1] }
  0x27   :  { %5307 = vmatprep.mubr.msk.bf16.mxu0 %vm991_vm1, %v5627_v33  ;;  %v295_v58 = vrot.slane %v294_v51, 4  ;;  %v323_v60 = vrot.slane %v321_v53, 5  ;;  %v325_v61 = vshrl.u32 %v35_v38, 16  ;;  %v331_v63 = vshll.u32 %v92_v43, 16  ;;  %v41_v38 = vld [vmem:[%s7367_s0 + $0x88] sm:$0xf] }
  0x28   :  { %5167 = vmatprep.mubr.msk.bf16.mxu1 %vm991_vm1, %v4634_v54  ;;  %v305_v62 = vrot.slane %v304_v55, 4  ;;  %v336_v0 = vshrl.u32 %v36_v44, 16  ;;  %v339_v1 = vshll.u32 %v36_v44, 16  ;;  %v318_v5 = vor.u32 %v317_v59, %v314_v57  ;;  %v5630_v43 = vld [vmem:[%s7366_s1 + $0x9c] sm:$0xff]   ;;  %v42_v54 = vld [vmem:[%s7367_s0 + $0x90] sm:$0xf] }
  0x29   :  { %v300_v4 = vsel %vm5820_vm4, %v295_v58, %v299_v42  ;;  %v327_v6 = vrot.slane %v325_v61, 4  ;;  %v345_v8 = vshll.u32 %v37_v49, 16  ;;  %v333_v11 = vrot.slane %v331_v63, 5  ;;  %v43_v59 = vld [vmem:[%s7367_s0 + $0x94] sm:$0xf] }
  0x2a   :  { %v310_v10 = vsel %vm5820_vm4, %v305_v62, %v309_v56  ;;  %v338_v12 = vrot.slane %v336_v0, 4  ;;  %v341_v13 = vrot.slane %v339_v1, 5  ;;  %v319_v16 = vrot.slane %v318_v5, 4  ;;  %v96_v0 = vld [vmem:[%s7367_s0 + $0x98] sm:$0x1] }
  0x2b   :  { %v4635_v15 = vcombine.low %v300_v4, %v310_v10  ;;  %v328_v17 = vor.u32 %v327_v6, %v323_v60  ;;  %v347_v18 = vrot.slane %v345_v8, 5  ;;  %v349_v21 = vshrl.u32 %v37_v49, 16  ;;  %v5631_v49 = vld [vmem:[%s7366_s1 + $0xa8] sm:$0xff]  }
  0x2c   :  { %v342_v20 = vor.u32 %v341_v13, %v338_v12  ;;  %v355_v22 = vshll.u32 %v93_v7, 16  ;;  %v360_v23 = vshrl.u32 %v38_v9, 16  ;;  %v324_v25 = vsel %vm5820_vm4, %v319_v16, %v323_v60  ;;  %v44_v13 = vld [vmem:[%s7367_s0 + $0x9c] sm:$0xf] }
  0x2d   :  { %5168 = vmatmul.mubr.msk.bf16.gmra.mrb[12].mxu1 %vm991_vm1, %v4635_v15  ;;  %v329_v27 = vrot.slane %v328_v17, 4  ;;  %v363_v28 = vshll.u32 %v38_v9, 16  ;;  %v369_v29 = vshll.u32 %v39_v14, 16  ;;  %v351_v31 = vrot.slane %v349_v21, 4 }
  0x2e   :  { %5308 = vmatmul.mubr.msk.bf16.gmra.mrb[20].mxu0 %vm991_vm1, %v5628_v2  ;;  %v343_v30 = vrot.slane %v342_v20, 4  ;;  %v357_v32 = vrot.slane %v355_v22, 5  ;;  %v362_v33 = vrot.slane %v360_v23, 4  ;;  %v373_v37 = vshrl.u32 %v39_v14, 16 }
  0x2f   :  { %5311 = vmatprep.mubr.msk.bf16.mxu0 %vm991_vm1, %v5629_v3  ;;  %v334_v34 = vsel %vm5820_vm4, %v329_v27, %v333_v11  ;;  %v365_v35 = vrot.slane %v363_v28, 5  ;;  %v371_v36 = vrot.slane %v369_v29, 5  ;;  %v352_v41 = vor.u32 %v351_v31, %v347_v18  ;;  %v97_v28 = vld [vmem:[%s7367_s0 + $0xa4] sm:$0x1]  ;;  %v46_v31 = vld [vmem:[%s7367_s0 + $0xa8] sm:$0xf] }
  0x30   :  { %v4636_v39 = vcombine.low %v324_v25, %v334_v34  ;;  %v348_v40 = vsel %vm5820_vm4, %v343_v30, %v347_v18  ;;  %v379_v42 = vshll.u32 %v94_v19, 16  ;;  %v375_v45 = vrot.slane %v373_v37, 4  ;;  %v45_v18 = vld [vmem:[%s7367_s0 + $0xa0] sm:$0xf]  ;;  %v5632_v19 = vld [vmem:[%s7366_s1 + $0xb4] sm:$0xff]  }
  0x31   :  { %v366_v44 = vor.u32 %v365_v35, %v362_v33  ;;  %v384_v47 = vshrl.u32 %v40_v24, 16  ;;  %v387_v48 = vshll.u32 %v40_v24, 16  ;;  %v353_v50 = vrot.slane %v352_v41, 4  ;;  %v5633_v24 = vld [vmem:[%s7366_s1 + $0xc0] sm:$0xff]   ;;  %v98_v41 = vld [vmem:[%s7367_s0 + $0xb0] sm:$0x1] }
  0x32   :  { %5171 = vmatprep.mubr.msk.bf16.mxu1 %vm991_vm1, %v4636_v39  ;;  %v381_v51 = vrot.slane %v379_v42, 5  ;;  %v393_v52 = vshll.u32 %v41_v38, 16  ;;  %v397_v53 = vshrl.u32 %v41_v38, 16  ;;  %v376_v56 = vor.u32 %v375_v45, %v371_v36 }
  0x33   :  { %v367_v55 = vrot.slane %v366_v44, 4  ;;  %v386_v57 = vrot.slane %v384_v47, 4  ;;  %v389_v58 = vrot.slane %v387_v48, 5  ;;  %v358_v60 = vsel %vm5820_vm4, %v353_v50, %v357_v32  ;;  %v48_v50 = vld [vmem:[%s7367_s0 + $0xb4] sm:$0xf] }
  0x34   :  { %v395_v61 = vrot.slane %v393_v52, 5  ;;  %v399_v62 = vrot.slane %v397_v53, 4  ;;  %v403_v63 = vshll.u32 %v95_v46, 16  ;;  %v4637_v1 = vcombine.low %v348_v40, %v358_v60 }
  0x35   :  { %v372_v2 = vsel %vm5820_vm4, %v367_v55, %v371_v36  ;;  %v377_v3 = vrot.slane %v376_v56, 4  ;;  %v390_v4 = vor.u32 %v389_v58, %v386_v57  ;;  %v408_v7 = vshrl.u32 %v42_v54, 16  ;;  %v47_v36 = vld [vmem:[%s7367_s0 + $0xac] sm:$0xf]  ;;  %v5635_v56 = vld [vmem:[%s7366_s1 + $0xd8] sm:$0xff]  }
  0x36   :  { %5312 = vmatmul.mubr.msk.bf16.gmra.mrb[24].mxu0 %vm991_vm1, %v5630_v43  ;;  %v400_v5 = vor.u32 %v399_v62, %v395_v61  ;;  %v405_v6 = vrot.slane %v403_v63, 5  ;;  %v411_v8 = vshll.u32 %v42_v54, 16  ;;  %5172 = vmatmul.mubr.msk.bf16.gmra.mrb[16].mxu1 %vm991_vm1, %v4637_v1  ;;  %v417_v11 = vshll.u32 %v43_v59, 16  ;;  %v5634_v55 = vld [vmem:[%s7366_s1 + $0xcc] sm:$0xff]   ;;  %v99_v62 = vld [vmem:[%s7367_s0 + $0xbc] sm:$0x1] }
  0x37   :  { %5315 = vmatprep.mubr.msk.bf16.mxu0 %vm991_vm1, %v5631_v49  ;;  %v382_v9 = vsel %vm5820_vm4, %v377_v3, %v381_v51  ;;  %v391_v10 = vrot.slane %v390_v4, 4  ;;  %v421_v12 = vshrl.u32 %v43_v59, 16  ;;  %v410_v16 = vrot.slane %v408_v7, 4  ;;  %v50_v3 = vld [vmem:[%s7367_s0 + $0xc0] sm:$0xf] }
  0x38   :  { %v4638_v14 = vcombine.low %v372_v2, %v382_v9  ;;  %v401_v15 = vrot.slane %v400_v5, 4  ;;  %v413_v17 = vrot.slane %v411_v8, 5  ;;  %v419_v21 = vrot.slane %v417_v11, 5  ;;  %v51_v8 = vld [vmem:[%s7367_s0 + $0xc4] sm:$0xf] }
  0x39   :  { %v396_v20 = vsel %vm5820_vm4, %v391_v10, %v395_v61  ;;  %v423_v22 = vrot.slane %v421_v12, 4  ;;  %v427_v23 = vshll.u32 %v96_v0, 16  ;;  %v432_v29 = vshrl.u32 %v44_v13, 16  ;;  %v49_v61 = vld [vmem:[%s7367_s0 + $0xb8] sm:$0xf] }
  0x3a   :  { %5175 = vmatprep.mubr.msk.bf16.mxu1 %vm991_vm1, %v4638_v14  ;;  %v406_v25 = vsel %vm5820_vm4, %v401_v15, %v405_v6  ;;  %v414_v27 = vor.u32 %v413_v17, %v410_v16  ;;  %v435_v30 = vshll.u32 %v44_v13, 16  ;;  %v441_v35 = vshll.u32 %v45_v18, 16 }
  0x3b   :  { %v4639_v32 = vcombine.low %v396_v20, %v406_v25  ;;  %v424_v33 = vor.u32 %v423_v22, %v419_v21  ;;  %v429_v34 = vrot.slane %v427_v23, 5  ;;  %v434_v38 = vrot.slane %v432_v29, 4 }
  0x3c   :  { %v415_v37 = vrot.slane %v414_v27, 4  ;;  %v437_v39 = vrot.slane %v435_v30, 5  ;;  %v445_v40 = vshrl.u32 %v45_v18, 16  ;;  %v443_v43 = vrot.slane %v441_v35, 5 }
  0x3d   :  { %v425_v42 = vrot.slane %v424_v33, 4  ;;  %v451_v44 = vshll.u32 %v97_v28, 16  ;;  %v456_v45 = vshrl.u32 %v46_v31, 16  ;;  %v459_v49 = vshll.u32 %v46_v31, 16  ;;  %v52_v31 = vld [vmem:[%s7367_s0 + $0xcc] sm:$0xf] }
  0x3e   :  { %5316 = vmatmul.mubr.msk.bf16.gmra.mrb[28].mxu0 %vm991_vm1, %v5632_v19  ;;  %v420_v46 = vsel %vm5820_vm4, %v415_v37, %v419_v21  ;;  %v438_v47 = vor.u32 %v437_v39, %v434_v38  ;;  %v447_v48 = vrot.slane %v445_v40, 4  ;;  %5176 = vmatmul.mubr.msk.bf16.gmra.mrb[20].mxu1 %vm991_vm1, %v4639_v32  ;;  %v465_v54 = vshll.u32 %v47_v36, 16  ;;  %v5636_v37 = vld [vmem:[%s7366_s1 + $0xe4] sm:$0xff]  }
  0x3f   :  { %5319 = vmatprep.mubr.msk.bf16.mxu0 %vm991_vm1, %v5633_v24  ;;  %v430_v51 = vsel %vm5820_vm4, %v425_v42, %v429_v34  ;;  %v453_v52 = vrot.slane %v451_v44, 5  ;;  %v458_v53 = vrot.slane %v456_v45, 4  ;;  %v461_v60 = vrot.slane %v459_v49, 5  ;;  %v100_v24 = vld [vmem:[%s7367_s0 + $0xc8] sm:$0x1] }
  0x40   :  { %v4640_v57 = vcombine.low %v420_v46, %v430_v51  ;;  %v439_v58 = vrot.slane %v438_v47, 4  ;;  %v448_v59 = vor.u32 %v447_v48, %v443_v43  ;;  %v467_v63 = vrot.slane %v465_v54, 5  ;;  %v101_v42 = vld [vmem:[%s7367_s0 + $0xd4] sm:$0x1] }
  0x41   :  { %v469_v0 = vshrl.u32 %v47_v36, 16  ;;  %v475_v1 = vshll.u32 %v98_v41, 16  ;;  %v480_v2 = vshrl.u32 %v48_v50, 16  ;;  %v462_v6 = vor.u32 %v461_v60, %v458_v53  ;;  %v53_v36 = vld [vmem:[%s7367_s0 + $0xd0] sm:$0xf] }
  0x42   :  { %5179 = vmatprep.mubr.msk.bf16.mxu1 %vm991_vm1, %v4640_v57  ;;  %v444_v4 = vsel %vm5820_vm4, %v439_v58, %v443_v43  ;;  %v449_v5 = vrot.slane %v448_v59, 4  ;;  %v483_v7 = vshll.u32 %v48_v50, 16  ;;  %v489_v12 = vshll.u32 %v49_v61, 16  ;;  %v5637_v43 = vld [vmem:[%s7366_s1 + $0xf0] sm:$0xff]  }
  0x43   :  { %v471_v9 = vrot.slane %v469_v0, 4  ;;  %v477_v10 = vrot.slane %v475_v1, 5  ;;  %v482_v11 = vrot.slane %v480_v2, 4  ;;  %v463_v14 = vrot.slane %v462_v6, 4  ;;  %v5638_v2 = vld [vmem:[%s7366_s1 + $0xfc] sm:$0xff]  }
  0x44   :  { %v454_v13 = vsel %vm5820_vm4, %v449_v5, %v453_v52  ;;  %v485_v15 = vrot.slane %v483_v7, 5  ;;  %v493_v16 = vshrl.u32 %v49_v61, 16  ;;  %v491_v19 = vrot.slane %v489_v12, 5  ;;  %v55_v61 = vld [vmem:[%s7367_s0 + $0xdc] sm:$0xf] }
  0x45   :  { %v4641_v17 = vcombine.low %v444_v4, %v454_v13  ;;  %v472_v18 = vor.u32 %v471_v9, %v467_v63  ;;  %v499_v20 = vshll.u32 %v99_v62, 16  ;;  %v468_v21 = vsel %vm5820_vm4, %v463_v14, %v467_v63  ;;  %v102_v5 = vld [vmem:[%s7367_s0 + $0xe0] sm:$0x1]  ;;  %v57_v13 = vld [vmem:[%s7367_s0 + $0xe8] sm:$0xf] }
  0x46   :  { %5320 = vmatmul.mubr.msk.bf16.gmra.mrb[32].mxu0 %vm991_vm1, %v5634_v55  ;;  %v486_v22 = vor.u32 %v485_v15, %v482_v11  ;;  %v495_v23 = vrot.slane %v493_v16, 4  ;;  %v504_v25 = vshrl.u32 %v50_v3, 16  ;;  %v507_v29 = vshll.u32 %v50_v3, 16 }
  0x47   :  { %5323 = vmatprep.mubr.msk.bf16.mxu0 %vm991_vm1, %v5635_v56  ;;  %5180 = vmatmul.mubr.msk.bf16.gmra.mrb[24].mxu1 %vm991_vm1, %v4641_v17  ;;  %v473_v27 = vrot.slane %v472_v18, 4  ;;  %v501_v28 = vrot.slane %v499_v20, 5  ;;  %v513_v30 = vshll.u32 %v51_v8, 16  ;;  %v517_v35 = vshrl.u32 %v51_v8, 16  ;;  %v54_v56 = vld [vmem:[%s7367_s0 + $0xd8] sm:$0xf] }
  0x48   :  { %v487_v32 = vrot.slane %v486_v22, 4  ;;  %v496_v33 = vor.u32 %v495_v23, %v491_v19  ;;  %v506_v34 = vrot.slane %v504_v25, 4  ;;  %v509_v39 = vrot.slane %v507_v29, 5  ;;  %v56_v8 = vld [vmem:[%s7367_s0 + $0xe4] sm:$0xf]  ;;  %v5639_v18 = vld [vmem:[%s7366_s1 + $0x108] sm:$0xff]  }
  0x49   :  { %v478_v38 = vsel %vm5820_vm4, %v473_v27, %v477_v10  ;;  %v515_v40 = vrot.slane %v513_v30, 5  ;;  %v523_v41 = vshll.u32 %v100_v24, 16  ;;  %v519_v47 = vrot.slane %v517_v35, 4  ;;  %v103_v25 = vld [vmem:[%s7367_s0 + $0xec] sm:$0x1] }
  0x4a   :  { %v4642_v44 = vcombine.low %v468_v21, %v478_v38  ;;  %v492_v45 = vsel %vm5820_vm4, %v487_v32, %v491_v19  ;;  %v497_v46 = vrot.slane %v496_v33, 4  ;;  %v510_v48 = vor.u32 %v509_v39, %v506_v34  ;;  %v58_v33 = vld [vmem:[%s7367_s0 + $0xf0] sm:$0xf]  ;;  %v59_v38 = vld [vmem:[%s7367_s0 + $0xf4] sm:$0xf] }
  0x4b   :  { %v525_v49 = vrot.slane %v523_v41, 5  ;;  %v528_v50 = vshrl.u32 %v52_v31, 16  ;;  %v531_v51 = vshll.u32 %v52_v31, 16  ;;  %v520_v53 = vor.u32 %v519_v47, %v515_v40 }
  0x4c   :  { %5183 = vmatprep.mubr.msk.bf16.mxu1 %vm991_vm1, %v4642_v44  ;;  %v502_v52 = vsel %vm5820_vm4, %v497_v46, %v501_v28  ;;  %v537_v54 = vshll.u32 %v53_v36, 16  ;;  %v541_v55 = vshrl.u32 %v53_v36, 16  ;;  %v511_v58 = vrot.slane %v510_v48, 4  ;;  %v104_v46 = vld [vmem:[%s7367_s0 + $0xf8] sm:$0x1] }
  0x4d   :  { %v4643_v57 = vcombine.low %v492_v45, %v502_v52  ;;  %v530_v59 = vrot.slane %v528_v50, 4  ;;  %v533_v60 = vrot.slane %v531_v51, 5  ;;  %v521_v62 = vrot.slane %v520_v53, 4  ;;  %v5641_v50 = vld [vmem:[%s7366_s1 + $0x120] sm:$0xff]  }
  0x4e   :  { %5324 = vmatmul.mubr.msk.bf16.gmra.mrb[36].mxu0 %vm991_vm1, %v5636_v37  ;;  %v539_v63 = vrot.slane %v537_v54, 5  ;;  %v543_v0 = vrot.slane %v541_v55, 4  ;;  %v547_v1 = vshll.u32 %v101_v42, 16  ;;  %v516_v3 = vsel %vm5820_vm4, %v511_v58, %v515_v40  ;;  %v61_v55 = vld [vmem:[%s7367_s0 + $0x100] sm:$0xf] }
  0x4f   :  { %5327 = vmatprep.mubr.msk.bf16.mxu0 %vm991_vm1, %v5637_v43  ;;  %5184 = vmatmul.mubr.msk.bf16.gmra.mrb[28].mxu1 %vm991_vm1, %v4643_v57  ;;  %v534_v4 = vor.u32 %v533_v60, %v530_v59  ;;  %v552_v6 = vshrl.u32 %v54_v56, 16  ;;  %v555_v7 = vshll.u32 %v54_v56, 16  ;;  %v526_v9 = vsel %vm5820_vm4, %v521_v62, %v525_v49  ;;  %v5640_v43 = vld [vmem:[%s7366_s1 + $0x114] sm:$0xff]   ;;  %v60_v49 = vld [vmem:[%s7367_s0 + $0xfc] sm:$0xf] }
  0x50   :  { %v544_v10 = vor.u32 %v543_v0, %v539_v63  ;;  %v549_v11 = vrot.slane %v547_v1, 5  ;;  %v561_v12 = vshll.u32 %v55_v61, 16  ;;  %v4644_v14 = vcombine.low %v516_v3, %v526_v9  ;;  %v62_v9 = vld [vmem:[%s7367_s0 + $0x108] sm:$0xf] }
  0x51   :  { %v535_v15 = vrot.slane %v534_v4, 4  ;;  %v554_v16 = vrot.slane %v552_v6, 4  ;;  %v557_v17 = vrot.slane %v555_v7, 5  ;;  %v565_v21 = vshrl.u32 %v55_v61, 16  ;;  %v105_v4 = vld [vmem:[%s7367_s0 + $0x104] sm:$0x1] }
  0x52   :  { %v545_v19 = vrot.slane %v544_v10, 4  ;;  %v563_v20 = vrot.slane %v561_v12, 5  ;;  %v571_v22 = vshll.u32 %v102_v5, 16  ;;  %5187 = vmatprep.mubr.msk.bf16.mxu1 %vm991_vm1, %v4644_v14  ;;  %v576_v27 = vshrl.u32 %v56_v8, 16  ;;  %v63_v14 = vld [vmem:[%s7367_s0 + $0x10c] sm:$0xf] }
  0x53   :  { %v540_v23 = vsel %vm5820_vm4, %v535_v15, %v539_v63  ;;  %v558_v24 = vor.u32 %v557_v17, %v554_v16  ;;  %v579_v28 = vshll.u32 %v56_v8, 16  ;;  %v567_v30 = vrot.slane %v565_v21, 4 }
  0x54   :  { %v550_v29 = vsel %vm5820_vm4, %v545_v19, %v549_v11  ;;  %v573_v31 = vrot.slane %v571_v22, 5  ;;  %v585_v32 = vshll.u32 %v57_v13, 16  ;;  %v578_v36 = vrot.slane %v576_v27, 4  ;;  %v106_v19 = vld [vmem:[%s7367_s0 + $0x110] sm:$0x1] }
  0x55   :  { %v4645_v34 = vcombine.low %v540_v23, %v550_v29  ;;  %v559_v35 = vrot.slane %v558_v24, 4  ;;  %v581_v37 = vrot.slane %v579_v28, 5  ;;  %v568_v39 = vor.u32 %v567_v30, %v563_v20  ;;  %v64_v24 = vld [vmem:[%s7367_s0 + $0x114] sm:$0xf]  ;;  %v5642_v30 = vld [vmem:[%s7366_s1 + $0x12c] sm:$0xff]  }
  0x56   :  { %5328 = vmatmul.mubr.msk.bf16.gmra.mrb[40].mxu0 %vm991_vm1, %v5638_v2  ;;  %v587_v40 = vrot.slane %v585_v32, 5  ;;  %v589_v41 = vshrl.u32 %v57_v13, 16  ;;  %v595_v42 = vshll.u32 %v103_v25, 16  ;;  %v600_v47 = vshrl.u32 %v58_v33, 16 }
  0x57   :  { %5331 = vmatprep.mubr.msk.bf16.mxu0 %vm991_vm1, %v5639_v18  ;;  %5188 = vmatmul.mubr.msk.bf16.gmra.mrb[32].mxu1 %vm991_vm1, %v4645_v34  ;;  %v564_v44 = vsel %vm5820_vm4, %v559_v35, %v563_v20  ;;  %v582_v45 = vor.u32 %v581_v37, %v578_v36  ;;  %v603_v48 = vshll.u32 %v58_v33, 16  ;;  %v569_v51 = vrot.slane %v568_v39, 4  ;;  %v5643_v35 = vld [vmem:[%s7366_s1 + $0x138] sm:$0xff]  }
  0x58   :  { %v591_v52 = vrot.slane %v589_v41, 4  ;;  %v597_v53 = vrot.slane %v595_v42, 5  ;;  %v609_v54 = vshll.u32 %v59_v38, 16  ;;  %v602_v57 = vrot.slane %v600_v47, 4 }
  0x59   :  { %v583_v56 = vrot.slane %v582_v45, 4  ;;  %v605_v58 = vrot.slane %v603_v48, 5  ;;  %v613_v59 = vshrl.u32 %v59_v38, 16  ;;  %v574_v60 = vsel %vm5820_vm4, %v569_v51, %v573_v31 }
  0x5a   :  { %v592_v61 = vor.u32 %v591_v52, %v587_v40  ;;  %v611_v62 = vrot.slane %v609_v54, 5  ;;  %v619_v63 = vshll.u32 %v104_v46, 16  ;;  %v4646_v0 = vcombine.low %v564_v44, %v574_v60  ;;  %v107_v52 = vld [vmem:[%s7367_s0 + $0x11c] sm:$0x1]  ;;  %v66_v54 = vld [vmem:[%s7367_s0 + $0x120] sm:$0xf] }
  0x5b   :  { %v588_v1 = vsel %vm5820_vm4, %v583_v56, %v587_v40  ;;  %v606_v2 = vor.u32 %v605_v58, %v602_v57  ;;  %v615_v3 = vrot.slane %v613_v59, 4  ;;  %v624_v7 = vshrl.u32 %v60_v49, 16  ;;  %v65_v40 = vld [vmem:[%s7367_s0 + $0x118] sm:$0xf]  ;;  %v67_v59 = vld [vmem:[%s7367_s0 + $0x124] sm:$0xf] }
  0x5c   :  { %v593_v5 = vrot.slane %v592_v61, 4  ;;  %v621_v6 = vrot.slane %v619_v63, 5  ;;  %v627_v8 = vshll.u32 %v60_v49, 16  ;;  %5191 = vmatprep.mubr.msk.bf16.mxu1 %vm991_vm1, %v4646_v0  ;;  %v633_v12 = vshll.u32 %v61_v55, 16  ;;  %v108_v0 = vld [vmem:[%s7367_s0 + $0x128] sm:$0x1] }
  0x5d   :  { %v607_v10 = vrot.slane %v606_v2, 4  ;;  %v616_v11 = vor.u32 %v615_v3, %v611_v62  ;;  %v637_v13 = vshrl.u32 %v61_v55, 16  ;;  %v626_v16 = vrot.slane %v624_v7, 4  ;;  %v5644_v2 = vld [vmem:[%s7366_s1 + $0x144] sm:$0xff]   ;;  %v5645_v7 = vld [vmem:[%s7366_s1 + $0x150] sm:$0xff]  }
  0x5e   :  { %5332 = vmatmul.mubr.msk.bf16.gmra.mrb[44].mxu0 %vm991_vm1, %v5640_v43  ;;  %v598_v15 = vsel %vm5820_vm4, %v593_v5, %v597_v53  ;;  %v629_v17 = vrot.slane %v627_v8, 5  ;;  %v643_v18 = vshll.u32 %v105_v4, 16  ;;  %v635_v23 = vrot.slane %v633_v12, 5 }
  0x5f   :  { %5335 = vmatprep.mubr.msk.bf16.mxu0 %vm991_vm1, %v5641_v50  ;;  %v4647_v20 = vcombine.low %v588_v1, %v598_v15  ;;  %v612_v21 = vsel %vm5820_vm4, %v607_v10, %v611_v62  ;;  %v617_v22 = vrot.slane %v616_v11, 4  ;;  %v639_v27 = vrot.slane %v637_v13, 4  ;;  %v68_v1 = vld [vmem:[%s7367_s0 + $0x12c] sm:$0xf] }
  0x60   :  { %v630_v25 = vor.u32 %v629_v17, %v626_v16  ;;  %v645_v28 = vrot.slane %v643_v18, 5  ;;  %v648_v29 = vshrl.u32 %v62_v9, 16  ;;  %v651_v32 = vshll.u32 %v62_v9, 16  ;;  %v69_v16 = vld [vmem:[%s7367_s0 + $0x130] sm:$0xf] }
  0x61   :  { %5192 = vmatmul.mubr.msk.bf16.gmra.mrb[36].mxu1 %vm991_vm1, %v4647_v20  ;;  %v622_v31 = vsel %vm5820_vm4, %v617_v22, %v621_v6  ;;  %v657_v33 = vshll.u32 %v63_v14, 16  ;;  %v661_v34 = vshrl.u32 %v63_v14, 16  ;;  %v640_v38 = vor.u32 %v639_v27, %v635_v23 }
  0x62   :  { %v4648_v36 = vcombine.low %v612_v21, %v622_v31  ;;  %v631_v37 = vrot.slane %v630_v25, 4  ;;  %v650_v39 = vrot.slane %v648_v29, 4  ;;  %v653_v41 = vrot.slane %v651_v32, 5  ;;  %v70_v31 = vld [vmem:[%s7367_s0 + $0x138] sm:$0xf] }
  0x63   :  { %v659_v42 = vrot.slane %v657_v33, 5  ;;  %v663_v43 = vrot.slane %v661_v34, 4  ;;  %v667_v44 = vshll.u32 %v106_v19, 16  ;;  %v641_v46 = vrot.slane %v640_v38, 4 }
  0x64   :  { %5195 = vmatprep.mubr.msk.bf16.mxu1 %vm991_vm1, %v4648_v36  ;;  %v636_v45 = vsel %vm5820_vm4, %v631_v37, %v635_v23  ;;  %v672_v47 = vshrl.u32 %v64_v24, 16  ;;  %v675_v48 = vshll.u32 %v64_v24, 16  ;;  %v654_v49 = vor.u32 %v653_v41, %v650_v39  ;;  %v109_v24 = vld [vmem:[%s7367_s0 + $0x134] sm:$0x1]  ;;  %v71_v36 = vld [vmem:[%s7367_s0 + $0x13c] sm:$0xf] }
  0x65   :  { %v664_v50 = vor.u32 %v663_v43, %v659_v42  ;;  %v669_v51 = vrot.slane %v667_v44, 5  ;;  %v681_v53 = vshll.u32 %v65_v40, 16  ;;  %v646_v55 = vsel %vm5820_vm4, %v641_v46, %v645_v28  ;;  %v5646_v37 = vld [vmem:[%s7366_s1 + $0x15c] sm:$0xff]  }
  0x66   :  { %5336 = vmatmul.mubr.msk.bf16.gmra.mrb[48].mxu0 %vm991_vm1, %v5642_v30  ;;  %v674_v56 = vrot.slane %v672_v47, 4  ;;  %v677_v57 = vrot.slane %v675_v48, 5  ;;  %v685_v58 = vshrl.u32 %v65_v40, 16  ;;  %v4649_v60 = vcombine.low %v636_v45, %v646_v55 }
  0x67   :  { %5339 = vmatprep.mubr.msk.bf16.mxu0 %vm991_vm1, %v5643_v35  ;;  %v655_v61 = vrot.slane %v654_v49, 4  ;;  %v665_v62 = vrot.slane %v664_v50, 4  ;;  %v683_v63 = vrot.slane %v681_v53, 5  ;;  %v691_v5 = vshll.u32 %v107_v52, 16  ;;  %v110_v50 = vld [vmem:[%s7367_s0 + $0x140] sm:$0x1] }
  0x68   :  { %v678_v3 = vor.u32 %v677_v57, %v674_v56  ;;  %v687_v4 = vrot.slane %v685_v58, 4  ;;  %v696_v6 = vshrl.u32 %v66_v54, 16  ;;  %v699_v10 = vshll.u32 %v66_v54, 16  ;;  %v72_v56 = vld [vmem:[%s7367_s0 + $0x144] sm:$0xf] }
  0x69   :  { %5196 = vmatmul.mubr.msk.bf16.gmra.mrb[40].mxu1 %vm991_vm1, %v4649_v60  ;;  %v660_v8 = vsel %vm5820_vm4, %v655_v61, %v659_v42  ;;  %v670_v9 = vsel %vm5820_vm4, %v665_v62, %v669_v51  ;;  %v705_v11 = vshll.u32 %v67_v59, 16  ;;  %v693_v15 = vrot.slane %v691_v5, 5  ;;  %v5647_v42 = vld [vmem:[%s7366_s1 + $0x168] sm:$0xff]  }
  0x6a   :  { %v4650_v12 = vcombine.low %v660_v8, %v670_v9  ;;  %v679_v13 = vrot.slane %v678_v3, 4  ;;  %v688_v14 = vor.u32 %v687_v4, %v683_v63  ;;  %v698_v17 = vrot.slane %v696_v6, 4  ;;  %v73_v61 = vld [vmem:[%s7367_s0 + $0x148] sm:$0xf]  ;;  %v111_v5 = vld [vmem:[%s7367_s0 + $0x14c] sm:$0x1] }
  0x6b   :  { %v701_v18 = vrot.slane %v699_v10, 5  ;;  %v707_v19 = vrot.slane %v705_v11, 5  ;;  %v709_v20 = vshrl.u32 %v67_v59, 16  ;;  %v715_v23 = vshll.u32 %v108_v0, 16  ;;  %v74_v11 = vld [vmem:[%s7367_s0 + $0x150] sm:$0xf] }
  0x6c   :  { %5199 = vmatprep.mubr.msk.bf16.mxu1 %vm991_vm1, %v4650_v12  ;;  %v684_v21 = vsel %vm5820_vm4, %v679_v13, %v683_v63  ;;  %v689_v22 = vrot.slane %v688_v14, 4  ;;  %v720_v25 = vshrl.u32 %v68_v1, 16  ;;  %v723_v29 = vshll.u32 %v68_v1, 16 }
  0x6d   :  { %v702_v27 = vor.u32 %v701_v18, %v698_v17  ;;  %v711_v28 = vrot.slane %v709_v20, 4  ;;  %v729_v30 = vshll.u32 %v69_v16, 16  ;;  %v717_v33 = vrot.slane %v715_v23, 5 }
  0x6e   :  { %5340 = vmatmul.mubr.msk.bf16.gmra.mrb[52].mxu0 %vm991_vm1, %v5644_v2  ;;  %v694_v32 = vsel %vm5820_vm4, %v689_v22, %v693_v15  ;;  %v722_v34 = vrot.slane %v720_v25, 4  ;;  %v733_v35 = vshrl.u32 %v69_v16, 16  ;;  %v725_v41 = vrot.slane %v723_v29, 5  ;;  %v75_v16 = vld [vmem:[%s7367_s0 + $0x154] sm:$0xf] }
  0x6f   :  { %5343 = vmatprep.mubr.msk.bf16.mxu0 %vm991_vm1, %v5645_v7  ;;  %v4651_v38 = vcombine.low %v684_v21, %v694_v32  ;;  %v703_v39 = vrot.slane %v702_v27, 4  ;;  %v712_v40 = vor.u32 %v711_v28, %v707_v19  ;;  %v731_v43 = vrot.slane %v729_v30, 5  ;;  %v5648_v21 = vld [vmem:[%s7366_s1 + $0x174] sm:$0xff]   ;;  %v76_v32 = vld [vmem:[%s7367_s0 + $0x15c] sm:$0xf] }
  0x70   :  { %v735_v44 = vrot.slane %v733_v35, 4  ;;  %v739_v45 = vshll.u32 %v109_v24, 16  ;;  %v744_v46 = vshrl.u32 %v70_v31, 16  ;;  %v726_v49 = vor.u32 %v725_v41, %v722_v34  ;;  %v112_v24 = vld [vmem:[%s7367_s0 + $0x158] sm:$0x1] }
  0x71   :  { %5200 = vmatmul.mubr.msk.bf16.gmra.mrb[44].mxu1 %vm991_vm1, %v4651_v38  ;;  %v708_v47 = vsel %vm5820_vm4, %v703_v39, %v707_v19  ;;  %v713_v48 = vrot.slane %v712_v40, 4  ;;  %v747_v51 = vshll.u32 %v70_v31, 16  ;;  %v753_v55 = vshll.u32 %v71_v36, 16 }
  0x72   :  { %v736_v52 = vor.u32 %v735_v44, %v731_v43  ;;  %v741_v53 = vrot.slane %v739_v45, 5  ;;  %v746_v54 = vrot.slane %v744_v46, 4  ;;  %v727_v58 = vrot.slane %v726_v49, 4 }
  0x73   :  { %v718_v57 = vsel %vm5820_vm4, %v713_v48, %v717_v33  ;;  %v749_v59 = vrot.slane %v747_v51, 5  ;;  %v757_v60 = vshrl.u32 %v71_v36, 16  ;;  %v755_v0 = vrot.slane %v753_v55, 5  ;;  %v113_v48 = vld [vmem:[%s7367_s0 + $0x164] sm:$0x1] }
  0x74   :  { %v4652_v62 = vcombine.low %v708_v47, %v718_v57  ;;  %v737_v63 = vrot.slane %v736_v52, 4  ;;  %v763_v1 = vshll.u32 %v110_v50, 16  ;;  %v732_v2 = vsel %vm5820_vm4, %v727_v58, %v731_v43  ;;  %v78_v55 = vld [vmem:[%s7367_s0 + $0x168] sm:$0xf] }
  0x75   :  { %v750_v3 = vor.u32 %v749_v59, %v746_v54  ;;  %v759_v4 = vrot.slane %v757_v60, 4  ;;  %v768_v6 = vshrl.u32 %v72_v56, 16  ;;  %v771_v9 = vshll.u32 %v72_v56, 16  ;;  %v79_v60 = vld [vmem:[%s7367_s0 + $0x16c] sm:$0xf] }
  0x76   :  { %5344 = vmatmul.mubr.msk.bf16.gmra.mrb[56].mxu0 %vm991_vm1, %v5646_v37  ;;  %5203 = vmatprep.mubr.msk.bf16.mxu1 %vm991_vm1, %v4652_v62  ;;  %v742_v7 = vsel %vm5820_vm4, %v737_v63, %v741_v53  ;;  %v765_v8 = vrot.slane %v763_v1, 5  ;;  %v777_v10 = vshll.u32 %v73_v61, 16  ;;  %v781_v19 = vshrl.u32 %v73_v61, 16  ;;  %v77_v37 = vld [vmem:[%s7367_s0 + $0x160] sm:$0xf] }
  0x77   :  { %5347 = vmatprep.mubr.msk.bf16.mxu0 %vm991_vm1, %v5647_v42  ;;  %v4653_v12 = vcombine.low %v732_v2, %v742_v7  ;;  %v751_v13 = vrot.slane %v750_v3, 4  ;;  %v760_v14 = vor.u32 %v759_v4, %v755_v0  ;;  %v770_v15 = vrot.slane %v768_v6, 4  ;;  %v114_v3 = vld [vmem:[%s7367_s0 + $0x170] sm:$0x1] }
  0x78   :  { %v773_v17 = vrot.slane %v771_v9, 5  ;;  %v779_v18 = vrot.slane %v777_v10, 5  ;;  %v787_v20 = vshll.u32 %v111_v5, 16  ;;  %v792_v25 = vshrl.u32 %v74_v11, 16  ;;  %v80_v10 = vld [vmem:[%s7367_s0 + $0x174] sm:$0xf] }
  0x79   :  { %5204 = vmatmul.mubr.msk.bf16.gmra.mrb[48].mxu1 %vm991_vm1, %v4653_v12  ;;  %v756_v22 = vsel %vm5820_vm4, %v751_v13, %v755_v0  ;;  %v761_v23 = vrot.slane %v760_v14, 4  ;;  %v795_v27 = vshll.u32 %v74_v11, 16  ;;  %v783_v29 = vrot.slane %v781_v19, 4 }
  0x7a   :  { %v774_v28 = vor.u32 %v773_v17, %v770_v15  ;;  %v789_v30 = vrot.slane %v787_v20, 5  ;;  %v801_v31 = vshll.u32 %v75_v16, 16  ;;  %v794_v34 = vrot.slane %v792_v25, 4  ;;  %v81_v15 = vld [vmem:[%s7367_s0 + $0x178] sm:$0xf] }
  0x7b   :  { %v766_v33 = vsel %vm5820_vm4, %v761_v23, %v765_v8  ;;  %v797_v35 = vrot.slane %v795_v27, 5  ;;  %v805_v36 = vshrl.u32 %v75_v16, 16  ;;  %v784_v40 = vor.u32 %v783_v29, %v779_v18 }
  0x7c   :  { %v4654_v38 = vcombine.low %v756_v22, %v766_v33  ;;  %v775_v39 = vrot.slane %v774_v28, 4  ;;  %v803_v41 = vrot.slane %v801_v31, 5  ;;  %v811_v44 = vshll.u32 %v112_v24, 16  ;;  %v115_v28 = vld [vmem:[%s7367_s0 + $0x17c] sm:$0x1] }
  0x7d   :  { %v798_v42 = vor.u32 %v797_v35, %v794_v34  ;;  %v807_v43 = vrot.slane %v805_v36, 4  ;;  %v816_v45 = vshrl.u32 %v76_v32, 16  ;;  %v785_v47 = vrot.slane %v784_v40, 4  ;;  %v2619_v35 = vld [vmem:[%s7366_s1 + $0x4] sm:$0xf] }
  0x7e   :  { %5348 = vmatmul.mubr.msk.bf16.gmra.mrb[60].mxu0 %vm991_vm1, %v5648_v21  ;;  %5207 = vmatprep.mubr.msk.bf16.mxu1 %vm991_vm1, %v4654_v38  ;;  %v780_v46 = vsel %vm5820_vm4, %v775_v39, %v779_v18  ;;  %v819_v49 = vshll.u32 %v76_v32, 16  ;;  %v825_v50 = vshll.u32 %v77_v37, 16  ;;  %v813_v53 = vrot.slane %v811_v44, 5 }
  0x7f   :  { %v799_v51 = vrot.slane %v798_v42, 4  ;;  %v808_v52 = vor.u32 %v807_v43, %v803_v41  ;;  %v818_v54 = vrot.slane %v816_v45, 4  ;;  %v790_v56 = vsel %vm5820_vm4, %v785_v47, %v789_v30  ;;  %v2618_v30 = vld [vmem:[%s7366_s1] sm:$0xf] }
  0x80   :  { %v821_v57 = vrot.slane %v819_v49, 5  ;;  %v827_v58 = vrot.slane %v825_v50, 5  ;;  %v829_v59 = vshrl.u32 %v77_v37, 16  ;;  %v4655_v61 = vcombine.low %v780_v46, %v790_v56  ;;  %v2620_v46 = vld [vmem:[%s7366_s1 + $0x8] sm:$0x1] }
  0x81   :  { %v804_v62 = vsel %vm5820_vm4, %v799_v51, %v803_v41  ;;  %v809_v63 = vrot.slane %v808_v52, 4  ;;  %v835_v0 = vshll.u32 %v113_v48, 16  ;;  %v840_v4 = vshrl.u32 %v78_v55, 16  ;;  %v2621_v49 = vld [vmem:[%s7366_s1 + $0xc] sm:$0xf] }
  0x82   :  { %v822_v1 = vor.u32 %v821_v57, %v818_v54  ;;  %v831_v2 = vrot.slane %v829_v59, 4  ;;  %v843_v5 = vshll.u32 %v78_v55, 16  ;;  %5208 = vmatmul.mubr.msk.bf16.gmra.mrb[52].mxu1 %vm991_vm1, %v4655_v61  ;;  %v849_v8 = vshll.u32 %v79_v60, 16  ;;  %v2622_v54 = vld [vmem:[%s7366_s1 + $0x10] sm:$0xf] }
  0x83   :  { %v814_v6 = vsel %vm5820_vm4, %v809_v63, %v813_v53  ;;  %v837_v7 = vrot.slane %v835_v0, 5  ;;  %v853_v9 = vshrl.u32 %v79_v60, 16  ;;  %v842_v14 = vrot.slane %v840_v4, 4 }
  0x84   :  { %v4656_v11 = vcombine.low %v804_v62, %v814_v6  ;;  %v823_v12 = vrot.slane %v822_v1, 4  ;;  %v832_v13 = vor.u32 %v831_v2, %v827_v58  ;;  %v845_v16 = vrot.slane %v843_v5, 5  ;;  %v2623_v1 = vld [vmem:[%s7366_s1 + $0x14] sm:$0x1] }
  0x85   :  { %v851_v17 = vrot.slane %v849_v8, 5  ;;  %v855_v18 = vrot.slane %v853_v9, 4  ;;  %v859_v19 = vshll.u32 %v114_v3, 16  ;;  %v864_v22 = vshrl.u32 %v80_v10, 16 }
  0x86   :  { %5211 = vmatprep.mubr.msk.bf16.mxu1 %vm991_vm1, %v4656_v11  ;;  %v828_v20 = vsel %vm5820_vm4, %v823_v12, %v827_v58  ;;  %v833_v21 = vrot.slane %v832_v13, 4  ;;  %v867_v23 = vshll.u32 %v80_v10, 16  ;;  %v846_v24 = vor.u32 %v845_v16, %v842_v14  ;;  %v2624_v12 = vld [vmem:[%s7366_s1 + $0x18] sm:$0xf]  ;;  %v5681_v16 = vld [vmem:[%s7367_s0] sm:$0xf] }
  0x87   :  { %v856_v25 = vor.u32 %v855_v18, %v851_v17  ;;  %v861_v27 = vrot.slane %v859_v19, 5  ;;  %v873_v29 = vshll.u32 %v81_v15, 16  ;;  %v866_v32 = vrot.slane %v864_v22, 4  ;;  %v2625_v19 = vld [vmem:[%s7366_s1 + $0x1c] sm:$0xf] }
  0x88   :  { %v838_v31 = vsel %vm5820_vm4, %v833_v21, %v837_v7  ;;  %v869_v33 = vrot.slane %v867_v23, 5  ;;  %v877_v34 = vshrl.u32 %v81_v15, 16  ;;  %v847_v37 = vrot.slane %v846_v24, 4  ;;  %v5683_v23 = vld [vmem:[%s7367_s0 + $0xc] sm:$0xf] }
  0x89   :  { %v4657_v36 = vcombine.low %v828_v20, %v838_v31  ;;  %v857_v38 = vrot.slane %v856_v25, 4  ;;  %v875_v39 = vrot.slane %v873_v29, 5  ;;  %v883_v42 = vshll.u32 %v115_v28, 16  ;;  %v5684_v24 = vld [vmem:[%s7367_s0 + $0x10] sm:$0xf] }
  0x8a   :  { %v870_v40 = vor.u32 %v869_v33, %v866_v32  ;;  %v879_v41 = vrot.slane %v877_v34, 4  ;;  %v2715_v43 = vshrl.u32 %v2618_v30, 16  ;;  %v852_v44 = vsel %vm5820_vm4, %v847_v37, %v851_v17  ;;  %v5682_v17 = vld [vmem:[%s7367_s0 + $0x4] sm:$0xf]  ;;  %v2626_v29 = vld [vmem:[%s7366_s1 + $0x20] sm:$0x1] }
  0x8b   :  { %5212 = vmatmul.mubr.msk.bf16.gmra.mrb[56].mxu1 %vm991_vm1, %v4657_v36  ;;  %v862_v45 = vsel %vm5820_vm4, %v857_v38, %v861_v27  ;;  %v2718_v47 = vshll.u32 %v2618_v30, 16  ;;  %v2724_v48 = vshll.u32 %v2619_v35, 16  ;;  %v885_v53 = vrot.slane %v883_v42, 5  ;;  %v2627_v36 = vld [vmem:[%s7366_s1 + $0x24] sm:$0xf] }
  0x8c   :  { %v4658_v50 = vcombine.low %v852_v44, %v862_v45  ;;  %v871_v51 = vrot.slane %v870_v40, 4  ;;  %v880_v52 = vor.u32 %v879_v41, %v875_v39  ;;  %v2717_v55 = vrot.slane %v2715_v43, 4  ;;  %v2628_v41 = vld [vmem:[%s7366_s1 + $0x28] sm:$0xf] }
  0x8d   :  { %v2720_v56 = vrot.slane %v2718_v47, 5  ;;  %v2726_v57 = vrot.slane %v2724_v48, 5  ;;  %v2728_v58 = vshrl.u32 %v2619_v35, 16  ;;  %v2734_v61 = vshll.u32 %v2620_v46, 16  ;;  %v2629_v48 = vld [vmem:[%s7366_s1 + $0x2c] sm:$0x1] }
  0x8e   :  { %5215 = vmatprep.mubr.msk.bf16.mxu1 %vm991_vm1, %v4658_v50  ;;  %v876_v59 = vsel %vm5820_vm4, %v871_v51, %v875_v39  ;;  %v881_v60 = vrot.slane %v880_v52, 4  ;;  %v2739_v62 = vshrl.u32 %v2621_v49, 16  ;;  %v2742_v2 = vshll.u32 %v2621_v49, 16 }
  0x8f   :  { %v2721_v63 = vor.u32 %v2720_v56, %v2717_v55  ;;  %v2730_v0 = vrot.slane %v2728_v58, 4  ;;  %v2748_v3 = vshll.u32 %v2622_v54, 16  ;;  %v2736_v5 = vrot.slane %v2734_v61, 5 }
  0x90   :  { %v886_v4 = vsel %vm5820_vm4, %v881_v60, %v885_v53  ;;  %v2741_v6 = vrot.slane %v2739_v62, 4  ;;  %v2752_v7 = vshrl.u32 %v2622_v54, 16  ;;  %v2744_v11 = vrot.slane %v2742_v2, 5  ;;  %v2631_v2 = vld [vmem:[%s7366_s1 + $0x34] sm:$0xf] }
  0x91   :  { %v4659_v8 = vcombine.low %v876_v59, %v886_v4  ;;  %v2722_v9 = vrot.slane %v2721_v63, 4  ;;  %v2731_v10 = vor.u32 %v2730_v0, %v2726_v57  ;;  %v2750_v13 = vrot.slane %v2748_v3, 5  ;;  %v2630_v59 = vld [vmem:[%s7366_s1 + $0x30] sm:$0xf]  ;;  %v5685_v63 = vld [vmem:[%s7367_s0 + $0x18] sm:$0xf] }
  0x92   :  { %v2754_v14 = vrot.slane %v2752_v7, 4  ;;  %v2758_v15 = vshll.u32 %v2623_v1, 16  ;;  %v4693_v18 = vcombine.low %v5681_v16, %v5682_v17  ;;  %v2745_v22 = vor.u32 %v2744_v11, %v2741_v6  ;;  %v5686_v0 = vld [vmem:[%s7367_s0 + $0x1c] sm:$0xf]  ;;  %v5687_v6 = vld [vmem:[%s7367_s0 + $0x24] sm:$0xf] }
  0x93   :  { %5216 = vmatmul.mubr.msk.bf16.gmra.mrb[60].mxu1 %vm991_vm1, %v4659_v8  ;;  %v2727_v20 = vsel %vm5820_vm4, %v2722_v9, %v2726_v57  ;;  %v2732_v21 = vrot.slane %v2731_v10, 4  ;;  %v4694_v25 = vcombine.low %v5683_v23, %v5684_v24  ;;  %v2763_v30 = vshrl.u32 %v2624_v12, 16  ;;  %v5688_v7 = vld [vmem:[%s7367_s0 + $0x28] sm:$0xf]  ;;  %v2632_v9 = vld [vmem:[%s7366_s1 + $0x38] sm:$0x1] }
  0x94   :  { %v2755_v27 = vor.u32 %v2754_v14, %v2750_v13  ;;  %v2760_v28 = vrot.slane %v2758_v15, 5  ;;  %5221 = vmatprep.mubr.msk.bf16.mxu1 %vm991_vm1, %v4693_v18  ;;  %v2766_v31 = vshll.u32 %v2624_v12, 16  ;;  %v2746_v33 = vrot.slane %v2745_v22, 4  ;;  %v2633_v14 = vld [vmem:[%s7366_s1 + $0x3c] sm:$0xf] }
  0x95   :  { %v2737_v32 = vsel %vm5820_vm4, %v2732_v21, %v2736_v5  ;;  %v2772_v34 = vshll.u32 %v2625_v19, 16  ;;  %v2776_v35 = vshrl.u32 %v2625_v19, 16  ;;  %v2765_v39 = vrot.slane %v2763_v30, 4  ;;  %v2634_v23 = vld [vmem:[%s7366_s1 + $0x40] sm:$0xf] }
  0x96   :  { %v4827_v37 = vcombine.low %v2727_v20, %v2737_v32  ;;  %v2756_v38 = vrot.slane %v2755_v27, 4  ;;  %v2768_v40 = vrot.slane %v2766_v31, 5  ;;  %v2751_v42 = vsel %vm5820_vm4, %v2746_v33, %v2750_v13  ;;  %v2635_v32 = vld [vmem:[%s7366_s1 + $0x44] sm:$0x1] }
  0x97   :  { %v2774_v43 = vrot.slane %v2772_v34, 5  ;;  %v2778_v44 = vrot.slane %v2776_v35, 4  ;;  %v2782_v45 = vshll.u32 %v2626_v29, 16  ;;  %v2787_v49 = vshrl.u32 %v2627_v36, 16 }
  0x98   :  { %5353 = vmatprep.mubr.msk.bf16.mxu0 %vm991_vm1, %v4827_v37  ;;  %v2761_v46 = vsel %vm5820_vm4, %v2756_v38, %v2760_v28  ;;  %v2769_v47 = vor.u32 %v2768_v40, %v2765_v39  ;;  %v2790_v50 = vshll.u32 %v2627_v36, 16  ;;  %v2796_v54 = vshll.u32 %v2628_v41, 16 }
  0x99   :  { %v4828_v51 = vcombine.low %v2751_v42, %v2761_v46  ;;  %v2779_v52 = vor.u32 %v2778_v44, %v2774_v43  ;;  %v2784_v53 = vrot.slane %v2782_v45, 5  ;;  %v2789_v56 = vrot.slane %v2787_v49, 4  ;;  %v2636_v42 = vld [vmem:[%s7366_s1 + $0x48] sm:$0xf]  ;;  %v5689_v46 = vld [vmem:[%s7367_s0 + $0x30] sm:$0xf] }
  0x9a   :  { %v2770_v55 = vrot.slane %v2769_v47, 4  ;;  %v2792_v57 = vrot.slane %v2790_v50, 5  ;;  %v2800_v58 = vshrl.u32 %v2628_v41, 16  ;;  %v2798_v61 = vrot.slane %v2796_v54, 5  ;;  %v5690_v47 = vld [vmem:[%s7367_s0 + $0x34] sm:$0xf] }
  0x9b   :  { %5354 = vmatmul.mubr.msk.bf16.vlgmr.msra.gmra.mrb[0].mxu0 %vm991_vm1, %v4828_v51  ;;  %5222 = vmatmul.mubr.msk.bf16.vlgmr.msra.gmra.mrb[0].mxu1 %vm991_vm1, %v4694_v25  ;;  %v2780_v60 = vrot.slane %v2779_v52, 4  ;;  %v2806_v62 = vshll.u32 %v2629_v48, 16  ;;  %v4695_v1 = vcombine.low %v5685_v63, %v5686_v0  ;;  %v4696_v8 = vcombine.low %v5687_v6, %v5688_v7  ;;  %v2637_v49 = vld [vmem:[%s7366_s1 + $0x4c] sm:$0xf]  ;;  %v5692_v54 = vld [vmem:[%s7367_s0 + $0x40] sm:$0xf] }
  0x9c   :  { %v2775_v3 = vsel %vm5820_vm4, %v2770_v55, %v2774_v43  ;;  %v2793_v4 = vor.u32 %v2792_v57, %v2789_v56  ;;  %v2802_v5 = vrot.slane %v2800_v58, 4  ;;  %v2811_v12 = vshrl.u32 %v2630_v59, 16  ;;  %v2638_v58 = vld [vmem:[%s7366_s1 + $0x50] sm:$0x1]  ;;  %v2640_v6 = vld [vmem:[%s7366_s1 + $0x58] sm:$0xf] }
  0x9d   :  { %v2785_v10 = vsel %vm5820_vm4, %v2780_v60, %v2784_v53  ;;  %v2808_v11 = vrot.slane %v2806_v62, 5  ;;  %5225 = vmatprep.mubr.msk.bf16.mxu1 %vm991_vm1, %v4695_v1  ;;  %v2814_v13 = vshll.u32 %v2630_v59, 16  ;;  %v2820_v18 = vshll.u32 %v2631_v2, 16  ;;  %v5691_v53 = vld [vmem:[%s7367_s0 + $0x3c] sm:$0xf] }
  0x9e   :  { %v4829_v15 = vcombine.low %v2775_v3, %v2785_v10  ;;  %v2794_v16 = vrot.slane %v2793_v4, 4  ;;  %v2803_v17 = vor.u32 %v2802_v5, %v2798_v61  ;;  %v2813_v19 = vrot.slane %v2811_v12, 4  ;;  %v2639_v1 = vld [vmem:[%s7366_s1 + $0x54] sm:$0xf] }
  0x9f   :  { %v2816_v20 = vrot.slane %v2814_v13, 5  ;;  %v2824_v21 = vshrl.u32 %v2631_v2, 16  ;;  %v2830_v22 = vshll.u32 %v2632_v9, 16  ;;  %v2822_v27 = vrot.slane %v2820_v18, 5  ;;  %v2641_v13 = vld [vmem:[%s7366_s1 + $0x5c] sm:$0x1] }
  0xa0   :  { %5357 = vmatprep.mubr.msk.bf16.mxu0 %vm991_vm1, %v4829_v15  ;;  %v2799_v24 = vsel %vm5820_vm4, %v2794_v16, %v2798_v61  ;;  %v2804_v25 = vrot.slane %v2803_v17, 4  ;;  %v2835_v28 = vshrl.u32 %v2633_v14, 16  ;;  %v2838_v33 = vshll.u32 %v2633_v14, 16 }
  0xa1   :  { %v2817_v29 = vor.u32 %v2816_v20, %v2813_v19  ;;  %v2826_v30 = vrot.slane %v2824_v21, 4  ;;  %v2832_v31 = vrot.slane %v2830_v22, 5  ;;  %v2844_v36 = vshll.u32 %v2634_v23, 16 }
  0xa2   :  { %v2809_v34 = vsel %vm5820_vm4, %v2804_v25, %v2808_v11  ;;  %v2837_v35 = vrot.slane %v2835_v28, 4  ;;  %v2848_v37 = vshrl.u32 %v2634_v23, 16  ;;  %v2840_v41 = vrot.slane %v2838_v33, 5 }
  0xa3   :  { %v4830_v38 = vcombine.low %v2799_v24, %v2809_v34  ;;  %5226 = vmatmul.mubr.msk.bf16.gmra.mrb[4].mxu1 %vm991_vm1, %v4696_v8  ;;  %v2818_v39 = vrot.slane %v2817_v29, 4  ;;  %v2827_v40 = vor.u32 %v2826_v30, %v2822_v27  ;;  %v2846_v43 = vrot.slane %v2844_v36, 5  ;;  %v2642_v24 = vld [vmem:[%s7366_s1 + $0x60] sm:$0xf]  ;;  %v5693_v29 = vld [vmem:[%s7367_s0 + $0x48] sm:$0xf] }
  0xa4   :  { %v2850_v44 = vrot.slane %v2848_v37, 4  ;;  %v2854_v45 = vshll.u32 %v2635_v32, 16  ;;  %v4697_v48 = vcombine.low %v5689_v46, %v5690_v47  ;;  %v2841_v52 = vor.u32 %v2840_v41, %v2837_v35  ;;  %v5694_v30 = vld [vmem:[%s7367_s0 + $0x4c] sm:$0xf]  ;;  %v2643_v32 = vld [vmem:[%s7366_s1 + $0x64] sm:$0xf] }
  0xa5   :  { %5358 = vmatmul.mubr.msk.bf16.gmra.mrb[4].mxu0 %vm991_vm1, %v4830_v38  ;;  %v2823_v50 = vsel %vm5820_vm4, %v2818_v39, %v2822_v27  ;;  %v2828_v51 = vrot.slane %v2827_v40, 4  ;;  %v4698_v55 = vcombine.low %v5691_v53, %v5692_v54  ;;  %v2859_v59 = vshrl.u32 %v2636_v42, 16  ;;  %v5695_v36 = vld [vmem:[%s7367_s0 + $0x54] sm:$0xf]  ;;  %v5696_v37 = vld [vmem:[%s7367_s0 + $0x58] sm:$0xf] }
  0xa6   :  { %v2851_v56 = vor.u32 %v2850_v44, %v2846_v43  ;;  %v2856_v57 = vrot.slane %v2854_v45, 5  ;;  %5229 = vmatprep.mubr.msk.bf16.mxu1 %vm991_vm1, %v4697_v48  ;;  %v2862_v60 = vshll.u32 %v2636_v42, 16  ;;  %v2842_v62 = vrot.slane %v2841_v52, 4  ;;  %v2644_v39 = vld [vmem:[%s7366_s1 + $0x68] sm:$0x1] }
  0xa7   :  { %v2833_v61 = vsel %vm5820_vm4, %v2828_v51, %v2832_v31  ;;  %v2868_v63 = vshll.u32 %v2637_v49, 16  ;;  %v2872_v0 = vshrl.u32 %v2637_v49, 16  ;;  %v2861_v4 = vrot.slane %v2859_v59, 4  ;;  %v2645_v44 = vld [vmem:[%s7366_s1 + $0x6c] sm:$0xf] }
  0xa8   :  { %v4831_v2 = vcombine.low %v2823_v50, %v2833_v61  ;;  %v2852_v3 = vrot.slane %v2851_v56, 4  ;;  %v2864_v5 = vrot.slane %v2862_v60, 5  ;;  %v2847_v7 = vsel %vm5820_vm4, %v2842_v62, %v2846_v43  ;;  %v2646_v53 = vld [vmem:[%s7366_s1 + $0x70] sm:$0xf]  ;;  %v2647_v61 = vld [vmem:[%s7366_s1 + $0x74] sm:$0x1] }
  0xa9   :  { %v2870_v8 = vrot.slane %v2868_v63, 5  ;;  %v2874_v9 = vrot.slane %v2872_v0, 4  ;;  %v2878_v10 = vshll.u32 %v2638_v58, 16  ;;  %v2883_v14 = vshrl.u32 %v2639_v1, 16 }
  0xaa   :  { %5361 = vmatprep.mubr.msk.bf16.mxu0 %vm991_vm1, %v4831_v2  ;;  %v2857_v11 = vsel %vm5820_vm4, %v2852_v3, %v2856_v57  ;;  %v2865_v12 = vor.u32 %v2864_v5, %v2861_v4  ;;  %v2886_v15 = vshll.u32 %v2639_v1, 16  ;;  %v2892_v19 = vshll.u32 %v2640_v6, 16 }
  0xab   :  { %v4832_v16 = vcombine.low %v2847_v7, %v2857_v11  ;;  %5230 = vmatmul.mubr.msk.bf16.gmra.mrb[8].mxu1 %vm991_vm1, %v4698_v55  ;;  %v2875_v17 = vor.u32 %v2874_v9, %v2870_v8  ;;  %v2880_v18 = vrot.slane %v2878_v10, 5  ;;  %v2885_v21 = vrot.slane %v2883_v14, 4  ;;  %v2648_v7 = vld [vmem:[%s7366_s1 + $0x78] sm:$0xf]  ;;  %v5697_v11 = vld [vmem:[%s7367_s0 + $0x60] sm:$0xf] }
  0xac   :  { %v2866_v20 = vrot.slane %v2865_v12, 4  ;;  %v2888_v22 = vrot.slane %v2886_v15, 5  ;;  %v2896_v23 = vshrl.u32 %v2640_v6, 16  ;;  %v2894_v27 = vrot.slane %v2892_v19, 5  ;;  %v5698_v12 = vld [vmem:[%s7367_s0 + $0x64] sm:$0xf] }
  0xad   :  { %5362 = vmatmul.mubr.msk.bf16.gmra.mrb[8].mxu0 %vm991_vm1, %v4832_v16  ;;  %v2876_v25 = vrot.slane %v2875_v17, 4  ;;  %v2902_v28 = vshll.u32 %v2641_v13, 16  ;;  %v4699_v31 = vcombine.low %v5693_v29, %v5694_v30  ;;  %v4700_v38 = vcombine.low %v5695_v36, %v5696_v37  ;;  %v2649_v14 = vld [vmem:[%s7366_s1 + $0x7c] sm:$0xf]  ;;  %v5700_v19 = vld [vmem:[%s7367_s0 + $0x70] sm:$0xf] }
  0xae   :  { %v2871_v33 = vsel %vm5820_vm4, %v2866_v20, %v2870_v8  ;;  %v2889_v34 = vor.u32 %v2888_v22, %v2885_v21  ;;  %v2898_v35 = vrot.slane %v2896_v23, 4  ;;  %v2907_v42 = vshrl.u32 %v2642_v24, 16  ;;  %v2650_v23 = vld [vmem:[%s7366_s1 + $0x80] sm:$0x1]  ;;  %v2652_v36 = vld [vmem:[%s7366_s1 + $0x88] sm:$0xf] }
  0xaf   :  { %v2881_v40 = vsel %vm5820_vm4, %v2876_v25, %v2880_v18  ;;  %v2904_v41 = vrot.slane %v2902_v28, 5  ;;  %5233 = vmatprep.mubr.msk.bf16.mxu1 %vm991_vm1, %v4699_v31  ;;  %v2910_v43 = vshll.u32 %v2642_v24, 16  ;;  %v2916_v48 = vshll.u32 %v2643_v32, 16  ;;  %v5699_v18 = vld [vmem:[%s7367_s0 + $0x6c] sm:$0xf] }
  0xb0   :  { %v4833_v45 = vcombine.low %v2871_v33, %v2881_v40  ;;  %v2890_v46 = vrot.slane %v2889_v34, 4  ;;  %v2899_v47 = vor.u32 %v2898_v35, %v2894_v27  ;;  %v2909_v49 = vrot.slane %v2907_v42, 4  ;;  %v2651_v31 = vld [vmem:[%s7366_s1 + $0x84] sm:$0xf] }
  0xb1   :  { %v2912_v50 = vrot.slane %v2910_v43, 5  ;;  %v2920_v51 = vshrl.u32 %v2643_v32, 16  ;;  %v2926_v52 = vshll.u32 %v2644_v39, 16  ;;  %v2918_v56 = vrot.slane %v2916_v48, 5  ;;  %v2653_v43 = vld [vmem:[%s7366_s1 + $0x8c] sm:$0x1] }
  0xb2   :  { %5365 = vmatprep.mubr.msk.bf16.mxu0 %vm991_vm1, %v4833_v45  ;;  %v2895_v54 = vsel %vm5820_vm4, %v2890_v46, %v2894_v27  ;;  %v2900_v55 = vrot.slane %v2899_v47, 4  ;;  %v2931_v57 = vshrl.u32 %v2645_v44, 16  ;;  %v2934_v62 = vshll.u32 %v2645_v44, 16 }
  0xb3   :  { %5234 = vmatmul.mubr.msk.bf16.gmra.mrb[12].mxu1 %vm991_vm1, %v4700_v38  ;;  %v2913_v58 = vor.u32 %v2912_v50, %v2909_v49  ;;  %v2922_v59 = vrot.slane %v2920_v51, 4  ;;  %v2928_v60 = vrot.slane %v2926_v52, 5  ;;  %v2940_v1 = vshll.u32 %v2646_v53, 16 }
  0xb4   :  { %v2905_v63 = vsel %vm5820_vm4, %v2900_v55, %v2904_v41  ;;  %v2933_v0 = vrot.slane %v2931_v57, 4  ;;  %v2944_v2 = vshrl.u32 %v2646_v53, 16  ;;  %v2936_v6 = vrot.slane %v2934_v62, 5 }
  0xb5   :  { %v4834_v3 = vcombine.low %v2895_v54, %v2905_v63  ;;  %v2914_v4 = vrot.slane %v2913_v58, 4  ;;  %v2923_v5 = vor.u32 %v2922_v59, %v2918_v56  ;;  %v2942_v8 = vrot.slane %v2940_v1, 5  ;;  %v2654_v54 = vld [vmem:[%s7366_s1 + $0x90] sm:$0xf]  ;;  %v5701_v58 = vld [vmem:[%s7367_s0 + $0x78] sm:$0xf] }
  0xb6   :  { %v2946_v9 = vrot.slane %v2944_v2, 4  ;;  %v2950_v10 = vshll.u32 %v2647_v61, 16  ;;  %v4701_v13 = vcombine.low %v5697_v11, %v5698_v12  ;;  %v2937_v17 = vor.u32 %v2936_v6, %v2933_v0  ;;  %v5702_v59 = vld [vmem:[%s7367_s0 + $0x7c] sm:$0xf]  ;;  %v2655_v61 = vld [vmem:[%s7366_s1 + $0x94] sm:$0xf] }
  0xb7   :  { %5366 = vmatmul.mubr.msk.bf16.gmra.mrb[12].mxu0 %vm991_vm1, %v4834_v3  ;;  %v2919_v15 = vsel %vm5820_vm4, %v2914_v4, %v2918_v56  ;;  %v2924_v16 = vrot.slane %v2923_v5, 4  ;;  %v4702_v20 = vcombine.low %v5699_v18, %v5700_v19  ;;  %v2955_v24 = vshrl.u32 %v2648_v7, 16  ;;  %v5703_v1 = vld [vmem:[%s7367_s0 + $0x84] sm:$0xf]  ;;  %v5704_v2 = vld [vmem:[%s7367_s0 + $0x88] sm:$0xf] }
  0xb8   :  { %v2947_v21 = vor.u32 %v2946_v9, %v2942_v8  ;;  %v2952_v22 = vrot.slane %v2950_v10, 5  ;;  %5237 = vmatprep.mubr.msk.bf16.mxu1 %vm991_vm1, %v4701_v13  ;;  %v2958_v25 = vshll.u32 %v2648_v7, 16  ;;  %v2938_v28 = vrot.slane %v2937_v17, 4  ;;  %v2656_v4 = vld [vmem:[%s7366_s1 + $0x98] sm:$0x1] }
  0xb9   :  { %v2929_v27 = vsel %vm5820_vm4, %v2924_v16, %v2928_v60  ;;  %v2964_v29 = vshll.u32 %v2649_v14, 16  ;;  %v2968_v30 = vshrl.u32 %v2649_v14, 16  ;;  %v2957_v34 = vrot.slane %v2955_v24, 4  ;;  %v2657_v9 = vld [vmem:[%s7366_s1 + $0x9c] sm:$0xf] }
  0xba   :  { %v4835_v32 = vcombine.low %v2919_v15, %v2929_v27  ;;  %v2948_v33 = vrot.slane %v2947_v21, 4  ;;  %v2960_v35 = vrot.slane %v2958_v25, 5  ;;  %v2943_v37 = vsel %vm5820_vm4, %v2938_v28, %v2942_v8  ;;  %v2658_v18 = vld [vmem:[%s7366_s1 + $0xa0] sm:$0xf]  ;;  %v2659_v27 = vld [vmem:[%s7366_s1 + $0xa4] sm:$0x1] }
  0xbb   :  { %5238 = vmatmul.mubr.msk.bf16.gmra.mrb[16].mxu1 %vm991_vm1, %v4702_v20  ;;  %v2966_v38 = vrot.slane %v2964_v29, 5  ;;  %v2970_v39 = vrot.slane %v2968_v30, 4  ;;  %v2974_v40 = vshll.u32 %v2650_v23, 16  ;;  %v2979_v44 = vshrl.u32 %v2651_v31, 16 }
  0xbc   :  { %5369 = vmatprep.mubr.msk.bf16.mxu0 %vm991_vm1, %v4835_v32  ;;  %v2953_v41 = vsel %vm5820_vm4, %v2948_v33, %v2952_v22  ;;  %v2961_v42 = vor.u32 %v2960_v35, %v2957_v34  ;;  %v2982_v45 = vshll.u32 %v2651_v31, 16  ;;  %v2988_v49 = vshll.u32 %v2652_v36, 16 }
  0xbd   :  { %v4836_v46 = vcombine.low %v2943_v37, %v2953_v41  ;;  %v2971_v47 = vor.u32 %v2970_v39, %v2966_v38  ;;  %v2976_v48 = vrot.slane %v2974_v40, 5  ;;  %v2981_v51 = vrot.slane %v2979_v44, 4  ;;  %v2660_v37 = vld [vmem:[%s7366_s1 + $0xa8] sm:$0xf]  ;;  %v5705_v41 = vld [vmem:[%s7367_s0 + $0x90] sm:$0xf] }
  0xbe   :  { %v2962_v50 = vrot.slane %v2961_v42, 4  ;;  %v2984_v52 = vrot.slane %v2982_v45, 5  ;;  %v2992_v53 = vshrl.u32 %v2652_v36, 16  ;;  %v2990_v56 = vrot.slane %v2988_v49, 5  ;;  %v5706_v42 = vld [vmem:[%s7367_s0 + $0x94] sm:$0xf] }
  0xbf   :  { %5370 = vmatmul.mubr.msk.bf16.gmra.mrb[16].mxu0 %vm991_vm1, %v4836_v46  ;;  %v2972_v55 = vrot.slane %v2971_v47, 4  ;;  %v2998_v57 = vshll.u32 %v2653_v43, 16  ;;  %v4703_v60 = vcombine.low %v5701_v58, %v5702_v59  ;;  %v4704_v3 = vcombine.low %v5703_v1, %v5704_v2  ;;  %v2661_v44 = vld [vmem:[%s7366_s1 + $0xac] sm:$0xf]  ;;  %v5708_v49 = vld [vmem:[%s7367_s0 + $0xa0] sm:$0xf] }
  0xc0   :  { %v2967_v62 = vsel %vm5820_vm4, %v2962_v50, %v2966_v38  ;;  %v2985_v63 = vor.u32 %v2984_v52, %v2981_v51  ;;  %v2994_v0 = vrot.slane %v2992_v53, 4  ;;  %v3003_v7 = vshrl.u32 %v2654_v54, 16  ;;  %v2662_v53 = vld [vmem:[%s7366_s1 + $0xb0] sm:$0x1]  ;;  %v2664_v1 = vld [vmem:[%s7366_s1 + $0xb8] sm:$0xf] }
  0xc1   :  { %v2977_v5 = vsel %vm5820_vm4, %v2972_v55, %v2976_v48  ;;  %v3000_v6 = vrot.slane %v2998_v57, 5  ;;  %5241 = vmatprep.mubr.msk.bf16.mxu1 %vm991_vm1, %v4703_v60  ;;  %v3006_v8 = vshll.u32 %v2654_v54, 16  ;;  %v3012_v13 = vshll.u32 %v2655_v61, 16  ;;  %v5707_v48 = vld [vmem:[%s7367_s0 + $0x9c] sm:$0xf] }
  0xc2   :  { %v4837_v10 = vcombine.low %v2967_v62, %v2977_v5  ;;  %v2986_v11 = vrot.slane %v2985_v63, 4  ;;  %v2995_v12 = vor.u32 %v2994_v0, %v2990_v56  ;;  %v3005_v14 = vrot.slane %v3003_v7, 4  ;;  %v2663_v60 = vld [vmem:[%s7366_s1 + $0xb4] sm:$0xf] }
  0xc3   :  { %5242 = vmatmul.mubr.msk.bf16.gmra.mrb[20].mxu1 %vm991_vm1, %v4704_v3  ;;  %v3008_v15 = vrot.slane %v3006_v8, 5  ;;  %v3016_v16 = vshrl.u32 %v2655_v61, 16  ;;  %v3022_v17 = vshll.u32 %v2656_v4, 16  ;;  %v3014_v21 = vrot.slane %v3012_v13, 5  ;;  %v2665_v8 = vld [vmem:[%s7366_s1 + $0xbc] sm:$0x1] }
  0xc4   :  { %5373 = vmatprep.mubr.msk.bf16.mxu0 %vm991_vm1, %v4837_v10  ;;  %v2991_v19 = vsel %vm5820_vm4, %v2986_v11, %v2990_v56  ;;  %v2996_v20 = vrot.slane %v2995_v12, 4  ;;  %v3027_v22 = vshrl.u32 %v2657_v9, 16  ;;  %v3030_v28 = vshll.u32 %v2657_v9, 16 }
  0xc5   :  { %v3009_v23 = vor.u32 %v3008_v15, %v3005_v14  ;;  %v3018_v24 = vrot.slane %v3016_v16, 4  ;;  %v3024_v25 = vrot.slane %v3022_v17, 5  ;;  %v3036_v31 = vshll.u32 %v2658_v18, 16 }
  0xc6   :  { %v3001_v29 = vsel %vm5820_vm4, %v2996_v20, %v3000_v6  ;;  %v3029_v30 = vrot.slane %v3027_v22, 4  ;;  %v3040_v32 = vshrl.u32 %v2658_v18, 16  ;;  %v3032_v36 = vrot.slane %v3030_v28, 5 }
  0xc7   :  { %v4838_v33 = vcombine.low %v2991_v19, %v3001_v29  ;;  %v3010_v34 = vrot.slane %v3009_v23, 4  ;;  %v3019_v35 = vor.u32 %v3018_v24, %v3014_v21  ;;  %v3038_v38 = vrot.slane %v3036_v31, 5  ;;  %v2666_v19 = vld [vmem:[%s7366_s1 + $0xc0] sm:$0xf]  ;;  %v5709_v23 = vld [vmem:[%s7367_s0 + $0xa8] sm:$0xf] }
  0xc8   :  { %v3042_v39 = vrot.slane %v3040_v32, 4  ;;  %v3046_v40 = vshll.u32 %v2659_v27, 16  ;;  %v4705_v43 = vcombine.low %v5705_v41, %v5706_v42  ;;  %v3033_v47 = vor.u32 %v3032_v36, %v3029_v30  ;;  %v5710_v24 = vld [vmem:[%s7367_s0 + $0xac] sm:$0xf]  ;;  %v2667_v27 = vld [vmem:[%s7366_s1 + $0xc4] sm:$0xf] }
  0xc9   :  { %5374 = vmatmul.mubr.msk.bf16.gmra.mrb[20].mxu0 %vm991_vm1, %v4838_v33  ;;  %v3015_v45 = vsel %vm5820_vm4, %v3010_v34, %v3014_v21  ;;  %v3020_v46 = vrot.slane %v3019_v35, 4  ;;  %v4706_v50 = vcombine.low %v5707_v48, %v5708_v49  ;;  %v3051_v54 = vshrl.u32 %v2660_v37, 16  ;;  %v5711_v31 = vld [vmem:[%s7367_s0 + $0xb4] sm:$0xf]  ;;  %v5712_v32 = vld [vmem:[%s7367_s0 + $0xb8] sm:$0xf] }
  0xca   :  { %v3043_v51 = vor.u32 %v3042_v39, %v3038_v38  ;;  %v3048_v52 = vrot.slane %v3046_v40, 5  ;;  %5245 = vmatprep.mubr.msk.bf16.mxu1 %vm991_vm1, %v4705_v43  ;;  %v3054_v55 = vshll.u32 %v2660_v37, 16  ;;  %v3034_v57 = vrot.slane %v3033_v47, 4  ;;  %v2668_v34 = vld [vmem:[%s7366_s1 + $0xc8] sm:$0x1] }
  0xcb   :  { %v3025_v56 = vsel %vm5820_vm4, %v3020_v46, %v3024_v25  ;;  %5246 = vmatmul.mubr.msk.bf16.gmra.mrb[24].mxu1 %vm991_vm1, %v4706_v50  ;;  %v3060_v58 = vshll.u32 %v2661_v44, 16  ;;  %v3064_v59 = vshrl.u32 %v2661_v44, 16  ;;  %v3053_v63 = vrot.slane %v3051_v54, 4  ;;  %v2669_v39 = vld [vmem:[%s7366_s1 + $0xcc] sm:$0xf] }
  0xcc   :  { %v4839_v61 = vcombine.low %v3015_v45, %v3025_v56  ;;  %v3044_v62 = vrot.slane %v3043_v51, 4  ;;  %v3056_v0 = vrot.slane %v3054_v55, 5  ;;  %v3039_v2 = vsel %vm5820_vm4, %v3034_v57, %v3038_v38  ;;  %v2670_v48 = vld [vmem:[%s7366_s1 + $0xd0] sm:$0xf]  ;;  %v2671_v56 = vld [vmem:[%s7366_s1 + $0xd4] sm:$0x1] }
  0xcd   :  { %v3062_v3 = vrot.slane %v3060_v58, 5  ;;  %v3066_v4 = vrot.slane %v3064_v59, 4  ;;  %v3070_v5 = vshll.u32 %v2662_v53, 16  ;;  %v3075_v9 = vshrl.u32 %v2663_v60, 16 }
  0xce   :  { %5377 = vmatprep.mubr.msk.bf16.mxu0 %vm991_vm1, %v4839_v61  ;;  %v3049_v6 = vsel %vm5820_vm4, %v3044_v62, %v3048_v52  ;;  %v3057_v7 = vor.u32 %v3056_v0, %v3053_v63  ;;  %v3078_v10 = vshll.u32 %v2663_v60, 16  ;;  %v3084_v14 = vshll.u32 %v2664_v1, 16 }
  0xcf   :  { %v4840_v11 = vcombine.low %v3039_v2, %v3049_v6  ;;  %v3067_v12 = vor.u32 %v3066_v4, %v3062_v3  ;;  %v3072_v13 = vrot.slane %v3070_v5, 5  ;;  %v3077_v16 = vrot.slane %v3075_v9, 4  ;;  %v2672_v2 = vld [vmem:[%s7366_s1 + $0xd8] sm:$0xf]  ;;  %v5713_v6 = vld [vmem:[%s7367_s0 + $0xc0] sm:$0xf] }
  0xd0   :  { %v3058_v15 = vrot.slane %v3057_v7, 4  ;;  %v3080_v17 = vrot.slane %v3078_v10, 5  ;;  %v3088_v18 = vshrl.u32 %v2664_v1, 16  ;;  %v3086_v21 = vrot.slane %v3084_v14, 5  ;;  %v5714_v7 = vld [vmem:[%s7367_s0 + $0xc4] sm:$0xf] }
  0xd1   :  { %5378 = vmatmul.mubr.msk.bf16.gmra.mrb[24].mxu0 %vm991_vm1, %v4840_v11  ;;  %v3068_v20 = vrot.slane %v3067_v12, 4  ;;  %v3094_v22 = vshll.u32 %v2665_v8, 16  ;;  %v4707_v25 = vcombine.low %v5709_v23, %v5710_v24  ;;  %v4708_v33 = vcombine.low %v5711_v31, %v5712_v32  ;;  %v2673_v9 = vld [vmem:[%s7366_s1 + $0xdc] sm:$0xf]  ;;  %v5716_v14 = vld [vmem:[%s7367_s0 + $0xd0] sm:$0xf] }
  0xd2   :  { %v3063_v28 = vsel %vm5820_vm4, %v3058_v15, %v3062_v3  ;;  %v3081_v29 = vor.u32 %v3080_v17, %v3077_v16  ;;  %v3090_v30 = vrot.slane %v3088_v18, 4  ;;  %v3099_v37 = vshrl.u32 %v2666_v19, 16  ;;  %v2674_v18 = vld [vmem:[%s7366_s1 + $0xe0] sm:$0x1]  ;;  %v2676_v31 = vld [vmem:[%s7366_s1 + $0xe8] sm:$0xf] }
  0xd3   :  { %v3073_v35 = vsel %vm5820_vm4, %v3068_v20, %v3072_v13  ;;  %v3096_v36 = vrot.slane %v3094_v22, 5  ;;  %5249 = vmatprep.mubr.msk.bf16.mxu1 %vm991_vm1, %v4707_v25  ;;  %v3102_v38 = vshll.u32 %v2666_v19, 16  ;;  %v3108_v43 = vshll.u32 %v2667_v27, 16  ;;  %v5715_v13 = vld [vmem:[%s7367_s0 + $0xcc] sm:$0xf] }
  0xd4   :  { %v4841_v40 = vcombine.low %v3063_v28, %v3073_v35  ;;  %v3082_v41 = vrot.slane %v3081_v29, 4  ;;  %v3091_v42 = vor.u32 %v3090_v30, %v3086_v21  ;;  %5250 = vmatmul.mubr.msk.bf16.gmra.mrb[28].mxu1 %vm991_vm1, %v4708_v33  ;;  %v3101_v44 = vrot.slane %v3099_v37, 4  ;;  %v2675_v25 = vld [vmem:[%s7366_s1 + $0xe4] sm:$0xf] }
  0xd5   :  { %v3104_v45 = vrot.slane %v3102_v38, 5  ;;  %v3112_v46 = vshrl.u32 %v2667_v27, 16  ;;  %v3118_v47 = vshll.u32 %v2668_v34, 16  ;;  %v3110_v51 = vrot.slane %v3108_v43, 5  ;;  %v2677_v38 = vld [vmem:[%s7366_s1 + $0xec] sm:$0x1] }
  0xd6   :  { %5381 = vmatprep.mubr.msk.bf16.mxu0 %vm991_vm1, %v4841_v40  ;;  %v3087_v49 = vsel %vm5820_vm4, %v3082_v41, %v3086_v21  ;;  %v3092_v50 = vrot.slane %v3091_v42, 4  ;;  %v3123_v52 = vshrl.u32 %v2669_v39, 16  ;;  %v3126_v57 = vshll.u32 %v2669_v39, 16 }
  0xd7   :  { %v3105_v53 = vor.u32 %v3104_v45, %v3101_v44  ;;  %v3114_v54 = vrot.slane %v3112_v46, 4  ;;  %v3120_v55 = vrot.slane %v3118_v47, 5  ;;  %v3132_v60 = vshll.u32 %v2670_v48, 16 }
  0xd8   :  { %v3097_v58 = vsel %vm5820_vm4, %v3092_v50, %v3096_v36  ;;  %v3125_v59 = vrot.slane %v3123_v52, 4  ;;  %v3136_v61 = vshrl.u32 %v2670_v48, 16  ;;  %v3128_v1 = vrot.slane %v3126_v57, 5 }
  0xd9   :  { %v4842_v62 = vcombine.low %v3087_v49, %v3097_v58  ;;  %v3106_v63 = vrot.slane %v3105_v53, 4  ;;  %v3115_v0 = vor.u32 %v3114_v54, %v3110_v51  ;;  %v3134_v3 = vrot.slane %v3132_v60, 5  ;;  %v2678_v49 = vld [vmem:[%s7366_s1 + $0xf0] sm:$0xf]  ;;  %v5717_v53 = vld [vmem:[%s7367_s0 + $0xd8] sm:$0xf] }
  0xda   :  { %v3138_v4 = vrot.slane %v3136_v61, 4  ;;  %v3142_v5 = vshll.u32 %v2671_v56, 16  ;;  %v4709_v8 = vcombine.low %v5713_v6, %v5714_v7  ;;  %v3129_v12 = vor.u32 %v3128_v1, %v3125_v59  ;;  %v5718_v54 = vld [vmem:[%s7367_s0 + $0xdc] sm:$0xf]  ;;  %v2679_v56 = vld [vmem:[%s7366_s1 + $0xf4] sm:$0xf] }
  0xdb   :  { %5382 = vmatmul.mubr.msk.bf16.gmra.mrb[28].mxu0 %vm991_vm1, %v4842_v62  ;;  %v3111_v10 = vsel %vm5820_vm4, %v3106_v63, %v3110_v51  ;;  %v3116_v11 = vrot.slane %v3115_v0, 4  ;;  %v4710_v15 = vcombine.low %v5715_v13, %v5716_v14  ;;  %v3147_v19 = vshrl.u32 %v2672_v2, 16  ;;  %v5719_v60 = vld [vmem:[%s7367_s0 + $0xe4] sm:$0xf]  ;;  %v5720_v61 = vld [vmem:[%s7367_s0 + $0xe8] sm:$0xf] }
  0xdc   :  { %v3139_v16 = vor.u32 %v3138_v4, %v3134_v3  ;;  %v3144_v17 = vrot.slane %v3142_v5, 5  ;;  %5253 = vmatprep.mubr.msk.bf16.mxu1 %vm991_vm1, %v4709_v8  ;;  %v3150_v20 = vshll.u32 %v2672_v2, 16  ;;  %v3130_v22 = vrot.slane %v3129_v12, 4  ;;  %v2680_v63 = vld [vmem:[%s7366_s1 + $0xf8] sm:$0x1] }
  0xdd   :  { %v3121_v21 = vsel %vm5820_vm4, %v3116_v11, %v3120_v55  ;;  %5254 = vmatmul.mubr.msk.bf16.gmra.mrb[32].mxu1 %vm991_vm1, %v4710_v15  ;;  %v3156_v23 = vshll.u32 %v2673_v9, 16  ;;  %v3160_v24 = vshrl.u32 %v2673_v9, 16  ;;  %v3149_v29 = vrot.slane %v3147_v19, 4  ;;  %v2681_v4 = vld [vmem:[%s7366_s1 + $0xfc] sm:$0xf] }
  0xde   :  { %v4843_v27 = vcombine.low %v3111_v10, %v3121_v21  ;;  %v3140_v28 = vrot.slane %v3139_v16, 4  ;;  %v3152_v30 = vrot.slane %v3150_v20, 5  ;;  %v3135_v32 = vsel %vm5820_vm4, %v3130_v22, %v3134_v3  ;;  %v2682_v13 = vld [vmem:[%s7366_s1 + $0x100] sm:$0xf]  ;;  %v2683_v21 = vld [vmem:[%s7366_s1 + $0x104] sm:$0x1] }
  0xdf   :  { %v3158_v33 = vrot.slane %v3156_v23, 5  ;;  %v3162_v34 = vrot.slane %v3160_v24, 4  ;;  %v3166_v35 = vshll.u32 %v2674_v18, 16  ;;  %v3171_v39 = vshrl.u32 %v2675_v25, 16 }
  0xe0   :  { %5385 = vmatprep.mubr.msk.bf16.mxu0 %vm991_vm1, %v4843_v27  ;;  %v3145_v36 = vsel %vm5820_vm4, %v3140_v28, %v3144_v17  ;;  %v3153_v37 = vor.u32 %v3152_v30, %v3149_v29  ;;  %v3174_v40 = vshll.u32 %v2675_v25, 16  ;;  %v3180_v44 = vshll.u32 %v2676_v31, 16 }
  0xe1   :  { %v4844_v41 = vcombine.low %v3135_v32, %v3145_v36  ;;  %v3163_v42 = vor.u32 %v3162_v34, %v3158_v33  ;;  %v3168_v43 = vrot.slane %v3166_v35, 5  ;;  %v3173_v46 = vrot.slane %v3171_v39, 4  ;;  %v2684_v32 = vld [vmem:[%s7366_s1 + $0x108] sm:$0xf]  ;;  %v5721_v36 = vld [vmem:[%s7367_s0 + $0xf0] sm:$0xf] }
  0xe2   :  { %v3154_v45 = vrot.slane %v3153_v37, 4  ;;  %v3176_v47 = vrot.slane %v3174_v40, 5  ;;  %v3184_v48 = vshrl.u32 %v2676_v31, 16  ;;  %v3182_v51 = vrot.slane %v3180_v44, 5  ;;  %v5722_v37 = vld [vmem:[%s7367_s0 + $0xf4] sm:$0xf] }
  0xe3   :  { %5386 = vmatmul.mubr.msk.bf16.gmra.mrb[32].mxu0 %vm991_vm1, %v4844_v41  ;;  %v3164_v50 = vrot.slane %v3163_v42, 4  ;;  %v3190_v52 = vshll.u32 %v2677_v38, 16  ;;  %v4711_v55 = vcombine.low %v5717_v53, %v5718_v54  ;;  %v4712_v62 = vcombine.low %v5719_v60, %v5720_v61  ;;  %v2685_v39 = vld [vmem:[%s7366_s1 + $0x10c] sm:$0xf]  ;;  %v5724_v44 = vld [vmem:[%s7367_s0 + $0x100] sm:$0xf] }
  0xe4   :  { %v3159_v57 = vsel %vm5820_vm4, %v3154_v45, %v3158_v33  ;;  %v3177_v58 = vor.u32 %v3176_v47, %v3173_v46  ;;  %v3186_v59 = vrot.slane %v3184_v48, 4  ;;  %v3195_v2 = vshrl.u32 %v2678_v49, 16  ;;  %v2686_v48 = vld [vmem:[%s7366_s1 + $0x110] sm:$0x1]  ;;  %v2688_v60 = vld [vmem:[%s7366_s1 + $0x118] sm:$0xf] }
  0xe5   :  { %v3169_v0 = vsel %vm5820_vm4, %v3164_v50, %v3168_v43  ;;  %v3192_v1 = vrot.slane %v3190_v52, 5  ;;  %5257 = vmatprep.mubr.msk.bf16.mxu1 %vm991_vm1, %v4711_v55  ;;  %v3198_v3 = vshll.u32 %v2678_v49, 16  ;;  %v3204_v8 = vshll.u32 %v2679_v56, 16  ;;  %v5723_v43 = vld [vmem:[%s7367_s0 + $0xfc] sm:$0xf] }
  0xe6   :  { %v4845_v5 = vcombine.low %v3159_v57, %v3169_v0  ;;  %v3178_v6 = vrot.slane %v3177_v58, 4  ;;  %v3187_v7 = vor.u32 %v3186_v59, %v3182_v51  ;;  %5258 = vmatmul.mubr.msk.bf16.gmra.mrb[36].mxu1 %vm991_vm1, %v4712_v62  ;;  %v3197_v9 = vrot.slane %v3195_v2, 4  ;;  %v2687_v55 = vld [vmem:[%s7366_s1 + $0x114] sm:$0xf] }
  0xe7   :  { %v3200_v10 = vrot.slane %v3198_v3, 5  ;;  %v3208_v11 = vshrl.u32 %v2679_v56, 16  ;;  %v3214_v12 = vshll.u32 %v2680_v63, 16  ;;  %v3206_v16 = vrot.slane %v3204_v8, 5  ;;  %v2689_v3 = vld [vmem:[%s7366_s1 + $0x11c] sm:$0x1] }
  0xe8   :  { %5389 = vmatprep.mubr.msk.bf16.mxu0 %vm991_vm1, %v4845_v5  ;;  %v3183_v14 = vsel %vm5820_vm4, %v3178_v6, %v3182_v51  ;;  %v3188_v15 = vrot.slane %v3187_v7, 4  ;;  %v3219_v17 = vshrl.u32 %v2681_v4, 16  ;;  %v3222_v22 = vshll.u32 %v2681_v4, 16 }
  0xe9   :  { %v3201_v18 = vor.u32 %v3200_v10, %v3197_v9  ;;  %v3210_v19 = vrot.slane %v3208_v11, 4  ;;  %v3216_v20 = vrot.slane %v3214_v12, 5  ;;  %v3228_v25 = vshll.u32 %v2682_v13, 16 }
  0xea   :  { %v3193_v23 = vsel %vm5820_vm4, %v3188_v15, %v3192_v1  ;;  %v3221_v24 = vrot.slane %v3219_v17, 4  ;;  %v3232_v27 = vshrl.u32 %v2682_v13, 16  ;;  %v3224_v31 = vrot.slane %v3222_v22, 5 }
  0xeb   :  { %v4846_v28 = vcombine.low %v3183_v14, %v3193_v23  ;;  %v3202_v29 = vrot.slane %v3201_v18, 4  ;;  %v3211_v30 = vor.u32 %v3210_v19, %v3206_v16  ;;  %v3230_v33 = vrot.slane %v3228_v25, 5  ;;  %v2690_v14 = vld [vmem:[%s7366_s1 + $0x120] sm:$0xf]  ;;  %v5725_v18 = vld [vmem:[%s7367_s0 + $0x108] sm:$0xf] }
  0xec   :  { %v3234_v34 = vrot.slane %v3232_v27, 4  ;;  %v3238_v35 = vshll.u32 %v2683_v21, 16  ;;  %v4713_v38 = vcombine.low %v5721_v36, %v5722_v37  ;;  %v3225_v42 = vor.u32 %v3224_v31, %v3221_v24  ;;  %v5726_v19 = vld [vmem:[%s7367_s0 + $0x10c] sm:$0xf]  ;;  %v2691_v21 = vld [vmem:[%s7366_s1 + $0x124] sm:$0xf] }
  0xed   :  { %5390 = vmatmul.mubr.msk.bf16.gmra.mrb[36].mxu0 %vm991_vm1, %v4846_v28  ;;  %v3207_v40 = vsel %vm5820_vm4, %v3202_v29, %v3206_v16  ;;  %v3212_v41 = vrot.slane %v3211_v30, 4  ;;  %v4714_v45 = vcombine.low %v5723_v43, %v5724_v44  ;;  %v3243_v49 = vshrl.u32 %v2684_v32, 16  ;;  %v5727_v25 = vld [vmem:[%s7367_s0 + $0x114] sm:$0xf]  ;;  %v5728_v27 = vld [vmem:[%s7367_s0 + $0x118] sm:$0xf] }
  0xee   :  { %v3235_v46 = vor.u32 %v3234_v34, %v3230_v33  ;;  %v3240_v47 = vrot.slane %v3238_v35, 5  ;;  %5261 = vmatprep.mubr.msk.bf16.mxu1 %vm991_vm1, %v4713_v38  ;;  %v3246_v50 = vshll.u32 %v2684_v32, 16  ;;  %v3226_v52 = vrot.slane %v3225_v42, 4  ;;  %v2692_v29 = vld [vmem:[%s7366_s1 + $0x128] sm:$0x1] }
  0xef   :  { %v3217_v51 = vsel %vm5820_vm4, %v3212_v41, %v3216_v20  ;;  %5262 = vmatmul.mubr.msk.bf16.gmra.mrb[40].mxu1 %vm991_vm1, %v4714_v45  ;;  %v3252_v53 = vshll.u32 %v2685_v39, 16  ;;  %v3256_v54 = vshrl.u32 %v2685_v39, 16  ;;  %v3245_v58 = vrot.slane %v3243_v49, 4  ;;  %v2693_v34 = vld [vmem:[%s7366_s1 + $0x12c] sm:$0xf] }
  0xf0   :  { %v4847_v56 = vcombine.low %v3207_v40, %v3217_v51  ;;  %v3236_v57 = vrot.slane %v3235_v46, 4  ;;  %v3248_v59 = vrot.slane %v3246_v50, 5  ;;  %v3231_v61 = vsel %vm5820_vm4, %v3226_v52, %v3230_v33  ;;  %v2694_v43 = vld [vmem:[%s7366_s1 + $0x130] sm:$0xf]  ;;  %v2695_v51 = vld [vmem:[%s7366_s1 + $0x134] sm:$0x1] }
  0xf1   :  { %v3254_v62 = vrot.slane %v3252_v53, 5  ;;  %v3258_v63 = vrot.slane %v3256_v54, 4  ;;  %v3262_v0 = vshll.u32 %v2686_v48, 16  ;;  %v3267_v4 = vshrl.u32 %v2687_v55, 16 }
  0xf2   :  { %5393 = vmatprep.mubr.msk.bf16.mxu0 %vm991_vm1, %v4847_v56  ;;  %v3241_v1 = vsel %vm5820_vm4, %v3236_v57, %v3240_v47  ;;  %v3249_v2 = vor.u32 %v3248_v59, %v3245_v58  ;;  %v3270_v5 = vshll.u32 %v2687_v55, 16  ;;  %v3276_v9 = vshll.u32 %v2688_v60, 16 }
  0xf3   :  { %v4848_v6 = vcombine.low %v3231_v61, %v3241_v1  ;;  %v3259_v7 = vor.u32 %v3258_v63, %v3254_v62  ;;  %v3264_v8 = vrot.slane %v3262_v0, 5  ;;  %v3269_v11 = vrot.slane %v3267_v4, 4  ;;  %v2696_v61 = vld [vmem:[%s7366_s1 + $0x138] sm:$0xf]  ;;  %v5729_v1 = vld [vmem:[%s7367_s0 + $0x120] sm:$0xf] }
  0xf4   :  { %v3250_v10 = vrot.slane %v3249_v2, 4  ;;  %v3272_v12 = vrot.slane %v3270_v5, 5  ;;  %v3280_v13 = vshrl.u32 %v2688_v60, 16  ;;  %v3278_v16 = vrot.slane %v3276_v9, 5  ;;  %v5730_v2 = vld [vmem:[%s7367_s0 + $0x124] sm:$0xf] }
  0xf5   :  { %5394 = vmatmul.mubr.msk.bf16.gmra.mrb[40].mxu0 %vm991_vm1, %v4848_v6  ;;  %v3260_v15 = vrot.slane %v3259_v7, 4  ;;  %v3286_v17 = vshll.u32 %v2689_v3, 16  ;;  %v4715_v20 = vcombine.low %v5725_v18, %v5726_v19  ;;  %v4716_v28 = vcombine.low %v5727_v25, %v5728_v27  ;;  %v2697_v4 = vld [vmem:[%s7366_s1 + $0x13c] sm:$0xf]  ;;  %v5732_v9 = vld [vmem:[%s7367_s0 + $0x130] sm:$0xf] }
  0xf6   :  { %v3255_v22 = vsel %vm5820_vm4, %v3250_v10, %v3254_v62  ;;  %v3273_v23 = vor.u32 %v3272_v12, %v3269_v11  ;;  %v3282_v24 = vrot.slane %v3280_v13, 4  ;;  %v3291_v32 = vshrl.u32 %v2690_v14, 16  ;;  %v2698_v13 = vld [vmem:[%s7366_s1 + $0x140] sm:$0x1]  ;;  %v2700_v25 = vld [vmem:[%s7366_s1 + $0x148] sm:$0xf] }
  0xf7   :  { %v3265_v30 = vsel %vm5820_vm4, %v3260_v15, %v3264_v8  ;;  %v3288_v31 = vrot.slane %v3286_v17, 5  ;;  %5265 = vmatprep.mubr.msk.bf16.mxu1 %vm991_vm1, %v4715_v20  ;;  %v3294_v33 = vshll.u32 %v2690_v14, 16  ;;  %v3300_v38 = vshll.u32 %v2691_v21, 16  ;;  %v5731_v8 = vld [vmem:[%s7367_s0 + $0x12c] sm:$0xf] }
  0xf8   :  { %v4849_v35 = vcombine.low %v3255_v22, %v3265_v30  ;;  %v3274_v36 = vrot.slane %v3273_v23, 4  ;;  %v3283_v37 = vor.u32 %v3282_v24, %v3278_v16  ;;  %5266 = vmatmul.mubr.msk.bf16.gmra.mrb[44].mxu1 %vm991_vm1, %v4716_v28  ;;  %v3293_v39 = vrot.slane %v3291_v32, 4  ;;  %v2699_v20 = vld [vmem:[%s7366_s1 + $0x144] sm:$0xf] }
  0xf9   :  { %v3296_v40 = vrot.slane %v3294_v33, 5  ;;  %v3304_v41 = vshrl.u32 %v2691_v21, 16  ;;  %v3310_v42 = vshll.u32 %v2692_v29, 16  ;;  %v3302_v46 = vrot.slane %v3300_v38, 5  ;;  %v2701_v33 = vld [vmem:[%s7366_s1 + $0x14c] sm:$0x1] }
  0xfa   :  { %5397 = vmatprep.mubr.msk.bf16.mxu0 %vm991_vm1, %v4849_v35  ;;  %v3279_v44 = vsel %vm5820_vm4, %v3274_v36, %v3278_v16  ;;  %v3284_v45 = vrot.slane %v3283_v37, 4  ;;  %v3315_v47 = vshrl.u32 %v2693_v34, 16  ;;  %v3318_v52 = vshll.u32 %v2693_v34, 16 }
  0xfb   :  { %v3297_v48 = vor.u32 %v3296_v40, %v3293_v39  ;;  %v3306_v49 = vrot.slane %v3304_v41, 4  ;;  %v3312_v50 = vrot.slane %v3310_v42, 5  ;;  %v3324_v55 = vshll.u32 %v2694_v43, 16 }
  0xfc   :  { %v3289_v53 = vsel %vm5820_vm4, %v3284_v45, %v3288_v31  ;;  %v3317_v54 = vrot.slane %v3315_v47, 4  ;;  %v3328_v56 = vshrl.u32 %v2694_v43, 16  ;;  %v3320_v60 = vrot.slane %v3318_v52, 5 }
  0xfd   :  { %v4850_v57 = vcombine.low %v3279_v44, %v3289_v53  ;;  %v3298_v58 = vrot.slane %v3297_v48, 4  ;;  %v3307_v59 = vor.u32 %v3306_v49, %v3302_v46  ;;  %v3326_v62 = vrot.slane %v3324_v55, 5  ;;  %v2702_v44 = vld [vmem:[%s7366_s1 + $0x150] sm:$0xf]  ;;  %v5733_v48 = vld [vmem:[%s7367_s0 + $0x138] sm:$0xf] }
  0xfe   :  { %v3330_v63 = vrot.slane %v3328_v56, 4  ;;  %v3334_v0 = vshll.u32 %v2695_v51, 16  ;;  %v4717_v3 = vcombine.low %v5729_v1, %v5730_v2  ;;  %v3321_v7 = vor.u32 %v3320_v60, %v3317_v54  ;;  %v5734_v49 = vld [vmem:[%s7367_s0 + $0x13c] sm:$0xf]  ;;  %v2703_v51 = vld [vmem:[%s7366_s1 + $0x154] sm:$0xf] }
  0xff   :  { %5398 = vmatmul.mubr.msk.bf16.gmra.mrb[44].mxu0 %vm991_vm1, %v4850_v57  ;;  %v3303_v5 = vsel %vm5820_vm4, %v3298_v58, %v3302_v46  ;;  %v3308_v6 = vrot.slane %v3307_v59, 4  ;;  %v4718_v10 = vcombine.low %v5731_v8, %v5732_v9  ;;  %v3339_v14 = vshrl.u32 %v2696_v61, 16  ;;  %v5735_v55 = vld [vmem:[%s7367_s0 + $0x144] sm:$0xf]  ;;  %v5736_v56 = vld [vmem:[%s7367_s0 + $0x148] sm:$0xf] }
 0x100   :  { %v3331_v11 = vor.u32 %v3330_v63, %v3326_v62  ;;  %v3336_v12 = vrot.slane %v3334_v0, 5  ;;  %5269 = vmatprep.mubr.msk.bf16.mxu1 %vm991_vm1, %v4717_v3  ;;  %v3342_v15 = vshll.u32 %v2696_v61, 16  ;;  %v3322_v17 = vrot.slane %v3321_v7, 4  ;;  %v2704_v58 = vld [vmem:[%s7366_s1 + $0x158] sm:$0x1] }
 0x101   :  { %v3313_v16 = vsel %vm5820_vm4, %v3308_v6, %v3312_v50  ;;  %5270 = vmatmul.mubr.msk.bf16.gmra.mrb[48].mxu1 %vm991_vm1, %v4718_v10  ;;  %v3348_v18 = vshll.u32 %v2697_v4, 16  ;;  %v3352_v19 = vshrl.u32 %v2697_v4, 16  ;;  %v3341_v23 = vrot.slane %v3339_v14, 4  ;;  %v2705_v63 = vld [vmem:[%s7366_s1 + $0x15c] sm:$0xf] }
 0x102   :  { %v4851_v21 = vcombine.low %v3303_v5, %v3313_v16  ;;  %v3332_v22 = vrot.slane %v3331_v11, 4  ;;  %v3344_v24 = vrot.slane %v3342_v15, 5  ;;  %v3327_v27 = vsel %vm5820_vm4, %v3322_v17, %v3326_v62  ;;  %v2706_v8 = vld [vmem:[%s7366_s1 + $0x160] sm:$0xf]  ;;  %v2707_v16 = vld [vmem:[%s7366_s1 + $0x164] sm:$0x1] }
 0x103   :  { %v3350_v28 = vrot.slane %v3348_v18, 5  ;;  %v3354_v29 = vrot.slane %v3352_v19, 4  ;;  %v3358_v30 = vshll.u32 %v2698_v13, 16  ;;  %v3363_v34 = vshrl.u32 %v2699_v20, 16 }
 0x104   :  { %5401 = vmatprep.mubr.msk.bf16.mxu0 %vm991_vm1, %v4851_v21  ;;  %v3337_v31 = vsel %vm5820_vm4, %v3332_v22, %v3336_v12  ;;  %v3345_v32 = vor.u32 %v3344_v24, %v3341_v23  ;;  %v3366_v35 = vshll.u32 %v2699_v20, 16  ;;  %v3372_v39 = vshll.u32 %v2700_v25, 16 }
 0x105   :  { %v4852_v36 = vcombine.low %v3327_v27, %v3337_v31  ;;  %v3355_v37 = vor.u32 %v3354_v29, %v3350_v28  ;;  %v3360_v38 = vrot.slane %v3358_v30, 5  ;;  %v3365_v41 = vrot.slane %v3363_v34, 4  ;;  %v2708_v27 = vld [vmem:[%s7366_s1 + $0x168] sm:$0xf]  ;;  %v5737_v31 = vld [vmem:[%s7367_s0 + $0x150] sm:$0xf] }
 0x106   :  { %v3346_v40 = vrot.slane %v3345_v32, 4  ;;  %v3368_v42 = vrot.slane %v3366_v35, 5  ;;  %v3376_v43 = vshrl.u32 %v2700_v25, 16  ;;  %v3374_v46 = vrot.slane %v3372_v39, 5  ;;  %v5738_v32 = vld [vmem:[%s7367_s0 + $0x154] sm:$0xf] }
 0x107   :  { %5402 = vmatmul.mubr.msk.bf16.gmra.mrb[48].mxu0 %vm991_vm1, %v4852_v36  ;;  %v3356_v45 = vrot.slane %v3355_v37, 4  ;;  %v3382_v47 = vshll.u32 %v2701_v33, 16  ;;  %v4719_v50 = vcombine.low %v5733_v48, %v5734_v49  ;;  %v4720_v57 = vcombine.low %v5735_v55, %v5736_v56  ;;  %v2709_v34 = vld [vmem:[%s7366_s1 + $0x16c] sm:$0xf]  ;;  %v5740_v39 = vld [vmem:[%s7367_s0 + $0x160] sm:$0xf] }
 0x108   :  { %v3351_v52 = vsel %vm5820_vm4, %v3346_v40, %v3350_v28  ;;  %v3369_v53 = vor.u32 %v3368_v42, %v3365_v41  ;;  %v3378_v54 = vrot.slane %v3376_v43, 4  ;;  %v3387_v61 = vshrl.u32 %v2702_v44, 16  ;;  %v2710_v43 = vld [vmem:[%s7366_s1 + $0x170] sm:$0x1]  ;;  %v2712_v55 = vld [vmem:[%s7366_s1 + $0x178] sm:$0xf] }
 0x109   :  { %v3361_v59 = vsel %vm5820_vm4, %v3356_v45, %v3360_v38  ;;  %v3384_v60 = vrot.slane %v3382_v47, 5  ;;  %5273 = vmatprep.mubr.msk.bf16.mxu1 %vm991_vm1, %v4719_v50  ;;  %v3390_v62 = vshll.u32 %v2702_v44, 16  ;;  %v3396_v3 = vshll.u32 %v2703_v51, 16  ;;  %v5739_v38 = vld [vmem:[%s7367_s0 + $0x15c] sm:$0xf] }
 0x10a   :  { %v4853_v0 = vcombine.low %v3351_v52, %v3361_v59  ;;  %v3370_v1 = vrot.slane %v3369_v53, 4  ;;  %v3379_v2 = vor.u32 %v3378_v54, %v3374_v46  ;;  %5274 = vmatmul.mubr.msk.bf16.gmra.mrb[52].mxu1 %vm991_vm1, %v4720_v57  ;;  %v3389_v4 = vrot.slane %v3387_v61, 4  ;;  %v2711_v50 = vld [vmem:[%s7366_s1 + $0x174] sm:$0xf] }
 0x10b   :  { %v3392_v5 = vrot.slane %v3390_v62, 5  ;;  %v3400_v6 = vshrl.u32 %v2703_v51, 16  ;;  %v3406_v7 = vshll.u32 %v2704_v58, 16  ;;  %v3398_v11 = vrot.slane %v3396_v3, 5  ;;  %v2713_v62 = vld [vmem:[%s7366_s1 + $0x17c] sm:$0x1] }
 0x10c   :  { %5405 = vmatprep.mubr.msk.bf16.mxu0 %vm991_vm1, %v4853_v0  ;;  %v3375_v9 = vsel %vm5820_vm4, %v3370_v1, %v3374_v46  ;;  %v3380_v10 = vrot.slane %v3379_v2, 4  ;;  %v3411_v12 = vshrl.u32 %v2705_v63, 16  ;;  %v3414_v17 = vshll.u32 %v2705_v63, 16 }
 0x10d   :  { %v3393_v13 = vor.u32 %v3392_v5, %v3389_v4  ;;  %v3402_v14 = vrot.slane %v3400_v6, 4  ;;  %v3408_v15 = vrot.slane %v3406_v7, 5  ;;  %v3420_v20 = vshll.u32 %v2706_v8, 16 }
 0x10e   :  { %v3385_v18 = vsel %vm5820_vm4, %v3380_v10, %v3384_v60  ;;  %v3413_v19 = vrot.slane %v3411_v12, 4  ;;  %v3424_v21 = vshrl.u32 %v2706_v8, 16  ;;  %v3416_v25 = vrot.slane %v3414_v17, 5  ;;  %v5741_v12 = vld [vmem:[%s7367_s0 + $0x168] sm:$0xf] }
 0x10f   :  { %v4854_v22 = vcombine.low %v3375_v9, %v3385_v18  ;;  %v3394_v23 = vrot.slane %v3393_v13, 4  ;;  %v3403_v24 = vor.u32 %v3402_v14, %v3398_v11  ;;  %v3422_v28 = vrot.slane %v3420_v20, 5  ;;  %v5742_v13 = vld [vmem:[%s7367_s0 + $0x16c] sm:$0xf]  ;;  %v5743_v18 = vld [vmem:[%s7367_s0 + $0x174] sm:$0xf] }
 0x110   :  { %v3426_v29 = vrot.slane %v3424_v21, 4  ;;  %v3430_v30 = vshll.u32 %v2707_v16, 16  ;;  %v4721_v33 = vcombine.low %v5737_v31, %v5738_v32  ;;  %v3417_v37 = vor.u32 %v3416_v25, %v3413_v19  ;;  %v5744_v19 = vld [vmem:[%s7367_s0 + $0x178] sm:$0xf] }
 0x111   :  { %5406 = vmatmul.mubr.msk.bf16.gmra.mrb[52].mxu0 %vm991_vm1, %v4854_v22  ;;  %v3399_v35 = vsel %vm5820_vm4, %v3394_v23, %v3398_v11  ;;  %v3404_v36 = vrot.slane %v3403_v24, 4  ;;  %v4722_v40 = vcombine.low %v5739_v38, %v5740_v39  ;;  %v3435_v44 = vshrl.u32 %v2708_v27, 16 }
 0x112   :  { %v3427_v41 = vor.u32 %v3426_v29, %v3422_v28  ;;  %v3432_v42 = vrot.slane %v3430_v30, 5  ;;  %5277 = vmatprep.mubr.msk.bf16.mxu1 %vm991_vm1, %v4721_v33  ;;  %v3438_v45 = vshll.u32 %v2708_v27, 16  ;;  %v3418_v47 = vrot.slane %v3417_v37, 4  ;;  %v7048_v33 = vld [vmem:[%s7368_s3] ss:$0 sm:$0xff] }
 0x113   :  { %v3409_v46 = vsel %vm5820_vm4, %v3404_v36, %v3408_v15  ;;  %5278 = vmatmul.mubr.msk.bf16.gmra.mrb[56].mxu1 %vm991_vm1, %v4722_v40  ;;  %v3444_v48 = vshll.u32 %v2709_v34, 16  ;;  %v3448_v49 = vshrl.u32 %v2709_v34, 16  ;;  %v3437_v53 = vrot.slane %v3435_v44, 4 }
 0x114   :  { %v4855_v51 = vcombine.low %v3399_v35, %v3409_v46  ;;  %v3428_v52 = vrot.slane %v3427_v41, 4  ;;  %v3440_v54 = vrot.slane %v3438_v45, 5  ;;  %v3423_v56 = vsel %vm5820_vm4, %v3418_v47, %v3422_v28 }
 0x115   :  { %v3446_v57 = vrot.slane %v3444_v48, 5  ;;  %v3450_v58 = vrot.slane %v3448_v49, 4  ;;  %v3454_v59 = vshll.u32 %v2710_v43, 16  ;;  %v3459_v63 = vshrl.u32 %v2711_v50, 16 }
 0x116   :  { %5409 = vmatprep.mubr.msk.bf16.mxu0 %vm991_vm1, %v4855_v51  ;;  %v3433_v60 = vsel %vm5820_vm4, %v3428_v52, %v3432_v42  ;;  %v3441_v61 = vor.u32 %v3440_v54, %v3437_v53  ;;  %v3462_v0 = vshll.u32 %v2711_v50, 16  ;;  %v3468_v4 = vshll.u32 %v2712_v55, 16 }
 0x117   :  { %v4856_v1 = vcombine.low %v3423_v56, %v3433_v60  ;;  %v3451_v2 = vor.u32 %v3450_v58, %v3446_v57  ;;  %v3456_v3 = vrot.slane %v3454_v59, 5  ;;  %v3461_v6 = vrot.slane %v3459_v63, 4 }
 0x118   :  { %v3442_v5 = vrot.slane %v3441_v61, 4  ;;  %v3464_v7 = vrot.slane %v3462_v0, 5  ;;  %v3472_v8 = vshrl.u32 %v2712_v55, 16  ;;  %v3470_v10 = vrot.slane %v3468_v4, 5 }
 0x119   :  { %5410 = vmatmul.mubr.msk.bf16.gmra.mrb[56].mxu0 %vm991_vm1, %v4856_v1  ;;  %v3452_v9 = vrot.slane %v3451_v2, 4  ;;  %v3478_v11 = vshll.u32 %v2713_v62, 16  ;;  %v4723_v14 = vcombine.low %v5741_v12, %v5742_v13  ;;  %v4724_v20 = vcombine.low %v5743_v18, %v5744_v19 }
 0x11a   :  { %v3447_v15 = vsel %vm5820_vm4, %v3442_v5, %v3446_v57  ;;  %v3465_v16 = vor.u32 %v3464_v7, %v3461_v6  ;;  %v3474_v17 = vrot.slane %v3472_v8, 4 }
 0x11b   :  { %v3457_v21 = vsel %vm5820_vm4, %v3452_v9, %v3456_v3  ;;  %5281 = vmatprep.mubr.msk.bf16.mxu1 %vm991_vm1, %v4723_v14  ;;  %v3480_v25 = vrot.slane %v3478_v11, 5 }
 0x11c   :  { %v4857_v22 = vcombine.low %v3447_v15, %v3457_v21  ;;  %v3466_v23 = vrot.slane %v3465_v16, 4  ;;  %v3475_v24 = vor.u32 %v3474_v17, %v3470_v10  ;;  %5282 = vmatmul.mubr.msk.bf16.gmra.mrb[60].mxu1 %vm991_vm1, %v4724_v20 }
 0x11e   :  { %5413 = vmatprep.mubr.msk.bf16.mxu0 %vm991_vm1, %v4857_v22  ;;  %v3471_v27 = vsel %vm5820_vm4, %v3466_v23, %v3470_v10  ;;  %v3476_v28 = vrot.slane %v3475_v24, 4 }
 0x120   :  { %v3481_v29 = vsel %vm5820_vm4, %v3476_v28, %v3480_v25 }
 0x121   :  { %v4858_v30 = vcombine.low %v3471_v27, %v3481_v29 }
 0x123   :  { %5414 = vmatmul.mubr.msk.bf16.gmra.mrb[60].mxu0 %vm991_vm1, %v4858_v30 }
 0x16e   :  { %v5355_v31 = vpop.f32.mrb[0].mxu0  ;;  %v5223_v32 = vpop.f32.mrb[0].mxu1 }
 0x16f   :  { %v3719_v34 = vpop.f32.mrb[1].mxu0  ;;  %v5417_v35 = vadd.f32 %v5355_v31, %v5223_v32  ;;  %v1679_v36 = vpop.f32.mrb[1].mxu1 }
 0x170   :  { %v5356_v37 = vpop.f32.mrb[2].mxu0  ;;  %v5418_v38 = vadd.f32 %v3719_v34, %v1679_v36  ;;  %v5224_v39 = vpop.f32.mrb[2].mxu1 }
 0x171   :  { %v3722_v40 = vpop.f32.mrb[3].mxu0  ;;  %v4047_v26 = vadd.f32 %v5417_v35, %v7048_v33  ;;  %v5419_v41 = vadd.f32 %v5356_v37, %v5224_v39  ;;  %v1682_v42 = vpop.f32.mrb[3].mxu1 }
 0x172   :  { %v4045_v43 = vadd.f32 %v5418_v38, %v7048_v33  ;;  %v5420_v44 = vadd.f32 %v3722_v40, %v1682_v42 }
 0x173   :  { %vm4111_vm5 = vcmp.ge.f32.partialorder %v4047_v26, 0.0  ;;  %v4175_v45 = vmul.f32 0.2, %v4047_v26  ;;  %v4048_v46 = vadd.f32 %v5419_v41, %v7048_v33 }
 0x174   :  { %vm4109_vm6 = vcmp.ge.f32.partialorder %v4045_v43, 0.0  ;;  %v4173_v47 = vmul.f32 0.2, %v4045_v43  ;;  %v4046_v48 = vadd.f32 %v5420_v44, %v7048_v33 }
 0x175   :  { %v4239_v49 = vsel %vm4111_vm5, %v4047_v26, %v4175_v45  ;;  %vm4112_vm8 = vcmp.ge.f32.partialorder %v4048_v46, 0.0  ;;  %v4176_v50 = vmul.f32 0.2, %v4048_v46 }
 0x176   :  { %v4959_v51 = vpack.c.bf16 %v4239_v49, %v4239_v49  ;;  %v4237_v52 = vsel %vm4109_vm6, %v4045_v43, %v4173_v47  ;;  %vm4110_vm9 = vcmp.ge.f32.partialorder %v4046_v48, 0.0  ;;  %v4174_v53 = vmul.f32 0.2, %v4046_v48  ;;  %v5227_v54 = vpop.f32.mrb[4].mxu1 }
 0x177   :  { %v4957_v55 = vpack.c.bf16 %v4237_v52, %v4237_v52  ;;  %v4240_v56 = vsel %vm4112_vm8, %v4048_v46, %v4176_v50  ;;  %v1695_v57 = vpop.f32.mrb[5].mxu1 }
 0x178   :  { %4560 = vst.msk [vmem:[%s7369_s4 + $0x8] sm:$0xf] %vm4557_vm7, %v4959_v51  ;;  %v4960_v58 = vpack.c.bf16 %v4240_v56, %v4240_v56  ;;  %v5359_v59 = vpop.f32.mrb[4].mxu0  ;;  %v4238_v60 = vsel %vm4110_vm9, %v4046_v48, %v4174_v53  ;;  %v5228_v61 = vpop.f32.mrb[6].mxu1 }
 0x179   :  { %4558 = vst.msk [vmem:[%s7369_s4] sm:$0xf] %vm4557_vm7, %v4957_v55  ;;  %v4958_v62 = vpack.c.bf16 %v4238_v60, %v4238_v60  ;;  %v3735_v63 = vpop.f32.mrb[5].mxu0  ;;  %v5421_v0 = vadd.f32 %v5359_v59, %v5227_v54  ;;  %v1698_v1 = vpop.f32.mrb[7].mxu1 }
 0x17a   :  { %4561 = vst.msk [vmem:[%s7369_s4 + $0xc] sm:$0xf] %vm4557_vm7, %v4960_v58  ;;  %v5360_v2 = vpop.f32.mrb[6].mxu0  ;;  %v5422_v3 = vadd.f32 %v3735_v63, %v1695_v57 }
 0x17b   :  { %4559 = vst.msk [vmem:[%s7369_s4 + $0x4] sm:$0xf] %vm4557_vm7, %v4958_v62  ;;  %v3738_v4 = vpop.f32.mrb[7].mxu0  ;;  %v4051_v5 = vadd.f32 %v5421_v0, %v7048_v33  ;;  %v5423_v6 = vadd.f32 %v5360_v2, %v5228_v61 }
 0x17c   :  { %v4049_v7 = vadd.f32 %v5422_v3, %v7048_v33  ;;  %v5424_v8 = vadd.f32 %v3738_v4, %v1698_v1 }
 0x17d   :  { %vm4115_vm10 = vcmp.ge.f32.partialorder %v4051_v5, 0.0  ;;  %v4179_v9 = vmul.f32 0.2, %v4051_v5  ;;  %v4052_v10 = vadd.f32 %v5423_v6, %v7048_v33 }
 0x17e   :  { %vm4113_vm11 = vcmp.ge.f32.partialorder %v4049_v7, 0.0  ;;  %v4177_v11 = vmul.f32 0.2, %v4049_v7  ;;  %v4050_v12 = vadd.f32 %v5424_v8, %v7048_v33  ;;  %v5231_v13 = vpop.f32.mrb[8].mxu1 }
 0x17f   :  { %v4243_v14 = vsel %vm4115_vm10, %v4051_v5, %v4179_v9  ;;  %vm4116_vm12 = vcmp.ge.f32.partialorder %v4052_v10, 0.0  ;;  %v4180_v15 = vmul.f32 0.2, %v4052_v10  ;;  %v1711_v16 = vpop.f32.mrb[9].mxu1 }
 0x180   :  { %v4963_v17 = vpack.c.bf16 %v4243_v14, %v4243_v14  ;;  %v4241_v18 = vsel %vm4113_vm11, %v4049_v7, %v4177_v11  ;;  %v5363_v19 = vpop.f32.mrb[8].mxu0  ;;  %vm4114_vm13 = vcmp.ge.f32.partialorder %v4050_v12, 0.0  ;;  %v4178_v20 = vmul.f32 0.2, %v4050_v12  ;;  %v5232_v21 = vpop.f32.mrb[10].mxu1 }
 0x181   :  { %v4961_v22 = vpack.c.bf16 %v4241_v18, %v4241_v18  ;;  %v4244_v23 = vsel %vm4116_vm12, %v4052_v10, %v4180_v15  ;;  %v3751_v24 = vpop.f32.mrb[9].mxu0  ;;  %v5425_v25 = vadd.f32 %v5363_v19, %v5231_v13  ;;  %v1714_v27 = vpop.f32.mrb[11].mxu1 }
 0x182   :  { %4564 = vst.msk [vmem:[%s7369_s4 + $0x18] sm:$0xf] %vm4557_vm7, %v4963_v17  ;;  %v4964_v28 = vpack.c.bf16 %v4244_v23, %v4244_v23  ;;  %v4242_v29 = vsel %vm4114_vm13, %v4050_v12, %v4178_v20  ;;  %v5364_v30 = vpop.f32.mrb[10].mxu0  ;;  %v5426_v31 = vadd.f32 %v3751_v24, %v1711_v16 }
 0x183   :  { %4562 = vst.msk [vmem:[%s7369_s4 + $0x10] sm:$0xf] %vm4557_vm7, %v4961_v22  ;;  %v4962_v32 = vpack.c.bf16 %v4242_v29, %v4242_v29  ;;  %v3754_v34 = vpop.f32.mrb[11].mxu0  ;;  %v4055_v35 = vadd.f32 %v5425_v25, %v7048_v33  ;;  %v5427_v36 = vadd.f32 %v5364_v30, %v5232_v21 }
 0x184   :  { %4565 = vst.msk [vmem:[%s7369_s4 + $0x1c] sm:$0xf] %vm4557_vm7, %v4964_v28  ;;  %v4053_v37 = vadd.f32 %v5426_v31, %v7048_v33  ;;  %v5428_v38 = vadd.f32 %v3754_v34, %v1714_v27 }
 0x185   :  { %4563 = vst.msk [vmem:[%s7369_s4 + $0x14] sm:$0xf] %vm4557_vm7, %v4962_v32  ;;  %vm4119_vm14 = vcmp.ge.f32.partialorder %v4055_v35, 0.0  ;;  %v4183_v39 = vmul.f32 0.2, %v4055_v35  ;;  %v4056_v40 = vadd.f32 %v5427_v36, %v7048_v33 }
 0x186   :  { %vm4117_vm15 = vcmp.ge.f32.partialorder %v4053_v37, 0.0  ;;  %v4181_v26 = vmul.f32 0.2, %v4053_v37  ;;  %v4054_v41 = vadd.f32 %v5428_v38, %v7048_v33  ;;  %v5235_v42 = vpop.f32.mrb[12].mxu1 }
 0x187   :  { %v4247_v43 = vsel %vm4119_vm14, %v4055_v35, %v4183_v39  ;;  %vm4120_vm0 = vcmp.ge.f32.partialorder %v4056_v40, 0.0  ;;  %v4184_v44 = vmul.f32 0.2, %v4056_v40  ;;  %v1727_v45 = vpop.f32.mrb[13].mxu1 }
 0x188   :  { %v4967_v46 = vpack.c.bf16 %v4247_v43, %v4247_v43  ;;  %v4245_v47 = vsel %vm4117_vm15, %v4053_v37, %v4181_v26  ;;  %vm4118_vm1 = vcmp.ge.f32.partialorder %v4054_v41, 0.0  ;;  %v4182_v48 = vmul.f32 0.2, %v4054_v41  ;;  %v5236_v49 = vpop.f32.mrb[14].mxu1 }
 0x189   :  { %v4965_v50 = vpack.c.bf16 %v4245_v47, %v4245_v47  ;;  %v4248_v51 = vsel %vm4120_vm0, %v4056_v40, %v4184_v44  ;;  %v1730_v52 = vpop.f32.mrb[15].mxu1 }
 0x18a   :  { %4568 = vst.msk [vmem:[%s7369_s4 + $0x28] sm:$0xf] %vm4557_vm7, %v4967_v46  ;;  %v4968_v53 = vpack.c.bf16 %v4248_v51, %v4248_v51  ;;  %v5367_v54 = vpop.f32.mrb[12].mxu0  ;;  %v4246_v55 = vsel %vm4118_vm1, %v4054_v41, %v4182_v48 }
 0x18b   :  { %4566 = vst.msk [vmem:[%s7369_s4 + $0x20] sm:$0xf] %vm4557_vm7, %v4965_v50  ;;  %v4966_v56 = vpack.c.bf16 %v4246_v55, %v4246_v55  ;;  %v3767_v57 = vpop.f32.mrb[13].mxu0  ;;  %v5429_v58 = vadd.f32 %v5367_v54, %v5235_v42 }
 0x18c   :  { %4569 = vst.msk [vmem:[%s7369_s4 + $0x2c] sm:$0xf] %vm4557_vm7, %v4968_v53  ;;  %v5368_v59 = vpop.f32.mrb[14].mxu0  ;;  %v5430_v60 = vadd.f32 %v3767_v57, %v1727_v45 }
 0x18d   :  { %4567 = vst.msk [vmem:[%s7369_s4 + $0x24] sm:$0xf] %vm4557_vm7, %v4966_v56  ;;  %v3770_v61 = vpop.f32.mrb[15].mxu0  ;;  %v4059_v62 = vadd.f32 %v5429_v58, %v7048_v33  ;;  %v5431_v63 = vadd.f32 %v5368_v59, %v5236_v49 }
 0x18e   :  { %v4057_v0 = vadd.f32 %v5430_v60, %v7048_v33  ;;  %v5432_v1 = vadd.f32 %v3770_v61, %v1730_v52  ;;  %v5239_v2 = vpop.f32.mrb[16].mxu1 }
 0x18f   :  { %vm4123_vm2 = vcmp.ge.f32.partialorder %v4059_v62, 0.0  ;;  %v4187_v3 = vmul.f32 0.2, %v4059_v62  ;;  %v4060_v4 = vadd.f32 %v5431_v63, %v7048_v33  ;;  %v1743_v5 = vpop.f32.mrb[17].mxu1 }
 0x190   :  { %vm4121_vm3 = vcmp.ge.f32.partialorder %v4057_v0, 0.0  ;;  %v4185_v6 = vmul.f32 0.2, %v4057_v0  ;;  %v4058_v7 = vadd.f32 %v5432_v1, %v7048_v33  ;;  %v5240_v8 = vpop.f32.mrb[18].mxu1 }
 0x191   :  { %v4251_v9 = vsel %vm4123_vm2, %v4059_v62, %v4187_v3  ;;  %vm4124_vm4 = vcmp.ge.f32.partialorder %v4060_v4, 0.0  ;;  %v4188_v10 = vmul.f32 0.2, %v4060_v4  ;;  %v1746_v11 = vpop.f32.mrb[19].mxu1 }
 0x192   :  { %v4971_v12 = vpack.c.bf16 %v4251_v9, %v4251_v9  ;;  %v4249_v13 = vsel %vm4121_vm3, %v4057_v0, %v4185_v6  ;;  %v5371_v14 = vpop.f32.mrb[16].mxu0  ;;  %vm4122_vm5 = vcmp.ge.f32.partialorder %v4058_v7, 0.0  ;;  %v4186_v15 = vmul.f32 0.2, %v4058_v7 }
 0x193   :  { %v4969_v16 = vpack.c.bf16 %v4249_v13, %v4249_v13  ;;  %v4252_v17 = vsel %vm4124_vm4, %v4060_v4, %v4188_v10  ;;  %v3783_v18 = vpop.f32.mrb[17].mxu0  ;;  %v5433_v19 = vadd.f32 %v5371_v14, %v5239_v2 }
 0x194   :  { %4572 = vst.msk [vmem:[%s7369_s4 + $0x38] sm:$0xf] %vm4557_vm7, %v4971_v12  ;;  %v4972_v20 = vpack.c.bf16 %v4252_v17, %v4252_v17  ;;  %v4250_v21 = vsel %vm4122_vm5, %v4058_v7, %v4186_v15  ;;  %v5372_v22 = vpop.f32.mrb[18].mxu0  ;;  %v5434_v23 = vadd.f32 %v3783_v18, %v1743_v5 }
 0x195   :  { %4570 = vst.msk [vmem:[%s7369_s4 + $0x30] sm:$0xf] %vm4557_vm7, %v4969_v16  ;;  %v4970_v24 = vpack.c.bf16 %v4250_v21, %v4250_v21  ;;  %v3786_v25 = vpop.f32.mrb[19].mxu0  ;;  %v4063_v27 = vadd.f32 %v5433_v19, %v7048_v33  ;;  %v5435_v28 = vadd.f32 %v5372_v22, %v5240_v8 }
 0x196   :  { %4573 = vst.msk [vmem:[%s7369_s4 + $0x3c] sm:$0xf] %vm4557_vm7, %v4972_v20  ;;  %v4061_v29 = vadd.f32 %v5434_v23, %v7048_v33  ;;  %v5436_v30 = vadd.f32 %v3786_v25, %v1746_v11  ;;  %v5243_v31 = vpop.f32.mrb[20].mxu1 }
 0x197   :  { %4571 = vst.msk [vmem:[%s7369_s4 + $0x34] sm:$0xf] %vm4557_vm7, %v4970_v24  ;;  %vm4127_vm6 = vcmp.ge.f32.partialorder %v4063_v27, 0.0  ;;  %v4191_v32 = vmul.f32 0.2, %v4063_v27  ;;  %v4064_v34 = vadd.f32 %v5435_v28, %v7048_v33  ;;  %v1759_v35 = vpop.f32.mrb[21].mxu1 }
 0x198   :  { %vm4125_vm8 = vcmp.ge.f32.partialorder %v4061_v29, 0.0  ;;  %v4189_v36 = vmul.f32 0.2, %v4061_v29  ;;  %v4062_v37 = vadd.f32 %v5436_v30, %v7048_v33  ;;  %v5244_v38 = vpop.f32.mrb[22].mxu1 }
 0x199   :  { %v4255_v39 = vsel %vm4127_vm6, %v4063_v27, %v4191_v32  ;;  %vm4128_vm9 = vcmp.ge.f32.partialorder %v4064_v34, 0.0  ;;  %v4192_v40 = vmul.f32 0.2, %v4064_v34  ;;  %v1762_v26 = vpop.f32.mrb[23].mxu1 }
 0x19a   :  { %v4975_v41 = vpack.c.bf16 %v4255_v39, %v4255_v39  ;;  %v4253_v42 = vsel %vm4125_vm8, %v4061_v29, %v4189_v36  ;;  %vm4126_vm10 = vcmp.ge.f32.partialorder %v4062_v37, 0.0  ;;  %v4190_v43 = vmul.f32 0.2, %v4062_v37 }
 0x19b   :  { %v4973_v44 = vpack.c.bf16 %v4253_v42, %v4253_v42  ;;  %v4256_v45 = vsel %vm4128_vm9, %v4064_v34, %v4192_v40 }
 0x19c   :  { %4576 = vst.msk [vmem:[%s7369_s4 + $0x48] sm:$0xf] %vm4557_vm7, %v4975_v41  ;;  %v4976_v46 = vpack.c.bf16 %v4256_v45, %v4256_v45  ;;  %v5375_v47 = vpop.f32.mrb[20].mxu0  ;;  %v4254_v48 = vsel %vm4126_vm10, %v4062_v37, %v4190_v43 }
 0x19d   :  { %4574 = vst.msk [vmem:[%s7369_s4 + $0x40] sm:$0xf] %vm4557_vm7, %v4973_v44  ;;  %v4974_v49 = vpack.c.bf16 %v4254_v48, %v4254_v48  ;;  %v3799_v50 = vpop.f32.mrb[21].mxu0  ;;  %v5437_v51 = vadd.f32 %v5375_v47, %v5243_v31 }
 0x19e   :  { %4577 = vst.msk [vmem:[%s7369_s4 + $0x4c] sm:$0xf] %vm4557_vm7, %v4976_v46  ;;  %v5376_v52 = vpop.f32.mrb[22].mxu0  ;;  %v5438_v53 = vadd.f32 %v3799_v50, %v1759_v35  ;;  %v5247_v54 = vpop.f32.mrb[24].mxu1 }
 0x19f   :  { %4575 = vst.msk [vmem:[%s7369_s4 + $0x44] sm:$0xf] %vm4557_vm7, %v4974_v49  ;;  %v3802_v55 = vpop.f32.mrb[23].mxu0  ;;  %v4067_v56 = vadd.f32 %v5437_v51, %v7048_v33  ;;  %v5439_v57 = vadd.f32 %v5376_v52, %v5244_v38  ;;  %v1775_v58 = vpop.f32.mrb[25].mxu1 }
 0x1a0   :  { %v4065_v59 = vadd.f32 %v5438_v53, %v7048_v33  ;;  %v5440_v60 = vadd.f32 %v3802_v55, %v1762_v26  ;;  %v5248_v61 = vpop.f32.mrb[26].mxu1 }
 0x1a1   :  { %vm4131_vm11 = vcmp.ge.f32.partialorder %v4067_v56, 0.0  ;;  %v4195_v62 = vmul.f32 0.2, %v4067_v56  ;;  %v4068_v63 = vadd.f32 %v5439_v57, %v7048_v33  ;;  %v1778_v0 = vpop.f32.mrb[27].mxu1 }
 0x1a2   :  { %vm4129_vm12 = vcmp.ge.f32.partialorder %v4065_v59, 0.0  ;;  %v4193_v1 = vmul.f32 0.2, %v4065_v59  ;;  %v4066_v2 = vadd.f32 %v5440_v60, %v7048_v33 }
 0x1a3   :  { %v4259_v3 = vsel %vm4131_vm11, %v4067_v56, %v4195_v62  ;;  %vm4132_vm13 = vcmp.ge.f32.partialorder %v4068_v63, 0.0  ;;  %v4196_v4 = vmul.f32 0.2, %v4068_v63 }
 0x1a4   :  { %v4979_v5 = vpack.c.bf16 %v4259_v3, %v4259_v3  ;;  %v4257_v6 = vsel %vm4129_vm12, %v4065_v59, %v4193_v1  ;;  %v5379_v7 = vpop.f32.mrb[24].mxu0  ;;  %vm4130_vm14 = vcmp.ge.f32.partialorder %v4066_v2, 0.0  ;;  %v4194_v8 = vmul.f32 0.2, %v4066_v2 }
 0x1a5   :  { %v4977_v9 = vpack.c.bf16 %v4257_v6, %v4257_v6  ;;  %v4260_v10 = vsel %vm4132_vm13, %v4068_v63, %v4196_v4  ;;  %v3815_v11 = vpop.f32.mrb[25].mxu0  ;;  %v5441_v12 = vadd.f32 %v5379_v7, %v5247_v54 }
 0x1a6   :  { %4580 = vst.msk [vmem:[%s7369_s4 + $0x58] sm:$0xf] %vm4557_vm7, %v4979_v5  ;;  %v4980_v13 = vpack.c.bf16 %v4260_v10, %v4260_v10  ;;  %v4258_v14 = vsel %vm4130_vm14, %v4066_v2, %v4194_v8  ;;  %v5380_v15 = vpop.f32.mrb[26].mxu0  ;;  %v5442_v16 = vadd.f32 %v3815_v11, %v1775_v58 }
 0x1a7   :  { %4578 = vst.msk [vmem:[%s7369_s4 + $0x50] sm:$0xf] %vm4557_vm7, %v4977_v9  ;;  %v4978_v17 = vpack.c.bf16 %v4258_v14, %v4258_v14  ;;  %v3818_v18 = vpop.f32.mrb[27].mxu0  ;;  %v4071_v19 = vadd.f32 %v5441_v12, %v7048_v33  ;;  %v5443_v20 = vadd.f32 %v5380_v15, %v5248_v61  ;;  %v5251_v21 = vpop.f32.mrb[28].mxu1 }
 0x1a8   :  { %4581 = vst.msk [vmem:[%s7369_s4 + $0x5c] sm:$0xf] %vm4557_vm7, %v4980_v13  ;;  %v4069_v22 = vadd.f32 %v5442_v16, %v7048_v33  ;;  %v5444_v23 = vadd.f32 %v3818_v18, %v1778_v0  ;;  %v1791_v24 = vpop.f32.mrb[29].mxu1 }
 0x1a9   :  { %4579 = vst.msk [vmem:[%s7369_s4 + $0x54] sm:$0xf] %vm4557_vm7, %v4978_v17  ;;  %vm4135_vm15 = vcmp.ge.f32.partialorder %v4071_v19, 0.0  ;;  %v4199_v25 = vmul.f32 0.2, %v4071_v19  ;;  %v4072_v27 = vadd.f32 %v5443_v20, %v7048_v33  ;;  %v5252_v28 = vpop.f32.mrb[30].mxu1 }
 0x1aa   :  { %vm4133_vm0 = vcmp.ge.f32.partialorder %v4069_v22, 0.0  ;;  %v4197_v29 = vmul.f32 0.2, %v4069_v22  ;;  %v4070_v30 = vadd.f32 %v5444_v23, %v7048_v33  ;;  %v1794_v31 = vpop.f32.mrb[31].mxu1 }
 0x1ab   :  { %v4263_v32 = vsel %vm4135_vm15, %v4071_v19, %v4199_v25  ;;  %vm4136_vm1 = vcmp.ge.f32.partialorder %v4072_v27, 0.0  ;;  %v4200_v34 = vmul.f32 0.2, %v4072_v27 }
 0x1ac   :  { %v4983_v35 = vpack.c.bf16 %v4263_v32, %v4263_v32  ;;  %v4261_v36 = vsel %vm4133_vm0, %v4069_v22, %v4197_v29  ;;  %vm4134_vm2 = vcmp.ge.f32.partialorder %v4070_v30, 0.0  ;;  %v4198_v37 = vmul.f32 0.2, %v4070_v30 }
 0x1ad   :  { %v4981_v38 = vpack.c.bf16 %v4261_v36, %v4261_v36  ;;  %v4264_v39 = vsel %vm4136_vm1, %v4072_v27, %v4200_v34 }
 0x1ae   :  { %4584 = vst.msk [vmem:[%s7369_s4 + $0x68] sm:$0xf] %vm4557_vm7, %v4983_v35  ;;  %v4984_v40 = vpack.c.bf16 %v4264_v39, %v4264_v39  ;;  %v5383_v26 = vpop.f32.mrb[28].mxu0  ;;  %v4262_v41 = vsel %vm4134_vm2, %v4070_v30, %v4198_v37 }
 0x1af   :  { %4582 = vst.msk [vmem:[%s7369_s4 + $0x60] sm:$0xf] %vm4557_vm7, %v4981_v38  ;;  %v4982_v42 = vpack.c.bf16 %v4262_v41, %v4262_v41  ;;  %v3831_v43 = vpop.f32.mrb[29].mxu0  ;;  %v5445_v44 = vadd.f32 %v5383_v26, %v5251_v21 }
 0x1b0   :  { %4585 = vst.msk [vmem:[%s7369_s4 + $0x6c] sm:$0xf] %vm4557_vm7, %v4984_v40  ;;  %v5384_v45 = vpop.f32.mrb[30].mxu0  ;;  %v5446_v46 = vadd.f32 %v3831_v43, %v1791_v24  ;;  %v5255_v47 = vpop.f32.mrb[32].mxu1 }
 0x1b1   :  { %4583 = vst.msk [vmem:[%s7369_s4 + $0x64] sm:$0xf] %vm4557_vm7, %v4982_v42  ;;  %v3834_v48 = vpop.f32.mrb[31].mxu0  ;;  %v4075_v49 = vadd.f32 %v5445_v44, %v7048_v33  ;;  %v5447_v50 = vadd.f32 %v5384_v45, %v5252_v28  ;;  %v1807_v51 = vpop.f32.mrb[33].mxu1 }
 0x1b2   :  { %v4073_v52 = vadd.f32 %v5446_v46, %v7048_v33  ;;  %v5448_v53 = vadd.f32 %v3834_v48, %v1794_v31  ;;  %v5256_v54 = vpop.f32.mrb[34].mxu1 }
 0x1b3   :  { %vm4139_vm3 = vcmp.ge.f32.partialorder %v4075_v49, 0.0  ;;  %v4203_v55 = vmul.f32 0.2, %v4075_v49  ;;  %v4076_v56 = vadd.f32 %v5447_v50, %v7048_v33  ;;  %v1810_v57 = vpop.f32.mrb[35].mxu1 }
 0x1b4   :  { %vm4137_vm4 = vcmp.ge.f32.partialorder %v4073_v52, 0.0  ;;  %v4201_v58 = vmul.f32 0.2, %v4073_v52  ;;  %v4074_v59 = vadd.f32 %v5448_v53, %v7048_v33 }
 0x1b5   :  { %v4267_v60 = vsel %vm4139_vm3, %v4075_v49, %v4203_v55  ;;  %vm4140_vm5 = vcmp.ge.f32.partialorder %v4076_v56, 0.0  ;;  %v4204_v61 = vmul.f32 0.2, %v4076_v56 }
 0x1b6   :  { %v4987_v62 = vpack.c.bf16 %v4267_v60, %v4267_v60  ;;  %v4265_v63 = vsel %vm4137_vm4, %v4073_v52, %v4201_v58  ;;  %v5387_v0 = vpop.f32.mrb[32].mxu0  ;;  %vm4138_vm6 = vcmp.ge.f32.partialorder %v4074_v59, 0.0  ;;  %v4202_v1 = vmul.f32 0.2, %v4074_v59 }
 0x1b7   :  { %v4985_v2 = vpack.c.bf16 %v4265_v63, %v4265_v63  ;;  %v4268_v3 = vsel %vm4140_vm5, %v4076_v56, %v4204_v61  ;;  %v3847_v4 = vpop.f32.mrb[33].mxu0  ;;  %v5449_v5 = vadd.f32 %v5387_v0, %v5255_v47 }
 0x1b8   :  { %4588 = vst.msk [vmem:[%s7369_s4 + $0x78] sm:$0xf] %vm4557_vm7, %v4987_v62  ;;  %v4988_v6 = vpack.c.bf16 %v4268_v3, %v4268_v3  ;;  %v4266_v7 = vsel %vm4138_vm6, %v4074_v59, %v4202_v1  ;;  %v5388_v8 = vpop.f32.mrb[34].mxu0  ;;  %v5450_v9 = vadd.f32 %v3847_v4, %v1807_v51 }
 0x1b9   :  { %4586 = vst.msk [vmem:[%s7369_s4 + $0x70] sm:$0xf] %vm4557_vm7, %v4985_v2  ;;  %v4986_v10 = vpack.c.bf16 %v4266_v7, %v4266_v7  ;;  %v3850_v11 = vpop.f32.mrb[35].mxu0  ;;  %v4079_v12 = vadd.f32 %v5449_v5, %v7048_v33  ;;  %v5451_v13 = vadd.f32 %v5388_v8, %v5256_v54  ;;  %v5259_v14 = vpop.f32.mrb[36].mxu1 }
 0x1ba   :  { %4589 = vst.msk [vmem:[%s7369_s4 + $0x7c] sm:$0xf] %vm4557_vm7, %v4988_v6  ;;  %v4077_v15 = vadd.f32 %v5450_v9, %v7048_v33  ;;  %v5452_v16 = vadd.f32 %v3850_v11, %v1810_v57  ;;  %v1823_v17 = vpop.f32.mrb[37].mxu1 }
 0x1bb   :  { %4587 = vst.msk [vmem:[%s7369_s4 + $0x74] sm:$0xf] %vm4557_vm7, %v4986_v10  ;;  %vm4143_vm8 = vcmp.ge.f32.partialorder %v4079_v12, 0.0  ;;  %v4207_v18 = vmul.f32 0.2, %v4079_v12  ;;  %v4080_v19 = vadd.f32 %v5451_v13, %v7048_v33  ;;  %v5260_v20 = vpop.f32.mrb[38].mxu1 }
 0x1bc   :  { %vm4141_vm9 = vcmp.ge.f32.partialorder %v4077_v15, 0.0  ;;  %v4205_v21 = vmul.f32 0.2, %v4077_v15  ;;  %v4078_v22 = vadd.f32 %v5452_v16, %v7048_v33  ;;  %v1826_v23 = vpop.f32.mrb[39].mxu1 }
 0x1bd   :  { %v4271_v24 = vsel %vm4143_vm8, %v4079_v12, %v4207_v18  ;;  %vm4144_vm10 = vcmp.ge.f32.partialorder %v4080_v19, 0.0  ;;  %v4208_v25 = vmul.f32 0.2, %v4080_v19 }
 0x1be   :  { %v4991_v27 = vpack.c.bf16 %v4271_v24, %v4271_v24  ;;  %v4269_v28 = vsel %vm4141_vm9, %v4077_v15, %v4205_v21  ;;  %vm4142_vm11 = vcmp.ge.f32.partialorder %v4078_v22, 0.0  ;;  %v4206_v29 = vmul.f32 0.2, %v4078_v22 }
 0x1bf   :  { %v4989_v30 = vpack.c.bf16 %v4269_v28, %v4269_v28  ;;  %v4272_v31 = vsel %vm4144_vm10, %v4080_v19, %v4208_v25 }
 0x1c0   :  { %4592 = vst.msk [vmem:[%s7369_s4 + $0x88] sm:$0xf] %vm4557_vm7, %v4991_v27  ;;  %v4992_v32 = vpack.c.bf16 %v4272_v31, %v4272_v31  ;;  %v5391_v34 = vpop.f32.mrb[36].mxu0  ;;  %v4270_v35 = vsel %vm4142_vm11, %v4078_v22, %v4206_v29 }
 0x1c1   :  { %4590 = vst.msk [vmem:[%s7369_s4 + $0x80] sm:$0xf] %vm4557_vm7, %v4989_v30  ;;  %v4990_v36 = vpack.c.bf16 %v4270_v35, %v4270_v35  ;;  %v3863_v37 = vpop.f32.mrb[37].mxu0  ;;  %v5453_v38 = vadd.f32 %v5391_v34, %v5259_v14 }
 0x1c2   :  { %4593 = vst.msk [vmem:[%s7369_s4 + $0x8c] sm:$0xf] %vm4557_vm7, %v4992_v32  ;;  %v5392_v39 = vpop.f32.mrb[38].mxu0  ;;  %v5454_v40 = vadd.f32 %v3863_v37, %v1823_v17  ;;  %v5263_v26 = vpop.f32.mrb[40].mxu1 }
 0x1c3   :  { %4591 = vst.msk [vmem:[%s7369_s4 + $0x84] sm:$0xf] %vm4557_vm7, %v4990_v36  ;;  %v3866_v41 = vpop.f32.mrb[39].mxu0  ;;  %v4083_v42 = vadd.f32 %v5453_v38, %v7048_v33  ;;  %v5455_v43 = vadd.f32 %v5392_v39, %v5260_v20  ;;  %v1839_v44 = vpop.f32.mrb[41].mxu1 }
 0x1c4   :  { %v4081_v45 = vadd.f32 %v5454_v40, %v7048_v33  ;;  %v5456_v46 = vadd.f32 %v3866_v41, %v1826_v23  ;;  %v5264_v47 = vpop.f32.mrb[42].mxu1 }
 0x1c5   :  { %vm4147_vm12 = vcmp.ge.f32.partialorder %v4083_v42, 0.0  ;;  %v4211_v48 = vmul.f32 0.2, %v4083_v42  ;;  %v4084_v49 = vadd.f32 %v5455_v43, %v7048_v33  ;;  %v1842_v50 = vpop.f32.mrb[43].mxu1 }
 0x1c6   :  { %vm4145_vm13 = vcmp.ge.f32.partialorder %v4081_v45, 0.0  ;;  %v4209_v51 = vmul.f32 0.2, %v4081_v45  ;;  %v4082_v52 = vadd.f32 %v5456_v46, %v7048_v33 }
 0x1c7   :  { %v4275_v53 = vsel %vm4147_vm12, %v4083_v42, %v4211_v48  ;;  %vm4148_vm14 = vcmp.ge.f32.partialorder %v4084_v49, 0.0  ;;  %v4212_v54 = vmul.f32 0.2, %v4084_v49 }
 0x1c8   :  { %v4995_v55 = vpack.c.bf16 %v4275_v53, %v4275_v53  ;;  %v4273_v56 = vsel %vm4145_vm13, %v4081_v45, %v4209_v51  ;;  %v5395_v57 = vpop.f32.mrb[40].mxu0  ;;  %vm4146_vm15 = vcmp.ge.f32.partialorder %v4082_v52, 0.0  ;;  %v4210_v58 = vmul.f32 0.2, %v4082_v52 }
 0x1c9   :  { %v4993_v59 = vpack.c.bf16 %v4273_v56, %v4273_v56  ;;  %v4276_v60 = vsel %vm4148_vm14, %v4084_v49, %v4212_v54  ;;  %v3879_v61 = vpop.f32.mrb[41].mxu0  ;;  %v5457_v62 = vadd.f32 %v5395_v57, %v5263_v26 }
 0x1ca   :  { %4596 = vst.msk [vmem:[%s7369_s4 + $0x98] sm:$0xf] %vm4557_vm7, %v4995_v55  ;;  %v4996_v63 = vpack.c.bf16 %v4276_v60, %v4276_v60  ;;  %v4274_v0 = vsel %vm4146_vm15, %v4082_v52, %v4210_v58  ;;  %v5396_v1 = vpop.f32.mrb[42].mxu0  ;;  %v5458_v2 = vadd.f32 %v3879_v61, %v1839_v44 }
 0x1cb   :  { %4594 = vst.msk [vmem:[%s7369_s4 + $0x90] sm:$0xf] %vm4557_vm7, %v4993_v59  ;;  %v4994_v3 = vpack.c.bf16 %v4274_v0, %v4274_v0  ;;  %v3882_v4 = vpop.f32.mrb[43].mxu0  ;;  %v4087_v5 = vadd.f32 %v5457_v62, %v7048_v33  ;;  %v5459_v6 = vadd.f32 %v5396_v1, %v5264_v47  ;;  %v5267_v7 = vpop.f32.mrb[44].mxu1 }
 0x1cc   :  { %4597 = vst.msk [vmem:[%s7369_s4 + $0x9c] sm:$0xf] %vm4557_vm7, %v4996_v63  ;;  %v4085_v8 = vadd.f32 %v5458_v2, %v7048_v33  ;;  %v5460_v9 = vadd.f32 %v3882_v4, %v1842_v50  ;;  %v1855_v10 = vpop.f32.mrb[45].mxu1 }
 0x1cd   :  { %4595 = vst.msk [vmem:[%s7369_s4 + $0x94] sm:$0xf] %vm4557_vm7, %v4994_v3  ;;  %vm4151_vm0 = vcmp.ge.f32.partialorder %v4087_v5, 0.0  ;;  %v4215_v11 = vmul.f32 0.2, %v4087_v5  ;;  %v4088_v12 = vadd.f32 %v5459_v6, %v7048_v33  ;;  %v5268_v13 = vpop.f32.mrb[46].mxu1 }
 0x1ce   :  { %vm4149_vm1 = vcmp.ge.f32.partialorder %v4085_v8, 0.0  ;;  %v4213_v14 = vmul.f32 0.2, %v4085_v8  ;;  %v4086_v15 = vadd.f32 %v5460_v9, %v7048_v33  ;;  %v1858_v16 = vpop.f32.mrb[47].mxu1 }
 0x1cf   :  { %v4279_v17 = vsel %vm4151_vm0, %v4087_v5, %v4215_v11  ;;  %vm4152_vm2 = vcmp.ge.f32.partialorder %v4088_v12, 0.0  ;;  %v4216_v18 = vmul.f32 0.2, %v4088_v12 }
 0x1d0   :  { %v4999_v19 = vpack.c.bf16 %v4279_v17, %v4279_v17  ;;  %v4277_v20 = vsel %vm4149_vm1, %v4085_v8, %v4213_v14  ;;  %vm4150_vm3 = vcmp.ge.f32.partialorder %v4086_v15, 0.0  ;;  %v4214_v21 = vmul.f32 0.2, %v4086_v15 }
 0x1d1   :  { %v4997_v22 = vpack.c.bf16 %v4277_v20, %v4277_v20  ;;  %v4280_v23 = vsel %vm4152_vm2, %v4088_v12, %v4216_v18 }
 0x1d2   :  { %4600 = vst.msk [vmem:[%s7369_s4 + $0xa8] sm:$0xf] %vm4557_vm7, %v4999_v19  ;;  %v5000_v24 = vpack.c.bf16 %v4280_v23, %v4280_v23  ;;  %v5399_v25 = vpop.f32.mrb[44].mxu0  ;;  %v4278_v27 = vsel %vm4150_vm3, %v4086_v15, %v4214_v21 }
 0x1d3   :  { %4598 = vst.msk [vmem:[%s7369_s4 + $0xa0] sm:$0xf] %vm4557_vm7, %v4997_v22  ;;  %v4998_v28 = vpack.c.bf16 %v4278_v27, %v4278_v27  ;;  %v3895_v29 = vpop.f32.mrb[45].mxu0  ;;  %v5461_v30 = vadd.f32 %v5399_v25, %v5267_v7 }
 0x1d4   :  { %4601 = vst.msk [vmem:[%s7369_s4 + $0xac] sm:$0xf] %vm4557_vm7, %v5000_v24  ;;  %v5400_v31 = vpop.f32.mrb[46].mxu0  ;;  %v5462_v32 = vadd.f32 %v3895_v29, %v1855_v10  ;;  %v5271_v34 = vpop.f32.mrb[48].mxu1 }
 0x1d5   :  { %4599 = vst.msk [vmem:[%s7369_s4 + $0xa4] sm:$0xf] %vm4557_vm7, %v4998_v28  ;;  %v3898_v35 = vpop.f32.mrb[47].mxu0  ;;  %v4091_v36 = vadd.f32 %v5461_v30, %v7048_v33  ;;  %v5463_v37 = vadd.f32 %v5400_v31, %v5268_v13  ;;  %v1871_v38 = vpop.f32.mrb[49].mxu1 }
 0x1d6   :  { %v4089_v39 = vadd.f32 %v5462_v32, %v7048_v33  ;;  %v5464_v40 = vadd.f32 %v3898_v35, %v1858_v16  ;;  %v5272_v26 = vpop.f32.mrb[50].mxu1 }
 0x1d7   :  { %vm4155_vm4 = vcmp.ge.f32.partialorder %v4091_v36, 0.0  ;;  %v4219_v41 = vmul.f32 0.2, %v4091_v36  ;;  %v4092_v42 = vadd.f32 %v5463_v37, %v7048_v33  ;;  %v1874_v43 = vpop.f32.mrb[51].mxu1 }
 0x1d8   :  { %vm4153_vm5 = vcmp.ge.f32.partialorder %v4089_v39, 0.0  ;;  %v4217_v44 = vmul.f32 0.2, %v4089_v39  ;;  %v4090_v45 = vadd.f32 %v5464_v40, %v7048_v33 }
 0x1d9   :  { %v4283_v46 = vsel %vm4155_vm4, %v4091_v36, %v4219_v41  ;;  %vm4156_vm6 = vcmp.ge.f32.partialorder %v4092_v42, 0.0  ;;  %v4220_v47 = vmul.f32 0.2, %v4092_v42 }
 0x1da   :  { %v5003_v48 = vpack.c.bf16 %v4283_v46, %v4283_v46  ;;  %v4281_v49 = vsel %vm4153_vm5, %v4089_v39, %v4217_v44  ;;  %v5403_v50 = vpop.f32.mrb[48].mxu0  ;;  %vm4154_vm8 = vcmp.ge.f32.partialorder %v4090_v45, 0.0  ;;  %v4218_v51 = vmul.f32 0.2, %v4090_v45 }
 0x1db   :  { %v5001_v52 = vpack.c.bf16 %v4281_v49, %v4281_v49  ;;  %v4284_v53 = vsel %vm4156_vm6, %v4092_v42, %v4220_v47  ;;  %v3911_v54 = vpop.f32.mrb[49].mxu0  ;;  %v5465_v55 = vadd.f32 %v5403_v50, %v5271_v34 }
 0x1dc   :  { %4604 = vst.msk [vmem:[%s7369_s4 + $0xb8] sm:$0xf] %vm4557_vm7, %v5003_v48  ;;  %v5004_v56 = vpack.c.bf16 %v4284_v53, %v4284_v53  ;;  %v4282_v57 = vsel %vm4154_vm8, %v4090_v45, %v4218_v51  ;;  %v5404_v58 = vpop.f32.mrb[50].mxu0  ;;  %v5466_v59 = vadd.f32 %v3911_v54, %v1871_v38  ;;  %v5745_v54 = vld [vmem:[%s7368_s3] ss:$0 sm:$0xff] }
 0x1dd   :  { %4602 = vst.msk [vmem:[%s7369_s4 + $0xb0] sm:$0xf] %vm4557_vm7, %v5001_v52  ;;  %v5002_v60 = vpack.c.bf16 %v4282_v57, %v4282_v57  ;;  %v3914_v61 = vpop.f32.mrb[51].mxu0  ;;  %v4095_v62 = vadd.f32 %v5465_v55, %v7048_v33  ;;  %v5467_v63 = vadd.f32 %v5404_v58, %v5272_v26  ;;  %v5275_v0 = vpop.f32.mrb[52].mxu1 }
 0x1de   :  { %4605 = vst.msk [vmem:[%s7369_s4 + $0xbc] sm:$0xf] %vm4557_vm7, %v5004_v56  ;;  %v4093_v1 = vadd.f32 %v5466_v59, %v7048_v33  ;;  %v5468_v2 = vadd.f32 %v3914_v61, %v1874_v43  ;;  %v1887_v3 = vpop.f32.mrb[53].mxu1 }
 0x1df   :  { %4603 = vst.msk [vmem:[%s7369_s4 + $0xb4] sm:$0xf] %vm4557_vm7, %v5002_v60  ;;  %vm4159_vm9 = vcmp.ge.f32.partialorder %v4095_v62, 0.0  ;;  %v4223_v4 = vmul.f32 0.2, %v4095_v62  ;;  %v4096_v5 = vadd.f32 %v5467_v63, %v7048_v33  ;;  %v5276_v6 = vpop.f32.mrb[54].mxu1 }
 0x1e0   :  { %vm4157_vm10 = vcmp.ge.f32.partialorder %v4093_v1, 0.0  ;;  %v4221_v7 = vmul.f32 0.2, %v4093_v1  ;;  %v4094_v8 = vadd.f32 %v5468_v2, %v7048_v33  ;;  %v1890_v9 = vpop.f32.mrb[55].mxu1 }
 0x1e1   :  { %v4287_v10 = vsel %vm4159_vm9, %v4095_v62, %v4223_v4  ;;  %vm4160_vm11 = vcmp.ge.f32.partialorder %v4096_v5, 0.0  ;;  %v4224_v11 = vmul.f32 0.2, %v4096_v5 }
 0x1e2   :  { %v5007_v12 = vpack.c.bf16 %v4287_v10, %v4287_v10  ;;  %v4285_v13 = vsel %vm4157_vm10, %v4093_v1, %v4221_v7  ;;  %vm4158_vm12 = vcmp.ge.f32.partialorder %v4094_v8, 0.0  ;;  %v4222_v14 = vmul.f32 0.2, %v4094_v8 }
 0x1e3   :  { %v5005_v15 = vpack.c.bf16 %v4285_v13, %v4285_v13  ;;  %v4288_v16 = vsel %vm4160_vm11, %v4096_v5, %v4224_v11 }
 0x1e4   :  { %4608 = vst.msk [vmem:[%s7369_s4 + $0xc8] sm:$0xf] %vm4557_vm7, %v5007_v12  ;;  %v5008_v17 = vpack.c.bf16 %v4288_v16, %v4288_v16  ;;  %v5407_v18 = vpop.f32.mrb[52].mxu0  ;;  %v4286_v19 = vsel %vm4158_vm12, %v4094_v8, %v4222_v14 }
 0x1e5   :  { %4606 = vst.msk [vmem:[%s7369_s4 + $0xc0] sm:$0xf] %vm4557_vm7, %v5005_v15  ;;  %v5006_v20 = vpack.c.bf16 %v4286_v19, %v4286_v19  ;;  %v3927_v21 = vpop.f32.mrb[53].mxu0  ;;  %v5469_v22 = vadd.f32 %v5407_v18, %v5275_v0 }
 0x1e6   :  { %4609 = vst.msk [vmem:[%s7369_s4 + $0xcc] sm:$0xf] %vm4557_vm7, %v5008_v17  ;;  %v5408_v23 = vpop.f32.mrb[54].mxu0  ;;  %v5470_v24 = vadd.f32 %v3927_v21, %v1887_v3  ;;  %v5279_v25 = vpop.f32.mrb[56].mxu1 }
 0x1e7   :  { %4607 = vst.msk [vmem:[%s7369_s4 + $0xc4] sm:$0xf] %vm4557_vm7, %v5006_v20  ;;  %v3930_v27 = vpop.f32.mrb[55].mxu0  ;;  %v4099_v28 = vadd.f32 %v5469_v22, %v7048_v33  ;;  %v5471_v29 = vadd.f32 %v5408_v23, %v5276_v6  ;;  %v1903_v30 = vpop.f32.mrb[57].mxu1 }
 0x1e8   :  { %v4097_v31 = vadd.f32 %v5470_v24, %v7048_v33  ;;  %v5472_v32 = vadd.f32 %v3930_v27, %v1890_v9  ;;  %v5280_v34 = vpop.f32.mrb[58].mxu1 }
 0x1e9   :  { %vm4163_vm13 = vcmp.ge.f32.partialorder %v4099_v28, 0.0  ;;  %v4227_v35 = vmul.f32 0.2, %v4099_v28  ;;  %v4100_v36 = vadd.f32 %v5471_v29, %v7048_v33  ;;  %v1906_v37 = vpop.f32.mrb[59].mxu1 }
 0x1ea   :  { %vm4161_vm14 = vcmp.ge.f32.partialorder %v4097_v31, 0.0  ;;  %v4225_v38 = vmul.f32 0.2, %v4097_v31  ;;  %v4098_v39 = vadd.f32 %v5472_v32, %v7048_v33 }
 0x1eb   :  { %v4291_v40 = vsel %vm4163_vm13, %v4099_v28, %v4227_v35  ;;  %vm4164_vm15 = vcmp.ge.f32.partialorder %v4100_v36, 0.0  ;;  %v4228_v26 = vmul.f32 0.2, %v4100_v36 }
 0x1ec   :  { %v5011_v41 = vpack.c.bf16 %v4291_v40, %v4291_v40  ;;  %v4289_v42 = vsel %vm4161_vm14, %v4097_v31, %v4225_v38  ;;  %v5411_v43 = vpop.f32.mrb[56].mxu0  ;;  %vm4162_vm0 = vcmp.ge.f32.partialorder %v4098_v39, 0.0  ;;  %v4226_v44 = vmul.f32 0.2, %v4098_v39 }
 0x1ed   :  { %v5009_v45 = vpack.c.bf16 %v4289_v42, %v4289_v42  ;;  %v4292_v46 = vsel %vm4164_vm15, %v4100_v36, %v4228_v26  ;;  %v3943_v47 = vpop.f32.mrb[57].mxu0  ;;  %v5473_v48 = vadd.f32 %v5411_v43, %v5279_v25 }
 0x1ee   :  { %4612 = vst.msk [vmem:[%s7369_s4 + $0xd8] sm:$0xf] %vm4557_vm7, %v5011_v41  ;;  %v5012_v49 = vpack.c.bf16 %v4292_v46, %v4292_v46  ;;  %v4290_v50 = vsel %vm4162_vm0, %v4098_v39, %v4226_v44  ;;  %v5412_v33 = vpop.f32.mrb[58].mxu0  ;;  %v5474_v51 = vadd.f32 %v3943_v47, %v1903_v30 }
 0x1ef   :  { %4610 = vst.msk [vmem:[%s7369_s4 + $0xd0] sm:$0xf] %vm4557_vm7, %v5009_v45  ;;  %v5010_v52 = vpack.c.bf16 %v4290_v50, %v4290_v50  ;;  %v3946_v53 = vpop.f32.mrb[59].mxu0  ;;  %v4103_v55 = vadd.f32 %v5745_v54, %v5473_v48  ;;  %v5475_v56 = vadd.f32 %v5412_v33, %v5280_v34  ;;  %v5283_v57 = vpop.f32.mrb[60].mxu1 }
 0x1f0   :  { %4613 = vst.msk [vmem:[%s7369_s4 + $0xdc] sm:$0xf] %vm4557_vm7, %v5012_v49  ;;  %v4101_v58 = vadd.f32 %v5745_v54, %v5474_v51  ;;  %v5476_v59 = vadd.f32 %v3946_v53, %v1906_v37  ;;  %v1919_v60 = vpop.f32.mrb[61].mxu1 }
 0x1f1   :  { %4611 = vst.msk [vmem:[%s7369_s4 + $0xd4] sm:$0xf] %vm4557_vm7, %v5010_v52  ;;  %vm4167_vm1 = vcmp.ge.f32.partialorder %v4103_v55, 0.0  ;;  %v4231_v61 = vmul.f32 0.2, %v4103_v55  ;;  %v4104_v62 = vadd.f32 %v5745_v54, %v5475_v56  ;;  %v5284_v63 = vpop.f32.mrb[62].mxu1 }
 0x1f2   :  { %vm4165_vm2 = vcmp.ge.f32.partialorder %v4101_v58, 0.0  ;;  %v4229_v0 = vmul.f32 0.2, %v4101_v58  ;;  %v4102_v1 = vadd.f32 %v5745_v54, %v5476_v59  ;;  %v1922_v2 = vpop.f32.mrb[63].mxu1 }
 0x1f3   :  { %v4295_v3 = vsel %vm4167_vm1, %v4103_v55, %v4231_v61  ;;  %vm4168_vm3 = vcmp.ge.f32.partialorder %v4104_v62, 0.0  ;;  %v4232_v4 = vmul.f32 0.2, %v4104_v62 }
 0x1f4   :  { %v5015_v5 = vpack.c.bf16 %v4295_v3, %v4295_v3  ;;  %v4293_v6 = vsel %vm4165_vm2, %v4101_v58, %v4229_v0  ;;  %vm4166_vm4 = vcmp.ge.f32.partialorder %v4102_v1, 0.0  ;;  %v4230_v7 = vmul.f32 0.2, %v4102_v1 }
 0x1f5   :  { %v5013_v8 = vpack.c.bf16 %v4293_v6, %v4293_v6  ;;  %v4296_v9 = vsel %vm4168_vm3, %v4104_v62, %v4232_v4 }
 0x1f6   :  { %4616 = vst.msk [vmem:[%s7369_s4 + $0xe8] sm:$0xf] %vm4557_vm7, %v5015_v5  ;;  %v5016_v10 = vpack.c.bf16 %v4296_v9, %v4296_v9  ;;  %v5415_v11 = vpop.f32.mrb[60].mxu0  ;;  %v4294_v12 = vsel %vm4166_vm4, %v4102_v1, %v4230_v7 }
 0x1f7   :  { %4614 = vst.msk [vmem:[%s7369_s4 + $0xe0] sm:$0xf] %vm4557_vm7, %v5013_v8  ;;  %v5014_v13 = vpack.c.bf16 %v4294_v12, %v4294_v12  ;;  %v3959_v14 = vpop.f32.mrb[61].mxu0  ;;  %v5477_v15 = vadd.f32 %v5415_v11, %v5283_v57 }
 0x1f8   :  { %4617 = vst.msk [vmem:[%s7369_s4 + $0xec] sm:$0xf] %vm4557_vm7, %v5016_v10  ;;  %v5416_v16 = vpop.f32.mrb[62].mxu0  ;;  %v5478_v17 = vadd.f32 %v3959_v14, %v1919_v60 }
 0x1f9   :  { %4615 = vst.msk [vmem:[%s7369_s4 + $0xe4] sm:$0xf] %vm4557_vm7, %v5014_v13  ;;  %v3962_v18 = vpop.f32.mrb[63].mxu0  ;;  %v4107_v19 = vadd.f32 %v5745_v54, %v5477_v15  ;;  %v5479_v20 = vadd.f32 %v5416_v16, %v5284_v63 }
 0x1fa   :  { %v4105_v21 = vadd.f32 %v5745_v54, %v5478_v17  ;;  %v5480_v22 = vadd.f32 %v3962_v18, %v1922_v2 }
 0x1fb   :  { %vm4171_vm5 = vcmp.ge.f32.partialorder %v4107_v19, 0.0  ;;  %v4235_v23 = vmul.f32 0.2, %v4107_v19  ;;  %v4108_v24 = vadd.f32 %v5745_v54, %v5479_v20 }
 0x1fc   :  { %vm4169_vm6 = vcmp.ge.f32.partialorder %v4105_v21, 0.0  ;;  %v4233_v25 = vmul.f32 0.2, %v4105_v21  ;;  %v4106_v27 = vadd.f32 %v5745_v54, %v5480_v22 }
 0x1fd   :  { %v4299_v28 = vsel %vm4171_vm5, %v4107_v19, %v4235_v23  ;;  %vm4172_vm8 = vcmp.ge.f32.partialorder %v4108_v24, 0.0  ;;  %v4236_v29 = vmul.f32 0.2, %v4108_v24 }
 0x1fe   :  { %v5019_v30 = vpack.c.bf16 %v4299_v28, %v4299_v28  ;;  %v4297_v31 = vsel %vm4169_vm6, %v4105_v21, %v4233_v25  ;;  %vm4170_vm9 = vcmp.ge.f32.partialorder %v4106_v27, 0.0  ;;  %v4234_v32 = vmul.f32 0.2, %v4106_v27 }
 0x1ff   :  { %v5017_v34 = vpack.c.bf16 %v4297_v31, %v4297_v31  ;;  %v4300_v35 = vsel %vm4172_vm8, %v4108_v24, %v4236_v29 }
 0x200   :  { %4620 = vst.msk [vmem:[%s7369_s4 + $0xf8] sm:$0xf] %vm4557_vm7, %v5019_v30  ;;  %v5020_v36 = vpack.c.bf16 %v4300_v35, %v4300_v35  ;;  %v4298_v37 = vsel %vm4170_vm9, %v4106_v27, %v4234_v32 }
 0x201   :  { %4618 = vst.msk [vmem:[%s7369_s4 + $0xf0] sm:$0xf] %vm4557_vm7, %v5017_v34  ;;  %v5018_v38 = vpack.c.bf16 %v4298_v37, %v4298_v37 }
 0x202   :  { %4621 = vst.msk [vmem:[%s7369_s4 + $0xfc] sm:$0xf] %vm4557_vm7, %v5020_v36 }
 0x203   :  { %4619 = vst.msk [vmem:[%s7369_s4 + $0xf4] sm:$0xf] %vm4557_vm7, %v5018_v38 }

</bundles_post_ra>
